<compile_context>
chip_gen: v6e
topology: v6e:2x2x1
jax: 0.10.0
libtpu: 0.0.40
codegen_flags: <defaults>
</compile_context>

<pallas_src>
import functools
import math

import numpy as np
import jax
import jax.numpy as jnp
from jax import lax
from jax.experimental import pallas as pl
from jax.experimental.pallas import tpu as pltpu


# ----------------------------- Pallas kernel --------------------------------
def _conf_kernel(base_ref, mask_ref, params_ref, out_ref, *,
                 rotatable_bonds, tile_c, n_atoms_pad):
    """base_ref:   (N_pad, 3)          VMEM - rigid base geometry (atoms on sublanes)
       mask_ref:   (N_pad, n_rot')     VMEM - per-bond branch masks (0/1)
       params_ref: (6+n_rot, TILE_C)   VMEM - per-conformer params, lane-dense
       out_ref:    (3, N_pad, TILE_C)  VMEM - xyz planes, conformers on lanes."""
    N, TC = n_atoms_pad, tile_c
    # With <= 8 padded atoms, (1,TC) and (N,TC) f32 values occupy the same number
    # of vregs, so "cheap (1,TC) rows" buy nothing -> direct Rodrigues form.
    small = N <= 8

    def prow(idx):
        return params_ref[idx:idx + 1, :]            # (1, TC) lane-dense row

    def bcast(v):
        return jnp.broadcast_to(v, (N, TC))          # hoisted, done once per use-site group

    # Rigid base geometry broadcast across the conformer (lane) axis.
    px = bcast(base_ref[:, 0:1])
    py = bcast(base_ref[:, 1:2])
    pz = bcast(base_ref[:, 2:3])

    # ---- rotatable-bond torsions (unrolled statically) ----
    for b, (a1, a2) in enumerate(rotatable_bonds):
        # boolean branch mask for this bond (proven broadcast+compare lowering path)
        m = bcast(mask_ref[:, b:b + 1]) != 0.0

        if small:
            # Everything pre-broadcast to (N,TC); same vreg cost as (1,TC) at N<=8.
            ang = bcast(prow(6 + b))
            c = jnp.cos(ang)
            s = jnp.sin(ang)
            # per-conformer normalized bond axis k = coords[a2] - coords[a1]
            kx = bcast(px[a2:a2 + 1, :] - px[a1:a1 + 1, :])
            ky = bcast(py[a2:a2 + 1, :] - py[a1:a1 + 1, :])
            kz = bcast(pz[a2:a2 + 1, :] - pz[a1:a1 + 1, :])
            inv = lax.rsqrt(kx * kx + ky * ky + kz * kz)     # EUP slot, ~free
            kx, ky, kz = kx * inv, ky * inv, kz * inv
            # rotation pivot (atom a1), broadcast once
            ox = bcast(px[a1:a1 + 1, :])
            oy = bcast(py[a1:a1 + 1, :])
            oz = bcast(pz[a1:a1 + 1, :])
            rx, ry, rz = px - ox, py - oy, pz - oz
            dot = kx * rx + ky * ry + kz * rz
            t = dot - dot * c                                # (k.v) * (1 - c)
            # v' = v*c + (k x v)*s + k*(k.v)*(1-c); blend only branch atoms (vsel)
            px = jnp.where(m, rx * c + (ky * rz - kz * ry) * s + kx * t + ox, px)
            py = jnp.where(m, ry * c + (kz * rx - kx * rz) * s + ky * t + oy, py)
            pz = jnp.where(m, rz * c + (kx * ry - ky * rx) * s + kz * t + oz, pz)
        else:
            # R-matrix form: 9 cheap (1,TC) entries amortize over many atom rows.
            ang = prow(6 + b)
            c = jnp.cos(ang)
            s = jnp.sin(ang)
            oc = 1.0 - c
            kx = px[a2:a2 + 1, :] - px[a1:a1 + 1, :]
            ky = py[a2:a2 + 1, :] - py[a1:a1 + 1, :]
            kz = pz[a2:a2 + 1, :] - pz[a1:a1 + 1, :]
            inv = lax.rsqrt(kx * kx + ky * ky + kz * kz)
            kx, ky, kz = kx * inv, ky * inv, kz * inv
            R00 = c + kx * kx * oc
            R01 = -kz * s + kx * ky * oc
            R02 = ky * s + kx * kz * oc
            R10 = kz * s + ky * kx * oc
            R11 = c + ky * ky * oc
            R12 = -kx * s + ky * kz * oc
            R20 = -ky * s + kz * kx * oc
            R21 = kx * s + kz * ky * oc
            R22 = c + kz * kz * oc
            ox = px[a1:a1 + 1, :]
            oy = py[a1:a1 + 1, :]
            oz = pz[a1:a1 + 1, :]
            rx, ry, rz = px - ox, py - oy, pz - oz
            px = jnp.where(m, R00 * rx + R01 * ry + R02 * rz + ox, px)
            py = jnp.where(m, R10 * rx + R11 * ry + R12 * rz + oy, py)
            pz = jnp.where(m, R20 * rx + R21 * ry + R22 * rz + oz, pz)

    # ---- global orientation: Euler -> quaternion -> rotation, + translation ----
    if small:
        ex, ey, ez = bcast(prow(3)), bcast(prow(4)), bcast(prow(5))
        tx, ty, tz = bcast(prow(0)), bcast(prow(1)), bcast(prow(2))
    else:
        ex, ey, ez = prow(3), prow(4), prow(5)
        tx, ty, tz = prow(0), prow(1), prow(2)
    cex, sex = jnp.cos(ex * 0.5), jnp.sin(ex * 0.5)
    cey, sey = jnp.cos(ey * 0.5), jnp.sin(ey * 0.5)
    cez, sez = jnp.cos(ez * 0.5), jnp.sin(ez * 0.5)
    qw = cex * cey * cez + sex * sey * sez
    qx = sex * cey * cez - cex * sey * sez
    qy = cex * sey * cez + sex * cey * sez
    qz = cex * cey * sez - sex * sey * cez

    R00 = 1 - 2 * qy * qy - 2 * qz * qz
    R01 = 2 * qx * qy - 2 * qz * qw
    R02 = 2 * qx * qz + 2 * qy * qw
    R10 = 2 * qx * qy + 2 * qz * qw
    R11 = 1 - 2 * qx * qx - 2 * qz * qz
    R12 = 2 * qy * qz - 2 * qx * qw
    R20 = 2 * qx * qz - 2 * qy * qw
    R21 = 2 * qy * qz + 2 * qx * qw
    R22 = 1 - 2 * qx * qx - 2 * qy * qy

    # Match torch exactly: bmm(points, stack(rows, 2).transpose(1,2)) applies
    # out_j = sum_i p_i * R[i, j]; rigid translation folded in.  Per-plane
    # stores (no jnp.stack temporary); optional bf16 cast at the store only.
    dt = out_ref.dtype
    out_ref[0] = (R00 * px + R10 * py + R20 * pz + tx).astype(dt)
    out_ref[1] = (R01 * px + R11 * py + R21 * pz + ty).astype(dt)
    out_ref[2] = (R02 * px + R12 * py + R22 * pz + tz).astype(dt)


# ------------------------------- wrapper -------------------------------------
def _choose_tile_c(n_conformers, n_atoms_pad):
    """Conformer lane-tile heuristic:
       * cap so each live (n_atoms_pad, tile_c) f32 array stays within ~4 vregs
         (4096 elements) -> no spills from the unrolled Rodrigues body,
       * never exceed 512 lanes per step,
       * keep >= 2 grid steps when there are >= 2 lane tiles so the 'parallel'
         grid axis can shard across both v7x TensorCores (on v5e/v6e the extra
         ~0.35us step is noise)."""
    cap = max(128, min(512, ((4096 // max(n_atoms_pad, 8)) // 128) * 128))
    c_lanes = ((n_conformers + 127) // 128) * 128
    if c_lanes <= cap:
        if c_lanes >= 256:
            return ((c_lanes // 2 + 127) // 128) * 128
        return c_lanes
    return cap


def drug_conformation_forward(base_coords, conf_params, branch_mask,
                              rotatable_bonds, *, tile_c=None,
                              out_dtype=jnp.float32, return_planar=False):
    """base_coords: (n_atoms, 3); conf_params: (C, 6+n_rot);
       branch_mask: (n_rot, n_atoms) with 0/1 entries.
       Returns (C, n_atoms, 3) out_dtype (PyTorch module contract), or the planar
       (3, n_atoms, C) array if return_planar=True (skips the final HBM transpose
       pass for layout-aware consumers)."""
    n_atoms = int(base_coords.shape[0])
    C, n_params = int(conf_params.shape[0]), int(conf_params.shape[1])
    n_rot = int(branch_mask.shape[0])
    rotatable_bonds = tuple(tuple(int(a) for a in bd) for bd in rotatable_bonds)
    assert len(rotatable_bonds) == n_rot and n_params == 6 + n_rot

    # Pad atoms to the 8-sublane granule and conformers to the lane tile.
    n_atoms_pad = max(8, ((n_atoms + 7) // 8) * 8)
    if tile_c is None:
        tile_c = _choose_tile_c(C, n_atoms_pad)
    assert tile_c % 128 == 0
    c_pad = ((C + tile_c - 1) // tile_c) * tile_c

    base_pad = base_coords.astype(jnp.float32)
    if n_atoms_pad != n_atoms:
        base_pad = jnp.pad(base_pad, ((0, n_atoms_pad - n_atoms), (0, 0)))

    n_mask_cols = max(n_rot, 1)                      # keep a non-empty minor dim
    mask_t = jnp.zeros((n_atoms_pad, n_mask_cols), jnp.float32)
    if n_rot > 0:
        mask_t = mask_t.at[:n_atoms, :n_rot].set(
            jnp.transpose(branch_mask.astype(jnp.float32), (1, 0)))

    # Per-conformer params transposed so conformers sit on the lane axis; padded
    # conformer lanes get all-zero params (identity transform -> harmless, and
    # they are sliced away only when padding actually exists).
    # NOTE: this tiny (C x (6+n_rot)) host pass is kept deliberately -- it is what
    # lets the kernel read each scalar as a lane-dense (1, TILE_C) row without an
    # in-kernel (TILE_C, n_params) relayout (fragile lowering for narrow minors).
    params_t = jnp.transpose(conf_params.astype(jnp.float32), (1, 0))
    if c_pad != C:
        params_t = jnp.pad(params_t, ((0, 0), (0, c_pad - C)))

    kernel = functools.partial(_conf_kernel,
                               rotatable_bonds=rotatable_bonds,
                               tile_c=tile_c, n_atoms_pad=n_atoms_pad)

    out_planar = pl.pallas_call(
        kernel,
        out_shape=jax.ShapeDtypeStruct((3, n_atoms_pad, c_pad), out_dtype),
        grid=(c_pad // tile_c,),
        in_specs=[
            pl.BlockSpec((n_atoms_pad, 3), lambda i: (0, 0)),
            pl.BlockSpec((n_atoms_pad, n_mask_cols), lambda i: (0, 0)),
            pl.BlockSpec((n_params, tile_c), lambda i: (0, i)),
        ],
        out_specs=pl.BlockSpec((3, n_atoms_pad, tile_c), lambda i: (0, 0, i)),
        compiler_params=pltpu.CompilerParams(dimension_semantics=("parallel",)),
    )(base_pad, mask_t, params_t)

    # Only slice when padding exists (avoids an extra HBM pass otherwise).
    if n_atoms_pad != n_atoms or c_pad != C:
        out_planar = out_planar[:, :n_atoms, :C]
    if return_planar:
        return out_planar                            # (3, n_atoms, C)
    # PyTorch-contract layout; plain XLA transpose outside the kernel.  For big
    # C, prefer return_planar=True and fuse the layout into the consumer.
    return jnp.transpose(out_planar, (2, 1, 0))      # (C, n_atoms, 3)


# --------------------------- pure-JAX reference ------------------------------
def reference_forward(base_coords, params, rotatable_bonds, branch_lists):
    C = params.shape[0]
    coords = jnp.broadcast_to(base_coords[None], (C,) + base_coords.shape)
    for b, ((a1, a2), branch) in enumerate(zip(rotatable_bonds, branch_lists)):
        ang = params[:, 6 + b]
        k = coords[:, a2] - coords[:, a1]
        k = k / jnp.linalg.norm(k, axis=1, keepdims=True)
        c = jnp.cos(ang)[:, None, None]
        s = jnp.sin(ang)[:, None, None]
        kx, ky, kz = k[:, 0], k[:, 1], k[:, 2]
        z0 = jnp.zeros_like(kx)
        K = jnp.stack([jnp.stack([z0, -kz, ky], -1),
                       jnp.stack([kz, z0, -kx], -1),
                       jnp.stack([-ky, kx, z0], -1)], axis=1)
        I = jnp.eye(3, dtype=jnp.float32)[None]
        kkt = k[:, :, None] * k[:, None, :]
        R = I * c + K * s + kkt * (1 - c)
        branch = list(branch)
        rel = coords[:, branch] - coords[:, a1:a1 + 1]
        rotated = jnp.einsum('cni,cji->cnj', rel, R)
        coords = coords.at[:, branch].set(rotated + coords[:, a1:a1 + 1])

    ex, ey, ez = params[:, 3], params[:, 4], params[:, 5]
    cex, sex = jnp.cos(ex / 2), jnp.sin(ex / 2)
    cey, sey = jnp.cos(ey / 2), jnp.sin(ey / 2)
    cez, sez = jnp.cos(ez / 2), jnp.sin(ez / 2)
    qw = cex * cey * cez + sex * sey * sez
    qx = sex * cey * cez - cex * sey * sez
    qy = cex * sey * cez + sex * cey * sez
    qz = cex * cey * sez - sex * sey * cez
    R00 = 1 - 2 * qy * qy - 2 * qz * qz; R01 = 2 * qx * qy - 2 * qz * qw; R02 = 2 * qx * qz + 2 * qy * qw
    R10 = 2 * qx * qy + 2 * qz * qw;     R11 = 1 - 2 * qx * qx - 2 * qz * qz; R12 = 2 * qy * qz - 2 * qx * qw
    R20 = 2 * qx * qz - 2 * qy * qw;     R21 = 2 * qy * qz + 2 * qx * qw;     R22 = 1 - 2 * qx * qx - 2 * qy * qy
    Rm = jnp.stack([jnp.stack([R00, R01, R02], -1),
                    jnp.stack([R10, R11, R12], -1),
                    jnp.stack([R20, R21, R22], -1)], axis=1)   # Rm[c,i,j] = R_ij
    # torch: bmm(points, stack(rows, dim=2).transpose(1,2)) == sum_i p_i * R[i, j]
    coords = jnp.einsum('cni,cij->cnj', coords, Rm)
    coords = coords + params[:, None, :3]
    return coords


# --------------------------------- main --------------------------------------
if __name__ == "__main__":
    n_conformers = 1024       # tile_c=512 -> 2 "parallel" grid steps (both v7x TCs busy)
    n_atoms = 8
    surface_distance = 0.0

    # Synthetic "molecule": deterministic zig-zag chain of 8 heavy atoms.
    # TODO(synk): atom typing / rotatable-bond discovery are RDKit graph code on
    # the host in the original module; replaced by static data here.
    base_coords = jnp.array(
        [[1.5 * i, 0.5 * ((-1) ** i), 0.3 * i] for i in range(n_atoms)],
        dtype=jnp.float32)

    rotatable_bonds = [(1, 2), (4, 5)]
    branch_lists = [[2, 3, 4, 5, 6, 7], [5, 6, 7]]
    n_rot = len(rotatable_bonds)

    branch_mask_np = np.zeros((n_rot, n_atoms), dtype=np.float32)
    for b, br in enumerate(branch_lists):
        branch_mask_np[b, br] = 1.0
    branch_mask = jnp.asarray(branch_mask_np)

    # Deterministic parameter initialization (mirrors _initialize_near_surface).
    key = jax.random.PRNGKey(0)
    k_prot, k_theta, k_phi, k_orient, k_rot = jax.random.split(key, 5)
    protein_coords = jax.random.normal(k_prot, (32, 3), dtype=jnp.float32) * 5.0
    protein_center = protein_coords.mean(axis=0)
    protein_radius = jnp.max(jnp.linalg.norm(protein_coords - protein_center, axis=1))

    theta = jax.random.uniform(k_theta, (n_conformers,)) * 2 * math.pi
    phi = jnp.arccos(2 * jax.random.uniform(k_phi, (n_conformers,)) - 1)
    r = protein_radius + surface_distance
    sx = r * jnp.sin(phi) * jnp.cos(theta)
    sy = r * jnp.sin(phi) * jnp.sin(theta)
    sz = r * jnp.cos(phi)
    positions = jnp.stack([sx, sy, sz], axis=1) + protein_center
    orientations = jax.random.uniform(k_orient, (n_conformers, 3)) * 2 * math.pi
    rot_angles = jax.random.uniform(k_rot, (n_conformers, n_rot)) * 2 * math.pi
    conf_params = jnp.concatenate([positions, orientations, rot_angles],
                                  axis=1).astype(jnp.float32)

    out = drug_conformation_forward(base_coords, conf_params, branch_mask,
                                    rotatable_bonds)
    out = jax.block_until_ready(out)

    ref = reference_forward(base_coords, conf_params, rotatable_bonds, branch_lists)
    np.testing.assert_allclose(np.asarray(out), np.asarray(ref),
                               rtol=2e-4, atol=3e-3)
    assert out.shape == (n_conformers, n_atoms, 3)
    print("KERNEL_OK")
</pallas_src>

<mosaic_0001>
module attributes {stable_mosaic.version = 11 : i64} {
  func.func @_conf_kernel(%arg0: i32, %arg1: memref<8x3xf32, #tpu.memory_space<vmem>>, %arg2: memref<8x2xf32, #tpu.memory_space<vmem>>, %arg3: memref<8x512xf32, #tpu.memory_space<vmem>>, %arg4: memref<3x8x512xf32, #tpu.memory_space<vmem>>) attributes {dimension_semantics = [#tpu.dimension_semantics<parallel>], iteration_bounds = array<i64: 2>, scalar_prefetch = 0 : i64, scratch_operands = 0 : i64, tpu.core_type = #tpu.core_type<tc>, window_params = [{pipeline_mode = #tpu.pipeline_mode<synchronous>, transform_indices = @transform_0, window_bounds = array<i64: 8, 3>}, {pipeline_mode = #tpu.pipeline_mode<synchronous>, transform_indices = @transform_1, window_bounds = array<i64: 8, 2>}, {transform_indices = @transform_2, window_bounds = array<i64: 8, 512>}, {transform_indices = @transform_3, window_bounds = array<i64: 3, 8, 512>}]} {
    %c0 = arith.constant 0 : index
    %c0_0 = arith.constant 0 : index
    %0 = vector.load %arg1[%c0, %c0_0] : memref<8x3xf32, #tpu.memory_space<vmem>>, vector<8x1xf32>
    %1 = vector.shape_cast %0 : vector<8x1xf32> to vector<8x1xf32>
    %2 = vector.broadcast %1 : vector<8x1xf32> to vector<8x512xf32>
    %c0_1 = arith.constant 0 : index
    %c1 = arith.constant 1 : index
    %3 = vector.load %arg1[%c0_1, %c1] : memref<8x3xf32, #tpu.memory_space<vmem>>, vector<8x1xf32>
    %4 = vector.shape_cast %3 : vector<8x1xf32> to vector<8x1xf32>
    %5 = vector.broadcast %4 : vector<8x1xf32> to vector<8x512xf32>
    %c0_2 = arith.constant 0 : index
    %c2 = arith.constant 2 : index
    %6 = vector.load %arg1[%c0_2, %c2] : memref<8x3xf32, #tpu.memory_space<vmem>>, vector<8x1xf32>
    %7 = vector.shape_cast %6 : vector<8x1xf32> to vector<8x1xf32>
    %8 = vector.broadcast %7 : vector<8x1xf32> to vector<8x512xf32>
    %c0_3 = arith.constant 0 : index
    %c0_4 = arith.constant 0 : index
    %9 = vector.load %arg2[%c0_3, %c0_4] : memref<8x2xf32, #tpu.memory_space<vmem>>, vector<8x1xf32>
    %10 = vector.shape_cast %9 : vector<8x1xf32> to vector<8x1xf32>
    %11 = vector.broadcast %10 : vector<8x1xf32> to vector<8x512xf32>
    %cst = arith.constant 0.000000e+00 : f32
    %12 = vector.broadcast %cst : f32 to vector<8x512xf32>
    %13 = arith.cmpf one, %11, %12 : vector<8x512xf32>
    %c6 = arith.constant 6 : index
    %c0_5 = arith.constant 0 : index
    %14 = vector.load %arg3[%c6, %c0_5] : memref<8x512xf32, #tpu.memory_space<vmem>>, vector<1x512xf32>
    %15 = vector.shape_cast %14 : vector<1x512xf32> to vector<1x512xf32>
    %16 = vector.broadcast %15 : vector<1x512xf32> to vector<8x512xf32>
    %17 = math.cos %16 : vector<8x512xf32>
    %18 = math.sin %16 : vector<8x512xf32>
    %19 = vector.extract_strided_slice %2 {offsets = [2, 0], sizes = [1, 512], strides = [1, 1]} : vector<8x512xf32> to vector<1x512xf32>
    %20 = vector.extract_strided_slice %2 {offsets = [1, 0], sizes = [1, 512], strides = [1, 1]} : vector<8x512xf32> to vector<1x512xf32>
    %21 = arith.subf %19, %20 : vector<1x512xf32>
    %22 = vector.shape_cast %21 : vector<1x512xf32> to vector<1x512xf32>
    %23 = vector.broadcast %22 : vector<1x512xf32> to vector<8x512xf32>
    %24 = vector.extract_strided_slice %5 {offsets = [2, 0], sizes = [1, 512], strides = [1, 1]} : vector<8x512xf32> to vector<1x512xf32>
    %25 = vector.extract_strided_slice %5 {offsets = [1, 0], sizes = [1, 512], strides = [1, 1]} : vector<8x512xf32> to vector<1x512xf32>
    %26 = arith.subf %24, %25 : vector<1x512xf32>
    %27 = vector.shape_cast %26 : vector<1x512xf32> to vector<1x512xf32>
    %28 = vector.broadcast %27 : vector<1x512xf32> to vector<8x512xf32>
    %29 = vector.extract_strided_slice %8 {offsets = [2, 0], sizes = [1, 512], strides = [1, 1]} : vector<8x512xf32> to vector<1x512xf32>
    %30 = vector.extract_strided_slice %8 {offsets = [1, 0], sizes = [1, 512], strides = [1, 1]} : vector<8x512xf32> to vector<1x512xf32>
    %31 = arith.subf %29, %30 : vector<1x512xf32>
    %32 = vector.shape_cast %31 : vector<1x512xf32> to vector<1x512xf32>
    %33 = vector.broadcast %32 : vector<1x512xf32> to vector<8x512xf32>
    %34 = arith.mulf %23, %23 : vector<8x512xf32>
    %35 = arith.mulf %28, %28 : vector<8x512xf32>
    %36 = arith.addf %34, %35 : vector<8x512xf32>
    %37 = arith.mulf %33, %33 : vector<8x512xf32>
    %38 = arith.addf %36, %37 : vector<8x512xf32>
    %39 = math.rsqrt %38 : vector<8x512xf32>
    %40 = arith.mulf %23, %39 : vector<8x512xf32>
    %41 = arith.mulf %28, %39 : vector<8x512xf32>
    %42 = arith.mulf %33, %39 : vector<8x512xf32>
    %43 = vector.extract_strided_slice %2 {offsets = [1, 0], sizes = [1, 512], strides = [1, 1]} : vector<8x512xf32> to vector<1x512xf32>
    %44 = vector.shape_cast %43 : vector<1x512xf32> to vector<1x512xf32>
    %45 = vector.broadcast %44 : vector<1x512xf32> to vector<8x512xf32>
    %46 = vector.extract_strided_slice %5 {offsets = [1, 0], sizes = [1, 512], strides = [1, 1]} : vector<8x512xf32> to vector<1x512xf32>
    %47 = vector.shape_cast %46 : vector<1x512xf32> to vector<1x512xf32>
    %48 = vector.broadcast %47 : vector<1x512xf32> to vector<8x512xf32>
    %49 = vector.extract_strided_slice %8 {offsets = [1, 0], sizes = [1, 512], strides = [1, 1]} : vector<8x512xf32> to vector<1x512xf32>
    %50 = vector.shape_cast %49 : vector<1x512xf32> to vector<1x512xf32>
    %51 = vector.broadcast %50 : vector<1x512xf32> to vector<8x512xf32>
    %52 = arith.subf %2, %45 : vector<8x512xf32>
    %53 = arith.subf %5, %48 : vector<8x512xf32>
    %54 = arith.subf %8, %51 : vector<8x512xf32>
    %55 = arith.mulf %40, %52 : vector<8x512xf32>
    %56 = arith.mulf %41, %53 : vector<8x512xf32>
    %57 = arith.addf %55, %56 : vector<8x512xf32>
    %58 = arith.mulf %42, %54 : vector<8x512xf32>
    %59 = arith.addf %57, %58 : vector<8x512xf32>
    %60 = arith.mulf %59, %17 : vector<8x512xf32>
    %61 = arith.subf %59, %60 : vector<8x512xf32>
    %62 = arith.mulf %52, %17 : vector<8x512xf32>
    %63 = arith.mulf %41, %54 : vector<8x512xf32>
    %64 = arith.mulf %42, %53 : vector<8x512xf32>
    %65 = arith.subf %63, %64 : vector<8x512xf32>
    %66 = arith.mulf %65, %18 : vector<8x512xf32>
    %67 = arith.addf %62, %66 : vector<8x512xf32>
    %68 = arith.mulf %40, %61 : vector<8x512xf32>
    %69 = arith.addf %67, %68 : vector<8x512xf32>
    %70 = arith.addf %69, %45 : vector<8x512xf32>
    %71 = arith.select %13, %70, %2 : vector<8x512xi1>, vector<8x512xf32>
    %72 = arith.mulf %53, %17 : vector<8x512xf32>
    %73 = arith.mulf %42, %52 : vector<8x512xf32>
    %74 = arith.mulf %40, %54 : vector<8x512xf32>
    %75 = arith.subf %73, %74 : vector<8x512xf32>
    %76 = arith.mulf %75, %18 : vector<8x512xf32>
    %77 = arith.addf %72, %76 : vector<8x512xf32>
    %78 = arith.mulf %41, %61 : vector<8x512xf32>
    %79 = arith.addf %77, %78 : vector<8x512xf32>
    %80 = arith.addf %79, %48 : vector<8x512xf32>
    %81 = arith.select %13, %80, %5 : vector<8x512xi1>, vector<8x512xf32>
    %82 = arith.mulf %54, %17 : vector<8x512xf32>
    %83 = arith.mulf %40, %53 : vector<8x512xf32>
    %84 = arith.mulf %41, %52 : vector<8x512xf32>
    %85 = arith.subf %83, %84 : vector<8x512xf32>
    %86 = arith.mulf %85, %18 : vector<8x512xf32>
    %87 = arith.addf %82, %86 : vector<8x512xf32>
    %88 = arith.mulf %42, %61 : vector<8x512xf32>
    %89 = arith.addf %87, %88 : vector<8x512xf32>
    %90 = arith.addf %89, %51 : vector<8x512xf32>
    %91 = arith.select %13, %90, %8 : vector<8x512xi1>, vector<8x512xf32>
    %c0_6 = arith.constant 0 : index
    %c1_7 = arith.constant 1 : index
    %92 = vector.load %arg2[%c0_6, %c1_7] : memref<8x2xf32, #tpu.memory_space<vmem>>, vector<8x1xf32>
    %93 = vector.shape_cast %92 : vector<8x1xf32> to vector<8x1xf32>
    %94 = vector.broadcast %93 : vector<8x1xf32> to vector<8x512xf32>
    %cst_8 = arith.constant 0.000000e+00 : f32
    %95 = vector.broadcast %cst_8 : f32 to vector<8x512xf32>
    %96 = arith.cmpf one, %94, %95 : vector<8x512xf32>
    %c7 = arith.constant 7 : index
    %c0_9 = arith.constant 0 : index
    %97 = vector.load %arg3[%c7, %c0_9] : memref<8x512xf32, #tpu.memory_space<vmem>>, vector<1x512xf32>
    %98 = vector.shape_cast %97 : vector<1x512xf32> to vector<1x512xf32>
    %99 = vector.broadcast %98 : vector<1x512xf32> to vector<8x512xf32>
    %100 = math.cos %99 : vector<8x512xf32>
    %101 = math.sin %99 : vector<8x512xf32>
    %102 = vector.extract_strided_slice %71 {offsets = [5, 0], sizes = [1, 512], strides = [1, 1]} : vector<8x512xf32> to vector<1x512xf32>
    %103 = vector.extract_strided_slice %71 {offsets = [4, 0], sizes = [1, 512], strides = [1, 1]} : vector<8x512xf32> to vector<1x512xf32>
    %104 = arith.subf %102, %103 : vector<1x512xf32>
    %105 = vector.shape_cast %104 : vector<1x512xf32> to vector<1x512xf32>
    %106 = vector.broadcast %105 : vector<1x512xf32> to vector<8x512xf32>
    %107 = vector.extract_strided_slice %81 {offsets = [5, 0], sizes = [1, 512], strides = [1, 1]} : vector<8x512xf32> to vector<1x512xf32>
    %108 = vector.extract_strided_slice %81 {offsets = [4, 0], sizes = [1, 512], strides = [1, 1]} : vector<8x512xf32> to vector<1x512xf32>
    %109 = arith.subf %107, %108 : vector<1x512xf32>
    %110 = vector.shape_cast %109 : vector<1x512xf32> to vector<1x512xf32>
    %111 = vector.broadcast %110 : vector<1x512xf32> to vector<8x512xf32>
    %112 = vector.extract_strided_slice %91 {offsets = [5, 0], sizes = [1, 512], strides = [1, 1]} : vector<8x512xf32> to vector<1x512xf32>
    %113 = vector.extract_strided_slice %91 {offsets = [4, 0], sizes = [1, 512], strides = [1, 1]} : vector<8x512xf32> to vector<1x512xf32>
    %114 = arith.subf %112, %113 : vector<1x512xf32>
    %115 = vector.shape_cast %114 : vector<1x512xf32> to vector<1x512xf32>
    %116 = vector.broadcast %115 : vector<1x512xf32> to vector<8x512xf32>
    %117 = arith.mulf %106, %106 : vector<8x512xf32>
    %118 = arith.mulf %111, %111 : vector<8x512xf32>
    %119 = arith.addf %117, %118 : vector<8x512xf32>
    %120 = arith.mulf %116, %116 : vector<8x512xf32>
    %121 = arith.addf %119, %120 : vector<8x512xf32>
    %122 = math.rsqrt %121 : vector<8x512xf32>
    %123 = arith.mulf %106, %122 : vector<8x512xf32>
    %124 = arith.mulf %111, %122 : vector<8x512xf32>
    %125 = arith.mulf %116, %122 : vector<8x512xf32>
    %126 = vector.extract_strided_slice %71 {offsets = [4, 0], sizes = [1, 512], strides = [1, 1]} : vector<8x512xf32> to vector<1x512xf32>
    %127 = vector.shape_cast %126 : vector<1x512xf32> to vector<1x512xf32>
    %128 = vector.broadcast %127 : vector<1x512xf32> to vector<8x512xf32>
    %129 = vector.extract_strided_slice %81 {offsets = [4, 0], sizes = [1, 512], strides = [1, 1]} : vector<8x512xf32> to vector<1x512xf32>
    %130 = vector.shape_cast %129 : vector<1x512xf32> to vector<1x512xf32>
    %131 = vector.broadcast %130 : vector<1x512xf32> to vector<8x512xf32>
    %132 = vector.extract_strided_slice %91 {offsets = [4, 0], sizes = [1, 512], strides = [1, 1]} : vector<8x512xf32> to vector<1x512xf32>
    %133 = vector.shape_cast %132 : vector<1x512xf32> to vector<1x512xf32>
    %134 = vector.broadcast %133 : vector<1x512xf32> to vector<8x512xf32>
    %135 = arith.subf %71, %128 : vector<8x512xf32>
    %136 = arith.subf %81, %131 : vector<8x512xf32>
    %137 = arith.subf %91, %134 : vector<8x512xf32>
    %138 = arith.mulf %123, %135 : vector<8x512xf32>
    %139 = arith.mulf %124, %136 : vector<8x512xf32>
    %140 = arith.addf %138, %139 : vector<8x512xf32>
    %141 = arith.mulf %125, %137 : vector<8x512xf32>
    %142 = arith.addf %140, %141 : vector<8x512xf32>
    %143 = arith.mulf %142, %100 : vector<8x512xf32>
    %144 = arith.subf %142, %143 : vector<8x512xf32>
    %145 = arith.mulf %135, %100 : vector<8x512xf32>
    %146 = arith.mulf %124, %137 : vector<8x512xf32>
    %147 = arith.mulf %125, %136 : vector<8x512xf32>
    %148 = arith.subf %146, %147 : vector<8x512xf32>
    %149 = arith.mulf %148, %101 : vector<8x512xf32>
    %150 = arith.addf %145, %149 : vector<8x512xf32>
    %151 = arith.mulf %123, %144 : vector<8x512xf32>
    %152 = arith.addf %150, %151 : vector<8x512xf32>
    %153 = arith.addf %152, %128 : vector<8x512xf32>
    %154 = arith.select %96, %153, %71 : vector<8x512xi1>, vector<8x512xf32>
    %155 = arith.mulf %136, %100 : vector<8x512xf32>
    %156 = arith.mulf %125, %135 : vector<8x512xf32>
    %157 = arith.mulf %123, %137 : vector<8x512xf32>
    %158 = arith.subf %156, %157 : vector<8x512xf32>
    %159 = arith.mulf %158, %101 : vector<8x512xf32>
    %160 = arith.addf %155, %159 : vector<8x512xf32>
    %161 = arith.mulf %124, %144 : vector<8x512xf32>
    %162 = arith.addf %160, %161 : vector<8x512xf32>
    %163 = arith.addf %162, %131 : vector<8x512xf32>
    %164 = arith.select %96, %163, %81 : vector<8x512xi1>, vector<8x512xf32>
    %165 = arith.mulf %137, %100 : vector<8x512xf32>
    %166 = arith.mulf %123, %136 : vector<8x512xf32>
    %167 = arith.mulf %124, %135 : vector<8x512xf32>
    %168 = arith.subf %166, %167 : vector<8x512xf32>
    %169 = arith.mulf %168, %101 : vector<8x512xf32>
    %170 = arith.addf %165, %169 : vector<8x512xf32>
    %171 = arith.mulf %125, %144 : vector<8x512xf32>
    %172 = arith.addf %170, %171 : vector<8x512xf32>
    %173 = arith.addf %172, %134 : vector<8x512xf32>
    %174 = arith.select %96, %173, %91 : vector<8x512xi1>, vector<8x512xf32>
    %c3 = arith.constant 3 : index
    %c0_10 = arith.constant 0 : index
    %175 = vector.load %arg3[%c3, %c0_10] : memref<8x512xf32, #tpu.memory_space<vmem>>, vector<1x512xf32>
    %176 = vector.shape_cast %175 : vector<1x512xf32> to vector<1x512xf32>
    %177 = vector.broadcast %176 : vector<1x512xf32> to vector<8x512xf32>
    %c4 = arith.constant 4 : index
    %c0_11 = arith.constant 0 : index
    %178 = vector.load %arg3[%c4, %c0_11] : memref<8x512xf32, #tpu.memory_space<vmem>>, vector<1x512xf32>
    %179 = vector.shape_cast %178 : vector<1x512xf32> to vector<1x512xf32>
    %180 = vector.broadcast %179 : vector<1x512xf32> to vector<8x512xf32>
    %c5 = arith.constant 5 : index
    %c0_12 = arith.constant 0 : index
    %181 = vector.load %arg3[%c5, %c0_12] : memref<8x512xf32, #tpu.memory_space<vmem>>, vector<1x512xf32>
    %182 = vector.shape_cast %181 : vector<1x512xf32> to vector<1x512xf32>
    %183 = vector.broadcast %182 : vector<1x512xf32> to vector<8x512xf32>
    %c0_13 = arith.constant 0 : index
    %c0_14 = arith.constant 0 : index
    %184 = vector.load %arg3[%c0_13, %c0_14] : memref<8x512xf32, #tpu.memory_space<vmem>>, vector<1x512xf32>
    %185 = vector.shape_cast %184 : vector<1x512xf32> to vector<1x512xf32>
    %186 = vector.broadcast %185 : vector<1x512xf32> to vector<8x512xf32>
    %c1_15 = arith.constant 1 : index
    %c0_16 = arith.constant 0 : index
    %187 = vector.load %arg3[%c1_15, %c0_16] : memref<8x512xf32, #tpu.memory_space<vmem>>, vector<1x512xf32>
    %188 = vector.shape_cast %187 : vector<1x512xf32> to vector<1x512xf32>
    %189 = vector.broadcast %188 : vector<1x512xf32> to vector<8x512xf32>
    %c2_17 = arith.constant 2 : index
    %c0_18 = arith.constant 0 : index
    %190 = vector.load %arg3[%c2_17, %c0_18] : memref<8x512xf32, #tpu.memory_space<vmem>>, vector<1x512xf32>
    %191 = vector.shape_cast %190 : vector<1x512xf32> to vector<1x512xf32>
    %192 = vector.broadcast %191 : vector<1x512xf32> to vector<8x512xf32>
    %cst_19 = arith.constant 5.000000e-01 : f32
    %193 = vector.broadcast %cst_19 : f32 to vector<8x512xf32>
    %194 = arith.mulf %177, %193 : vector<8x512xf32>
    %195 = math.cos %194 : vector<8x512xf32>
    %cst_20 = arith.constant 5.000000e-01 : f32
    %196 = vector.broadcast %cst_20 : f32 to vector<8x512xf32>
    %197 = arith.mulf %177, %196 : vector<8x512xf32>
    %198 = math.sin %197 : vector<8x512xf32>
    %cst_21 = arith.constant 5.000000e-01 : f32
    %199 = vector.broadcast %cst_21 : f32 to vector<8x512xf32>
    %200 = arith.mulf %180, %199 : vector<8x512xf32>
    %201 = math.cos %200 : vector<8x512xf32>
    %cst_22 = arith.constant 5.000000e-01 : f32
    %202 = vector.broadcast %cst_22 : f32 to vector<8x512xf32>
    %203 = arith.mulf %180, %202 : vector<8x512xf32>
    %204 = math.sin %203 : vector<8x512xf32>
    %cst_23 = arith.constant 5.000000e-01 : f32
    %205 = vector.broadcast %cst_23 : f32 to vector<8x512xf32>
    %206 = arith.mulf %183, %205 : vector<8x512xf32>
    %207 = math.cos %206 : vector<8x512xf32>
    %cst_24 = arith.constant 5.000000e-01 : f32
    %208 = vector.broadcast %cst_24 : f32 to vector<8x512xf32>
    %209 = arith.mulf %183, %208 : vector<8x512xf32>
    %210 = math.sin %209 : vector<8x512xf32>
    %211 = arith.mulf %195, %201 : vector<8x512xf32>
    %212 = arith.mulf %211, %207 : vector<8x512xf32>
    %213 = arith.mulf %198, %204 : vector<8x512xf32>
    %214 = arith.mulf %213, %210 : vector<8x512xf32>
    %215 = arith.addf %212, %214 : vector<8x512xf32>
    %216 = arith.mulf %198, %201 : vector<8x512xf32>
    %217 = arith.mulf %216, %207 : vector<8x512xf32>
    %218 = arith.mulf %195, %204 : vector<8x512xf32>
    %219 = arith.mulf %218, %210 : vector<8x512xf32>
    %220 = arith.subf %217, %219 : vector<8x512xf32>
    %221 = arith.mulf %195, %204 : vector<8x512xf32>
    %222 = arith.mulf %221, %207 : vector<8x512xf32>
    %223 = arith.mulf %198, %201 : vector<8x512xf32>
    %224 = arith.mulf %223, %210 : vector<8x512xf32>
    %225 = arith.addf %222, %224 : vector<8x512xf32>
    %226 = arith.mulf %195, %201 : vector<8x512xf32>
    %227 = arith.mulf %226, %210 : vector<8x512xf32>
    %228 = arith.mulf %198, %204 : vector<8x512xf32>
    %229 = arith.mulf %228, %207 : vector<8x512xf32>
    %230 = arith.subf %227, %229 : vector<8x512xf32>
    %cst_25 = arith.constant 2.000000e+00 : f32
    %231 = vector.broadcast %cst_25 : f32 to vector<8x512xf32>
    %232 = arith.mulf %231, %225 : vector<8x512xf32>
    %233 = arith.mulf %232, %225 : vector<8x512xf32>
    %cst_26 = arith.constant 1.000000e+00 : f32
    %234 = vector.broadcast %cst_26 : f32 to vector<8x512xf32>
    %235 = arith.subf %234, %233 : vector<8x512xf32>
    %cst_27 = arith.constant 2.000000e+00 : f32
    %236 = vector.broadcast %cst_27 : f32 to vector<8x512xf32>
    %237 = arith.mulf %236, %230 : vector<8x512xf32>
    %238 = arith.mulf %237, %230 : vector<8x512xf32>
    %239 = arith.subf %235, %238 : vector<8x512xf32>
    %cst_28 = arith.constant 2.000000e+00 : f32
    %240 = vector.broadcast %cst_28 : f32 to vector<8x512xf32>
    %241 = arith.mulf %240, %220 : vector<8x512xf32>
    %242 = arith.mulf %241, %225 : vector<8x512xf32>
    %cst_29 = arith.constant 2.000000e+00 : f32
    %243 = vector.broadcast %cst_29 : f32 to vector<8x512xf32>
    %244 = arith.mulf %243, %230 : vector<8x512xf32>
    %245 = arith.mulf %244, %215 : vector<8x512xf32>
    %246 = arith.subf %242, %245 : vector<8x512xf32>
    %cst_30 = arith.constant 2.000000e+00 : f32
    %247 = vector.broadcast %cst_30 : f32 to vector<8x512xf32>
    %248 = arith.mulf %247, %220 : vector<8x512xf32>
    %249 = arith.mulf %248, %230 : vector<8x512xf32>
    %cst_31 = arith.constant 2.000000e+00 : f32
    %250 = vector.broadcast %cst_31 : f32 to vector<8x512xf32>
    %251 = arith.mulf %250, %225 : vector<8x512xf32>
    %252 = arith.mulf %251, %215 : vector<8x512xf32>
    %253 = arith.addf %249, %252 : vector<8x512xf32>
    %cst_32 = arith.constant 2.000000e+00 : f32
    %254 = vector.broadcast %cst_32 : f32 to vector<8x512xf32>
    %255 = arith.mulf %254, %220 : vector<8x512xf32>
    %256 = arith.mulf %255, %225 : vector<8x512xf32>
    %cst_33 = arith.constant 2.000000e+00 : f32
    %257 = vector.broadcast %cst_33 : f32 to vector<8x512xf32>
    %258 = arith.mulf %257, %230 : vector<8x512xf32>
    %259 = arith.mulf %258, %215 : vector<8x512xf32>
    %260 = arith.addf %256, %259 : vector<8x512xf32>
    %cst_34 = arith.constant 2.000000e+00 : f32
    %261 = vector.broadcast %cst_34 : f32 to vector<8x512xf32>
    %262 = arith.mulf %261, %220 : vector<8x512xf32>
    %263 = arith.mulf %262, %220 : vector<8x512xf32>
    %cst_35 = arith.constant 1.000000e+00 : f32
    %264 = vector.broadcast %cst_35 : f32 to vector<8x512xf32>
    %265 = arith.subf %264, %263 : vector<8x512xf32>
    %cst_36 = arith.constant 2.000000e+00 : f32
    %266 = vector.broadcast %cst_36 : f32 to vector<8x512xf32>
    %267 = arith.mulf %266, %230 : vector<8x512xf32>
    %268 = arith.mulf %267, %230 : vector<8x512xf32>
    %269 = arith.subf %265, %268 : vector<8x512xf32>
    %cst_37 = arith.constant 2.000000e+00 : f32
    %270 = vector.broadcast %cst_37 : f32 to vector<8x512xf32>
    %271 = arith.mulf %270, %225 : vector<8x512xf32>
    %272 = arith.mulf %271, %230 : vector<8x512xf32>
    %cst_38 = arith.constant 2.000000e+00 : f32
    %273 = vector.broadcast %cst_38 : f32 to vector<8x512xf32>
    %274 = arith.mulf %273, %220 : vector<8x512xf32>
    %275 = arith.mulf %274, %215 : vector<8x512xf32>
    %276 = arith.subf %272, %275 : vector<8x512xf32>
    %cst_39 = arith.constant 2.000000e+00 : f32
    %277 = vector.broadcast %cst_39 : f32 to vector<8x512xf32>
    %278 = arith.mulf %277, %220 : vector<8x512xf32>
    %279 = arith.mulf %278, %230 : vector<8x512xf32>
    %cst_40 = arith.constant 2.000000e+00 : f32
    %280 = vector.broadcast %cst_40 : f32 to vector<8x512xf32>
    %281 = arith.mulf %280, %225 : vector<8x512xf32>
    %282 = arith.mulf %281, %215 : vector<8x512xf32>
    %283 = arith.subf %279, %282 : vector<8x512xf32>
    %cst_41 = arith.constant 2.000000e+00 : f32
    %284 = vector.broadcast %cst_41 : f32 to vector<8x512xf32>
    %285 = arith.mulf %284, %225 : vector<8x512xf32>
    %286 = arith.mulf %285, %230 : vector<8x512xf32>
    %cst_42 = arith.constant 2.000000e+00 : f32
    %287 = vector.broadcast %cst_42 : f32 to vector<8x512xf32>
    %288 = arith.mulf %287, %220 : vector<8x512xf32>
    %289 = arith.mulf %288, %215 : vector<8x512xf32>
    %290 = arith.addf %286, %289 : vector<8x512xf32>
    %cst_43 = arith.constant 2.000000e+00 : f32
    %291 = vector.broadcast %cst_43 : f32 to vector<8x512xf32>
    %292 = arith.mulf %291, %220 : vector<8x512xf32>
    %293 = arith.mulf %292, %220 : vector<8x512xf32>
    %cst_44 = arith.constant 1.000000e+00 : f32
    %294 = vector.broadcast %cst_44 : f32 to vector<8x512xf32>
    %295 = arith.subf %294, %293 : vector<8x512xf32>
    %cst_45 = arith.constant 2.000000e+00 : f32
    %296 = vector.broadcast %cst_45 : f32 to vector<8x512xf32>
    %297 = arith.mulf %296, %225 : vector<8x512xf32>
    %298 = arith.mulf %297, %225 : vector<8x512xf32>
    %299 = arith.subf %295, %298 : vector<8x512xf32>
    %300 = arith.mulf %239, %154 : vector<8x512xf32>
    %301 = arith.mulf %260, %164 : vector<8x512xf32>
    %302 = arith.addf %300, %301 : vector<8x512xf32>
    %303 = arith.mulf %283, %174 : vector<8x512xf32>
    %304 = arith.addf %302, %303 : vector<8x512xf32>
    %305 = arith.addf %304, %186 : vector<8x512xf32>
    %c0_46 = arith.constant 0 : index
    %c0_47 = arith.constant 0 : index
    %c0_48 = arith.constant 0 : index
    %306 = vector.load %arg4[%c0_46, %c0_47, %c0_48] : memref<3x8x512xf32, #tpu.memory_space<vmem>>, vector<1x8x512xf32>
    %307 = vector.shape_cast %306 : vector<1x8x512xf32> to vector<8x512xf32>
    %308 = vector.shape_cast %305 : vector<8x512xf32> to vector<1x8x512xf32>
    tpu.vector_store %arg4[%c0_46, %c0_47, %c0_48], %308 {strides = array<i32>} : memref<3x8x512xf32, #tpu.memory_space<vmem>>, vector<1x8x512xf32>,
    %309 = arith.mulf %246, %154 : vector<8x512xf32>
    %310 = arith.mulf %269, %164 : vector<8x512xf32>
    %311 = arith.addf %309, %310 : vector<8x512xf32>
    %312 = arith.mulf %290, %174 : vector<8x512xf32>
    %313 = arith.addf %311, %312 : vector<8x512xf32>
    %314 = arith.addf %313, %189 : vector<8x512xf32>
    %c1_49 = arith.constant 1 : index
    %c0_50 = arith.constant 0 : index
    %c0_51 = arith.constant 0 : index
    %315 = vector.load %arg4[%c1_49, %c0_50, %c0_51] : memref<3x8x512xf32, #tpu.memory_space<vmem>>, vector<1x8x512xf32>
    %316 = vector.shape_cast %315 : vector<1x8x512xf32> to vector<8x512xf32>
    %317 = vector.shape_cast %314 : vector<8x512xf32> to vector<1x8x512xf32>
    tpu.vector_store %arg4[%c1_49, %c0_50, %c0_51], %317 {strides = array<i32>} : memref<3x8x512xf32, #tpu.memory_space<vmem>>, vector<1x8x512xf32>,
    %318 = arith.mulf %253, %154 : vector<8x512xf32>
    %319 = arith.mulf %276, %164 : vector<8x512xf32>
    %320 = arith.addf %318, %319 : vector<8x512xf32>
    %321 = arith.mulf %299, %174 : vector<8x512xf32>
    %322 = arith.addf %320, %321 : vector<8x512xf32>
    %323 = arith.addf %322, %192 : vector<8x512xf32>
    %c2_52 = arith.constant 2 : index
    %c0_53 = arith.constant 0 : index
    %c0_54 = arith.constant 0 : index
    %324 = vector.load %arg4[%c2_52, %c0_53, %c0_54] : memref<3x8x512xf32, #tpu.memory_space<vmem>>, vector<1x8x512xf32>
    %325 = vector.shape_cast %324 : vector<1x8x512xf32> to vector<8x512xf32>
    %326 = vector.shape_cast %323 : vector<8x512xf32> to vector<1x8x512xf32>
    tpu.vector_store %arg4[%c2_52, %c0_53, %c0_54], %326 {strides = array<i32>} : memref<3x8x512xf32, #tpu.memory_space<vmem>>, vector<1x8x512xf32>,
    return
  }
  func.func @transform_0(%arg0: i32) -> (i32, i32) {
    %c0_i32 = arith.constant 0 : i32
    %c0_i32_0 = arith.constant 0 : i32
    %c0_i32_1 = arith.constant 0 : i32
    return %c0_i32, %c0_i32_0 : i32, i32
  }
  func.func @transform_1(%arg0: i32) -> (i32, i32) {
    %c0_i32 = arith.constant 0 : i32
    %c0_i32_0 = arith.constant 0 : i32
    %c0_i32_1 = arith.constant 0 : i32
    return %c0_i32, %c0_i32_0 : i32, i32
  }
  func.func @transform_2(%arg0: i32) -> (i32, i32) {
    %c0_i32 = arith.constant 0 : i32
    %c0_i32_0 = arith.constant 0 : i32
    return %c0_i32, %arg0 : i32, i32
  }
  func.func @transform_3(%arg0: i32) -> (i32, i32, i32) {
    %c0_i32 = arith.constant 0 : i32
    %c0_i32_0 = arith.constant 0 : i32
    %c0_i32_1 = arith.constant 0 : i32
    return %c0_i32, %c0_i32_0, %arg0 : i32, i32, i32
  }
}

</mosaic_0001>

<bundles_post_ra>
// kernel: tpu_custom_call.1
= control target key start
LH: loop header
LB: loop body
LE: loop exit
PB: predicated region body
PF: predicated region fallthrough
CT: control target
= control target key end

     0   :  { %8 = vsyncpa [#allocation3], 0  ;;  %s9571_s0 = inlined_call_operand.vmem [shape: f32[8,3], index: 0, kind: input, shape index: {}]   ;;  %s9572_s1 = inlined_call_operand.vmem [shape: f32[8,2], index: 1, kind: input, shape index: {}]   ;;  %s9573_s2 = inlined_call_operand.hbm [shape: f32[8,1024], index: 2, kind: input, shape index: {}]   ;;  %s9574_s3 = inlined_call_operand.hbm [shape: f32[3,8,1024], index: 3, kind: output, shape index: {}]  }
   0x1   :  { %10 = vsyncpa [#allocation3 + $0x1], 0 }
   0x2   :  { %11 = vsyncpa [#allocation4], 0 }
   0x3   :  { %13 = vsyncpa [#allocation4 + $0x1], 0  ;;  %s5934_s12 = smov 0   ;;  %s5936_s13 = smov 0  }
   0x4   :  { %s5938_s14 = smov 0   ;;  %s5940_s15 = smov 0  }
   0x5 LB: > { %s5955_s16 = sadd.s32 4294967295, %s5896_s15   ;;  %s5372_s17 = sadd.s32 4294967294, %s5896_s15   ;;  %s5896_s15 = sphi %s5940_s15, %s9942_s15   ;;  %s5892_s14 = sphi %s5938_s14, %s9941_s14   ;;  %s5888_s13 = sphi %s5936_s13, %s9940_s13   ;;  %s5884_s12 = sphi %s5934_s12, %s9939_s12  }
   0x6   : > { %s5959_s18 = sadd.s32 1, %s5896_s15   ;;  %s68_s19 = sadd.s32 1, %s5892_s14 }
   0x7   : > { %s65_s20 = ssub.s32 %s5896_s15, %s5959_s18  ;;  %p75_p0 = scmp.ne.s32.totalorder %s5892_s14, %s5888_s13 }
   0x8   : > { %p66_p1 = scmp.eq.s32.totalorder %s65_s20, 0  ;;  %p76_p2 = scmp.eq.s32.totalorder %s5896_s15, 0 }
   0x9   : > { %p81_p3 = scmp.ne.s32.totalorder %s5888_s13, %s5884_s12  ;;  %p82_p4 = scmp.eq.s32.totalorder %s5955_s16, 0 }
   0xa   : > { %s5971_s21 = scalar_select %p66_p1, %s5892_s14, %s68_s19  }
   0xb   : > { %p5973_p5 = por %p76_p2, %p75_p0  ;;  %p5977_p6 = por %p82_p4, %p81_p3 }
   0xc   : > { %p105_p7 = scmp.eq.s32.totalorder %s5955_s16, 1  ;;  %p111_p8 = scmp.eq.s32.totalorder %s5372_s17, 1 }
   0xd   : > { %s9690_s23 = scalar_select %p5977_p6, 1, 0 }
   0xe   : > { %p5660_p10 = scmp.lt.s32.totalorder %s5896_s15, 2  ;;  %p5984_p11 = por %p105_p7, %p75_p0 }
   0xf   : > { %p5988_p12 = por %p111_p8, %p81_p3  ;;  %s137_s26 = sand.u32 1, %s5892_s14  }
  0x10   : > { %s9691_s24 = scalar_select %p5984_p11, 1, 0 }
  0x11   : > { %s9692_s25 = scalar_select %p5988_p12, 1, 0 }
  0x12   : > { %s5559_s27 = sshll.u32 %s5896_s15, 9  ;;  %s5375_s28 = sshll.u32 %s137_s26, 5 }
  0x13   : > { %s5997_s4 = scalar_lea.hbm %s9573_s2, %s5559_s27  ;;  %s141_s5 = scalar_lea.vmem [#allocation2], %s5375_s28 }
  0x14   : > { %s149_s6 = sshll.u32 %s141_s5, 4  ;;  %p6001_p13 = pnand %p5660_p10, %p5973_p5  ;;  %s6005_s6 = int_to_ptr.vmem [resolvable:$true] %s149_s6 }
  0x15   : > { %s138_s8 = scalar_lea.sflag [#allocation3], %s137_s26  ;;  %s5804_s9 = scalar_lea.hbm %s5997_s4, 512 }
  0x16   : > { %p5805_p2 = scmp.ne.s32.totalorder %s5997_s4, %s5804_s9  ;;  %p5806_p3 = pneg %p6001_p13 }
  0x17   : > { %s5809_s17 = scalar_lea.hbm %s9573_s2, 1024  ;;  %p5810_p5 = scmp.lt.s32.totalorder %s5997_s4, %s9573_s2 }
  0x18   : > { %p5807_p4 = pnand %p5806_p3, %p5805_p2  ;;  %p5811_p8 = scmp.lt.s32.totalorder %s5809_s17, %s5804_s9 }
  0x1a   : > { %p5808_p7 = pneg %p5807_p4  ;;  %p5812_p10 = por %p5811_p8, %p5810_p5 }
  0x1c   : > { %p5813_p9 = pnand %p5812_p10, %p5808_p7 }
  0x1e   : > { %5816 = shalt.err (!%p5813_p9)
}
  0x1f   : > { %s5817_s22 = scalar_lea.vmem %s6005_s6, 512  ;;  %s5898_s26 = smov [#allocation2]  }
  0x20   : > { %p5818_p0 = scmp.ne.s32.totalorder %s6005_s6, %s5817_s22  ;;  %s5822_s27 = sshll.u32 %s5898_s26, 4  ;;  %s5823_s27 = int_to_ptr.vmem [resolvable:$false] %s5822_s27 }
  0x21   : > { %s5824_s28 = scalar_lea.vmem %s5823_s27, 1024  ;;  %p5825_p4 = scmp.lt.s32.totalorder %s6005_s6, %s5823_s27 }
  0x22   : > { %p5820_p1 = pnand %p5818_p0, %p5806_p3  ;;  %p5826_p12 = scmp.lt.s32.totalorder %s5824_s28, %s5817_s22 }
  0x24   : > { %p5821_p2 = pneg %p5820_p1  ;;  %p5827_p11 = por %p5826_p12, %p5825_p4 }
  0x26   : > { %p5828_p6 = pnand %p5827_p11, %p5821_p2 }
  0x28   : > { %5831 = shalt.err (!%p5828_p6)
}
  0x29   : > { %5655 = dma.hbm_to_vmem [thread:$0]  (!%p6001_p13), %s5997_s4, 512, %s6005_s6, %s138_s8  }
  0x2a   : > { %p9694_p9 = scmp.lt.s32.totalorder %s5896_s15, 3  ;;  %p9695_p7 = scmp.ge.s32.totalorder %s5896_s15, 1 }
  0x2c   : > { %p155_p0 = pnand %p9695_p7, %p9694_p9 }
  0x2e   : > { %158 = sbr.rel (%p155_p0) target bundleno = 785 (0x311), region = 32 }
  0x33   : > { %s6032_s29 = sand.u32 1, %s5888_s13   ;;  %p9696_p6 = scmp.ne.s32.totalorder %s9690_s23, 0 }
  0x34   : > { %s5379_s30 = sshll.u32 %s6032_s29, 5  ;;  %s161_s5 = scalar_lea.sflag [#allocation3], %s6032_s29 }
  0x35   : > { %s6036_s9 = scalar_lea.vmem [#allocation2], %s5379_s30 }
  0x36   : > { %5875 = dma.done.wait (%p9696_p6), %s161_s5, 512  }
  0x37   : > { %5877 = vsyncadd (%p9696_p6), %s161_s5, 4294966784  ;;  %v213_v0 = vlaneseq  ;;  %v5899_v1 = vmov 0   ;;  %v5900_v2 = vmov 2   ;;  %v189_v7 = vld [vmem:[%s9571_s0] sm:$0xff]  ;;  %s5901_s6 = smov 127   ;;  %v5902_v17 = vmov 1  }
  0x38   : > { %5708 = vset.pattern.permute.xlu1 %v5899_v1  ;;  %5710 = vset.pattern.permute.xlu0 %v5900_v2  ;;  %v6057_v8 = vld [vmem:[%s6036_s9 + $0x6] ss:$8 sm:$0xf]  ;;  %v1091_v9 = vrot.slane %v189_v7, 1  ;;  %s5903_s7 = smov 126   ;;  %s5561_s20 = smul.u32 96, %s6032_s29 }
  0x39   : > { %v6042_v3 = vshrl.u32 %v213_v0, 7  ;;  %192 = vperm.xlu1 %5708, %v189_v7   ;;  %v203_v24 = vld [vmem:[%s9572_s1] sm:$0xff]  ;;  %v9590_v41 = vmov 683565275   ;;  %v9583_v43 = vmov 2475754826  }
  0x3a   : > { %1095 = vrot.lane.b32.xlu0 %v1091_v9, %s5901_s6  ;;  %5578 = vpush %v1091_v9  ;;  %v9579_v45 = vmov 2131351028   ;;  %v9588_v47 = vmov 2102212464   ;;  %v9586_v49 = vmov 920167782  }
  0x3b   : > { %9697 = vst [vmem:[#allocation8_spill] sm:$0xff] %v6042_v3  ;;  %v6045_v4 = vsub.s32 0, %v6042_v3  ;;  %v6048_v5 = vsub.s32 1, %v6042_v3  ;;  %v6051_v6 = vsub.s32 2, %v6042_v3  ;;  %v9581_v57 = vmov 1326507024  }
  0x3c   : > { %s9435_s22 = scalar_lea.vmem [#allocation5], %s5561_s20  ;;  %s5560_s26 = sshll.u32 %s5955_s16, 9 }
  0x3d   : > { %9698 = vst [vmem:[#allocation9_spill] sm:$0xff] %v6045_v4  ;;  %9699 = vst [vmem:[#allocation10_spill] sm:$0xff] %v6048_v5  ;;  %v6061_v10 = vrot.slane %v6057_v8, %v6045_v4  ;;  %v6065_v11 = vrot.slane %v6057_v8, %v6048_v5  ;;  %v6069_v12 = vrot.slane %v6057_v8, %v6051_v6  ;;  %5709 = vset.pattern.permute.xlu1 %v5902_v17  ;;  %s5299_s27 = sshll.u32 %s9435_s22, 4  ;;  %s9513_s30 = scalar_lea.hbm %s9574_s3, %s5560_s26  ;;  %s9518_s27 = int_to_ptr.vmem [resolvable:$true] %s5299_s27 }
  0x3e   : > { %9700 = vst [vmem:[#allocation11_spill] sm:$0xff] %v6051_v6  ;;  %196 = vperm.xlu1 %5709, %v189_v7   ;;  %1100 = vrot.lane.b32.xlu0 %v1091_v9, %s5903_s7  ;;  %s5286_s5 = scalar_lea.sflag [#allocation4], %s6032_s29  ;;  %p9936_p12 = scmp.ne.s32.totalorder %s9691_s24, 0 }
  0x3f   : > { %v233_v13 = vand.u32 2147483647, %v6061_v10  ;;  %v236_v14 = vand.u32 2139095040, %v6061_v10  ;;  %v336_v15 = vand.u32 2147483647, %v6065_v11  ;;  %v339_v16 = vand.u32 2139095040, %v6065_v11 }
  0x40   : > { %v442_v22 = vand.u32 2139095040, %v6069_v12  ;;  %s5910_s4 = smov [#allocation5]  }
  0x41   : > { %v237_v18 = vshrl.u32 %v236_v14, 23  ;;  %v240_v19 = vand.u32 8388607, %v233_v13  ;;  %v340_v20 = vshrl.u32 %v339_v16, 23  ;;  %v343_v21 = vand.u32 8388607, %v336_v15 }
  0x42   : > { %v443_v26 = vshrl.u32 %v442_v22, 23  ;;  %5711 = vset.pattern.permute.xlu1 %v5899_v1  ;;  %200 = vperm.xlu0 %5710, %v189_v7   ;;  %s5836_s23 = sshll.u32 %s5910_s4, 4  ;;  %s5837_s23 = int_to_ptr.vmem [resolvable:$false] %s5836_s23 }
  0x43   : > { %v5381_v23 = vadd.s32 4294967169, %v237_v18  ;;  %v5385_v25 = vadd.s32 4294967169, %v340_v20  ;;  %v241_v28 = vor.u32 8388608, %v240_v19  ;;  %v344_v29 = vor.u32 8388608, %v343_v21  ;;  %206 = vperm.xlu1 %5711, %v203_v24   ;;  %s5838_s6 = scalar_lea.vmem %s5837_s23, 3072  ;;  %p5839_p3 = scmp.lt.s32.totalorder %s9518_s27, %s5837_s23 }
  0x44   : > { %v5389_v31 = vadd.s32 4294967169, %v443_v26 }
  0x45   : > { %v243_v27 = vadd.s32 1, %v5381_v23  ;;  %v346_v30 = vadd.s32 1, %v5385_v25  ;;  %v6083_v36 = vshll.u32 %v241_v28, 8  ;;  %v6085_v38 = vshll.u32 %v344_v29, 8 }
  0x46   : > { %v6087_v39 = vadd.s32 1, %v5389_v31  ;;  %5713 = vset.pattern.permute.xlu0 %v5902_v17 }
  0x47   : > { %vm244_vm0 = vcmp.gt.s32.totalorder %v243_v27, 0  ;;  %vm347_vm1 = vcmp.gt.s32.totalorder %v346_v30, 0  ;;  %5712 = vset.pattern.permute.xlu1 %v5902_v17 }
  0x48   : > { %v245_v32 = vsel %vm244_vm0, %v243_v27, 0  ;;  %v348_v35 = vsel %vm347_vm1, %v346_v30, 0  ;;  %1215 = vperm.xlu1 %5712, %v203_v24   ;;  %vm450_vm6 = vcmp.gt.s32.totalorder %v6087_v39, 0 }
  0x49   : > { %v246_v33 = vshrl.u32 %v245_v32, 5  ;;  %v247_v34 = vand.u32 31, %v245_v32  ;;  %v350_v37 = vand.u32 31, %v348_v35  ;;  %v6094_v51 = vshrl.u32 %v348_v35, 5 }
  0x4b   : > { %v248_v40 = vsub.s32 32, %v247_v34  ;;  %v250_v42 = vshll.u32 %v9590_v41, %v247_v34  ;;  %v253_v44 = vshll.u32 %v9583_v43, %v247_v34  ;;  %v256_v46 = vshll.u32 %v9579_v45, %v247_v34 }
  0x4c   : > { %v259_v48 = vshll.u32 %v9588_v47, %v247_v34  ;;  %v262_v50 = vshll.u32 %v9586_v49, %v247_v34  ;;  %vm265_vm2 = vcmp.lt.s32.totalorder %v246_v33, 1  ;;  %vm266_vm3 = vcmp.lt.s32.totalorder %v246_v33, 2 }
  0x4d   : > { %v249_v52 = vshrl.u32 %v9590_v41, %v248_v40  ;;  %v251_v53 = vshrl.u32 %v9583_v43, %v248_v40  ;;  %v254_v54 = vshrl.u32 %v9579_v45, %v248_v40  ;;  %v257_v55 = vshrl.u32 %v9588_v47, %v248_v40 }
  0x4e   : > { %v260_v56 = vshrl.u32 %v9586_v49, %v248_v40  ;;  %v263_v58 = vshrl.u32 %v9581_v57, %v248_v40  ;;  %vm268_vm4 = vcmp.lt.s32.totalorder %v246_v33, 4  ;;  %v351_v62 = vsub.s32 32, %v350_v37 }
  0x4f   : > { %v252_v59 = vor.u32 %v251_v53, %v250_v42  ;;  %v255_v60 = vor.u32 %v254_v54, %v253_v44  ;;  %v258_v61 = vor.u32 %v257_v55, %v256_v46  ;;  %vm267_vm5 = vcmp.lt.s32.totalorder %v246_v33, 3 }
  0x50   : > { %v261_v63 = vor.u32 %v260_v56, %v259_v48  ;;  %v264_v0 = vor.u32 %v263_v58, %v262_v50  ;;  %v353_v1 = vshll.u32 %v9590_v41, %v350_v37  ;;  %v356_v19 = vshll.u32 %v9583_v43, %v350_v37 }
  0x51   : > { %v269_v2 = vsel %vm265_vm2, %v249_v52, %v252_v59  ;;  %v270_v7 = vsel %vm268_vm4, %v258_v61, 2102212464  ;;  %v273_v9 = vsel %vm265_vm2, %v252_v59, %v255_v60  ;;  %v277_v14 = vsel %vm265_vm2, %v255_v60, %v258_v61 }
  0x52   : > { %v271_v16 = vsel %vm267_vm5, %v255_v60, %v270_v7  ;;  %v274_v17 = vsel %vm268_vm4, %v261_v63, 920167782  ;;  %v278_v18 = vsel %vm268_vm4, %v264_v0, 1326507024  ;;  %v354_v22 = vshrl.u32 %v9583_v43, %v351_v62 }
  0x53   : > { %v275_v20 = vsel %vm267_vm5, %v258_v61, %v274_v17  ;;  %v279_v21 = vsel %vm267_vm5, %v261_v63, %v278_v18  ;;  %v272_v23 = vsel %vm266_vm3, %v269_v2, %v271_v16  ;;  %v357_v26 = vshrl.u32 %v9579_v45, %v351_v62 }
  0x54   : > { %v276_v24 = vsel %vm266_vm3, %v273_v9, %v275_v20  ;;  %v280_v25 = vsel %vm266_vm3, %v277_v14, %v279_v21  ;;  %v355_v31 = vor.u32 %v354_v22, %v353_v1  ;;  %v359_v34 = vshll.u32 %v9579_v45, %v350_v37 }
  0x55   : > { %v6114_v27 = vmul.u32.u64.low %v6083_v36, %v280_v25  ;;  %v6115_v28 = vmul.u32.u64.high %v6083_v36, %v280_v25, %v6114_v27  ;;  %v6118_v29 = vmul.u32.u64.low %v6083_v36, %v276_v24  ;;  %v6119_v30 = vmul.u32.u64.high %v6083_v36, %v276_v24, %v6118_v29 }
  0x56   : > { %v358_v32 = vor.u32 %v357_v26, %v356_v19  ;;  %v360_v35 = vshrl.u32 %v9588_v47, %v351_v62  ;;  %v362_v33 = vshll.u32 %v9588_v47, %v350_v37  ;;  %v363_v40 = vshrl.u32 %v9586_v49, %v351_v62 }
  0x57   : > { %v365_v42 = vshll.u32 %v9586_v49, %v350_v37  ;;  %v366_v44 = vshrl.u32 %v9581_v57, %v351_v62  ;;  %v288_v46 = vmul.u32 %v6083_v36, %v272_v23  ;;  %v352_v48 = vshrl.u32 %v9590_v41, %v351_v62 }
  0x58   : > { %v361_v50 = vor.u32 %v360_v35, %v359_v34  ;;  %vm368_vm7 = vcmp.lt.s32.totalorder %v6094_v51, 1  ;;  %vm290_vm8 = vc.u32 %v6115_v28, %v6118_v29  ;;  %v291_v52 = vadd.s32 1, %v6119_v30 }
  0x59   : > { %v364_v53 = vor.u32 %v363_v40, %v362_v33  ;;  %vm370_vm9 = vcmp.lt.s32.totalorder %v6094_v51, 3  ;;  %v367_v54 = vor.u32 %v366_v44, %v365_v42  ;;  %vm369_vm10 = vcmp.lt.s32.totalorder %v6094_v51, 2 }
  0x5a   : > { %vm371_vm11 = vcmp.lt.s32.totalorder %v6094_v51, 4  ;;  %v376_v37 = vsel %vm368_vm7, %v355_v31, %v358_v32  ;;  %v292_v36 = vsel %vm290_vm8, %v291_v52, %v6119_v30  ;;  %v380_v58 = vsel %vm368_vm7, %v358_v32, %v361_v50 }
  0x5b   : > { %v373_v55 = vsel %vm371_vm11, %v361_v50, 2102212464  ;;  %v377_v56 = vsel %vm371_vm11, %v364_v53, 920167782  ;;  %v293_v59 = vadd.s32 %v292_v36, %v288_v46  ;;  %v372_v60 = vsel %vm368_vm7, %v352_v48, %v355_v31 }
  0x5c   : > { %v378_v61 = vsel %vm370_vm9, %v361_v50, %v377_v56  ;;  %v381_v62 = vsel %vm371_vm11, %v367_v54, 1326507024  ;;  %v374_v63 = vsel %vm370_vm9, %v358_v32, %v373_v55  ;;  %v451_v2 = vsel %vm450_vm6, %v6087_v39, 0 }
  0x5d   : > { %v379_v0 = vsel %vm369_vm10, %v376_v37, %v378_v61  ;;  %v382_v1 = vsel %vm370_vm9, %v364_v53, %v381_v62  ;;  %v294_v7 = vadd.s32 536870912, %v293_v59  ;;  %v6151_v17 = vsub.s32 3, %v6042_v3 }
  0x5e   : > { %v383_v9 = vsel %vm369_vm10, %v380_v58, %v382_v1  ;;  %v6146_v14 = vmul.u32.u64.low %v6085_v38, %v379_v0  ;;  %v6147_v16 = vmul.u32.u64.high %v6085_v38, %v379_v0, %v6146_v14  ;;  %v439_v39 = vand.u32 2147483647, %v6069_v12 }
  0x5f   : > { %9701 = vst [vmem:[#allocation12_spill] sm:$0xff] %v6151_v17  ;;  %v6154_v18 = vmul.u32.u64.low %v6085_v38, %v383_v9  ;;  %v6155_v19 = vmul.u32.u64.high %v6085_v38, %v383_v9, %v6154_v18  ;;  %v6157_v20 = vshrl.u32 %v294_v7, 30  ;;  %v453_v21 = vand.u32 31, %v451_v2 }
  0x60   : > { %v375_v22 = vsel %vm369_vm10, %v372_v60, %v374_v63  ;;  %v394_v23 = vadd.s32 1, %v6147_v16  ;;  %v6165_v25 = vrot.slane %v6057_v8, %v6151_v17  ;;  %v446_v30 = vand.u32 8388607, %v439_v39 }
  0x61   : > { %v454_v24 = vsub.s32 32, %v453_v21  ;;  %vm393_vm12 = vc.u32 %v6155_v19, %v6146_v14  ;;  %v296_v26 = vshll.u32 %v6157_v20, 30  ;;  %v391_v27 = vmul.u32 %v6085_v38, %v375_v22 }
  0x62   : > { %v395_v51 = vsel %vm393_vm12, %v394_v23, %v6147_v16  ;;  %v452_v31 = vshrl.u32 %v451_v2, 5  ;;  %v456_v32 = vshll.u32 %v9590_v41, %v453_v21  ;;  %v459_v34 = vshll.u32 %v9583_v43, %v453_v21 }
  0x63   : > { %v457_v8 = vshrl.u32 %v9583_v43, %v454_v24  ;;  %v460_v35 = vshrl.u32 %v9579_v45, %v454_v24  ;;  %v462_v33 = vshll.u32 %v9579_v45, %v453_v21  ;;  %v463_v40 = vshrl.u32 %v9588_v47, %v454_v24 }
  0x64   : > { %v465_v38 = vshll.u32 %v9588_v47, %v453_v21  ;;  %v545_v42 = vand.u32 2139095040, %v6165_v25  ;;  %v6182_v44 = vsub.s32 %v293_v59, %v296_v26  ;;  %v447_v46 = vor.u32 8388608, %v446_v30 }
  0x65   : > { %v396_v48 = vadd.s32 %v395_v51, %v391_v27  ;;  %v466_v50 = vshrl.u32 %v9586_v49, %v454_v24  ;;  %v468_v52 = vshll.u32 %v9586_v49, %v453_v21  ;;  %vm474_vm13 = vcmp.lt.s32.totalorder %v452_v31, 4 }
  0x66   : > { %v458_v53 = vor.u32 %v457_v8, %v456_v32  ;;  %v461_v54 = vor.u32 %v460_v35, %v459_v34  ;;  %v464_v37 = vor.u32 %v463_v40, %v462_v33  ;;  %v469_v36 = vshrl.u32 %v9581_v57, %v454_v24 }
  0x67   : > { %v467_v55 = vor.u32 %v466_v50, %v465_v38  ;;  %vm471_vm14 = vcmp.lt.s32.totalorder %v452_v31, 1  ;;  %vm473_vm15 = vcmp.lt.s32.totalorder %v452_v31, 3  ;;  %v546_v56 = vshrl.u32 %v545_v42, 23 }
  0x68   : > { %v299_v58 = vsub.s32 0, %v6182_v44  ;;  %v470_v59 = vor.u32 %v469_v36, %v468_v52  ;;  %v397_v60 = vadd.s32 536870912, %v396_v48  ;;  %v455_v61 = vshrl.u32 %v9590_v41, %v454_v24 }
  0x69   : > { %vm472_vm0 = vcmp.lt.s32.totalorder %v452_v31, 2  ;;  %v480_v62 = vsel %vm474_vm13, %v467_v55, 920167782  ;;  %v476_v63 = vsel %vm474_vm13, %v464_v37, 2102212464  ;;  %v479_v0 = vsel %vm471_vm14, %v458_v53, %v461_v54 }
  0x6a   : > { %v481_v1 = vsel %vm473_vm15, %v464_v37, %v480_v62  ;;  %v484_v2 = vsel %vm474_vm13, %v470_v59, 1326507024  ;;  %v483_v7 = vsel %vm471_vm14, %v461_v54, %v464_v37  ;;  %v487_v9 = vshll.u32 %v447_v46, 8 }
  0x6b   : > { %v5393_v16 = vadd.s32 4294967169, %v546_v56  ;;  %v5382_v18 = vmin.u32 %v299_v58, %v6182_v44  ;;  %v485_v21 = vsel %vm473_vm15, %v467_v55, %v484_v2  ;;  %v6197_v22 = vshrl.u32 %v397_v60, 30  ;;  %s5579_s11 = spop %5578 }
  0x6c   : > { %v475_v23 = vsel %vm471_vm14, %v455_v61, %v458_v53  ;;  %v477_v24 = vsel %vm473_vm15, %v461_v54, %v476_v63  ;;  %v482_v26 = vsel %vm472_vm0, %v479_v0, %v481_v1  ;;  %v486_v27 = vsel %vm472_vm0, %v483_v7, %v485_v21 }
  0x6d   : > { %v6203_v30 = vmul.u32.u64.low %v487_v9, %v486_v27  ;;  %v6204_v51 = vmul.u32.u64.high %v487_v9, %v486_v27, %v6203_v30  ;;  %v552_v32 = vadd.s32 1, %v5393_v16  ;;  %v301_v34 = vclz %v5382_v18 }
  0x6e   : > { %v478_v8 = vsel %vm472_vm0, %v475_v23, %v477_v24  ;;  %v6207_v35 = vmul.u32.u64.low %v487_v9, %v482_v26  ;;  %v6208_v33 = vmul.u32.u64.high %v487_v9, %v482_v26, %v6207_v35  ;;  %v399_v40 = vshll.u32 %v6197_v22, 30 }
  0x6f   : > { %vm553_vm1 = vcmp.gt.s32.totalorder %v552_v32, 0  ;;  %v494_v42 = vmul.u32 %v487_v9, %v478_v8  ;;  %v5383_v46 = vadd.s32 4294967294, %v301_v34  ;;  %v542_v52 = vand.u32 2147483647, %v6165_v25 }
  0x70   : > { %v554_v38 = vsel %vm553_vm1, %v552_v32, 0  ;;  %vm496_vm2 = vc.u32 %v6204_v51, %v6207_v35  ;;  %v497_v50 = vadd.s32 1, %v6208_v33  ;;  %v6216_v31 = vsub.s32 %v396_v48, %v399_v40 }
  0x71   : > { %v556_v53 = vand.u32 31, %v554_v38  ;;  %vm5384_vm3 = vcmp.lt.s32.totalorder %v5383_v46, 0  ;;  %v549_v55 = vand.u32 8388607, %v542_v52  ;;  %v555_v63 = vshrl.u32 %v554_v38, 5 }
  0x72   : > { %v498_v54 = vsel %vm496_vm2, %v497_v50, %v6208_v33  ;;  %v402_v56 = vsub.s32 0, %v6216_v31  ;;  %v304_v2 = vsel %vm5384_vm3, 0, %v5383_v46  ;;  %vm235_vm11 = vcmp.lt.s32.totalorder %v6061_v10, 0 }
  0x73   : > { %v557_v37 = vsub.s32 32, %v556_v53  ;;  %v499_v36 = vadd.s32 %v498_v54, %v494_v42  ;;  %v559_v59 = vshll.u32 %v9590_v41, %v556_v53  ;;  %v562_v61 = vshll.u32 %v9583_v43, %v556_v53 }
  0x74   : > { %v565_v0 = vshll.u32 %v9579_v45, %v556_v53  ;;  %v568_v7 = vshll.u32 %v9588_v47, %v556_v53  ;;  %v5386_v16 = vmin.u32 %v402_v56, %v6216_v31  ;;  %v550_v18 = vor.u32 8388608, %v549_v55 }
  0x75   : > { %v500_v58 = vadd.s32 536870912, %v499_v36  ;;  %v560_v60 = vshrl.u32 %v9583_v43, %v557_v37  ;;  %v563_v48 = vshrl.u32 %v9579_v45, %v557_v37  ;;  %v566_v1 = vshrl.u32 %v9588_v47, %v557_v37 }
  0x76   : > { %v569_v9 = vshrl.u32 %v9586_v49, %v557_v37  ;;  %v571_v26 = vshll.u32 %v9586_v49, %v556_v53  ;;  %v572_v27 = vshrl.u32 %v9581_v57, %v557_v37  ;;  %v309_v30 = vsub.s32 4294967266, %v304_v2 }
  0x77   : > { %v6226_v62 = vshrl.u32 %v500_v58, 30  ;;  %v561_v21 = vor.u32 %v560_v60, %v559_v59  ;;  %v564_v23 = vor.u32 %v563_v48, %v562_v61  ;;  %v567_v34 = vor.u32 %v566_v1, %v565_v0 }
  0x78   : > { %v570_v24 = vor.u32 %v569_v9, %v568_v7  ;;  %vm574_vm4 = vcmp.lt.s32.totalorder %v555_v63, 1  ;;  %v558_v8 = vshrl.u32 %v9590_v41, %v557_v37  ;;  %vm577_vm5 = vcmp.lt.s32.totalorder %v555_v63, 4 }
  0x79   : > { %v502_v32 = vshll.u32 %v6226_v62, 30  ;;  %v404_v33 = vclz %v5386_v16  ;;  %v573_v40 = vor.u32 %v572_v27, %v571_v26  ;;  %vm576_vm6 = vcmp.lt.s32.totalorder %v555_v63, 3 }
  0x7a   : > { %v579_v38 = vsel %vm577_vm5, %v567_v34, 2102212464  ;;  %vm575_vm7 = vcmp.lt.s32.totalorder %v555_v63, 2  ;;  %v582_v42 = vsel %vm574_vm4, %v561_v21, %v564_v23  ;;  %v583_v46 = vsel %vm577_vm5, %v570_v24, 920167782 }
  0x7b   : > { %v590_v50 = vshll.u32 %v550_v18, 8  ;;  %v289_v53 = vadd.s32 %v6118_v29, %v6115_v28  ;;  %v305_v54 = vsub.s32 32, %v304_v2  ;;  %v310_v55 = vadd.s32 127, %v309_v30 }
  0x7c   : > { %v6242_v56 = vsub.s32 %v499_v36, %v502_v32  ;;  %v578_v37 = vsel %vm574_vm4, %v558_v8, %v561_v21  ;;  %v580_v58 = vsel %vm576_vm6, %v564_v23, %v579_v38  ;;  %v584_v59 = vsel %vm576_vm6, %v567_v34, %v583_v46 }
  0x7d   : > { %v586_v60 = vsel %vm574_vm4, %v564_v23, %v567_v34  ;;  %v585_v61 = vsel %vm575_vm7, %v582_v42, %v584_v59  ;;  %v587_v48 = vsel %vm577_vm5, %v573_v40, 1326507024  ;;  %v5387_v0 = vadd.s32 4294967294, %v404_v33 }
  0x7e   : > { %v588_v1 = vsel %vm576_vm6, %v570_v24, %v587_v48  ;;  %v6251_v28 = vmul.u32.u64.low %v590_v50, %v585_v61  ;;  %v6252_v29 = vmul.u32.u64.high %v590_v50, %v585_v61, %v6251_v28  ;;  %v306_v36 = vshll.u32 %v6182_v44, %v304_v2 }
  0x7f   : > { %v505_v7 = vsub.s32 0, %v6242_v56  ;;  %v581_v9 = vsel %vm575_vm7, %v578_v37, %v580_v58  ;;  %v589_v16 = vsel %vm575_vm7, %v586_v60, %v588_v1  ;;  %v307_v18 = vshrl.u32 %v289_v53, %v305_v54 }
  0x80   : > { %v311_v21 = vshll.u32 %v310_v55, 23  ;;  %v6259_v23 = vmul.u32.u64.low %v590_v50, %v589_v16  ;;  %v6260_v26 = vmul.u32.u64.high %v590_v50, %v589_v16, %v6259_v23  ;;  %vm5388_vm8 = vcmp.lt.s32.totalorder %v5387_v0, 0 }
  0x81   : > { %v597_v24 = vmul.u32 %v590_v50, %v581_v9  ;;  %v600_v27 = vadd.s32 1, %v6252_v29  ;;  %v5390_v30 = vmin.u32 %v505_v7, %v6242_v56  ;;  %v308_v32 = vor.u32 %v307_v18, %v306_v36  ;;  %v6270_v50 = vld [vmem:[%s6036_s9 + $0x7] ss:$8 sm:$0xf] }
  0x82   : > { %v312_v44 = vor.u32 4788187, %v311_v21  ;;  %vm599_vm9 = vc.u32 %v6260_v26, %v6251_v28  ;;  %v407_v2 = vsel %vm5388_vm8, 0, %v5387_v0  ;;  %v392_v53 = vadd.s32 %v6146_v14, %v6155_v19 }
  0x83   : > { %v601_v63 = vsel %vm599_vm9, %v600_v27, %v6252_v29  ;;  %v507_v8 = vclz %v5390_v30  ;;  %v315_v40 = vcvt.s32.f32 %v308_v32  ;;  %v412_v38 = vsub.s32 4294967266, %v407_v2 }
  0x84   : > { %v602_v34 = vadd.s32 %v601_v63, %v597_v24  ;;  %v313_v33 = vand.u32 2147483647, %v312_v44  ;;  %v408_v54 = vsub.s32 32, %v407_v2  ;;  %v6277_v60 = vrot.slane %v6270_v50, %v6045_v4 }
  0x85   : > { %v5391_v55 = vadd.s32 4294967294, %v507_v8  ;;  %v413_v58 = vadd.s32 127, %v412_v38  ;;  %v409_v48 = vshll.u32 %v6216_v31, %v407_v2  ;;  %vm6287_vm12 = vcmp.le.f32.partialorder %v233_v13, 0.7853982 }
  0x86   : > { %v603_v42 = vadd.s32 536870912, %v602_v34  ;;  %v316_v37 = vmul.f32 %v315_v40, %v313_v33  ;;  %9702 = vst [vmem:[#allocation13_spill] sm:$0xff] %v6277_v60  ;;  %v410_v0 = vshrl.u32 %v392_v53, %v408_v54  ;;  %v1245_v19 = vand.u32 2139095040, %v6277_v60 }
  0x87   : > { %vm5392_vm10 = vcmp.lt.s32.totalorder %v5391_v55, 0  ;;  %v414_v29 = vshll.u32 %v413_v58, 23  ;;  %v319_v31 = vsub.s32 4, %v6157_v20  ;;  %v495_v18 = vadd.s32 %v6207_v35, %v6204_v51 }
  0x88   : > { %v6267_v46 = vshrl.u32 %v603_v42, 30  ;;  %v317_v1 = vxor.u32 2147483648, %v316_v37  ;;  %v510_v7 = vsel %vm5392_vm10, 0, %v5391_v55  ;;  %v411_v16 = vor.u32 %v410_v0, %v409_v48 }
  0x89   : > { %v1246_v21 = vshrl.u32 %v1245_v19, 23  ;;  %v415_v24 = vor.u32 4788187, %v414_v29  ;;  %v511_v27 = vsub.s32 32, %v510_v7  ;;  %v515_v32 = vsub.s32 4294967266, %v510_v7 }
  0x8a   : > { %v605_v59 = vshll.u32 %v6267_v46, 30  ;;  %v318_v23 = vsel %vm235_vm11, %v317_v1, %v316_v37  ;;  %v320_v13 = vsel %vm235_vm11, %v319_v31, %v6157_v20  ;;  %v418_v33 = vcvt.s32.f32 %v411_v16 }
  0x8b   : > { %v5414_v44 = vadd.s32 4294967169, %v1246_v21  ;;  %v321_v2 = vsel %vm6287_vm12, %v6061_v10, %v318_v23  ;;  %v416_v8 = vand.u32 2147483647, %v415_v24  ;;  %v512_v40 = vshll.u32 %v6242_v56, %v510_v7 }
  0x8c   : > { %v6279_v61 = vsub.s32 %v602_v34, %v605_v59  ;;  %v513_v51 = vshrl.u32 %v495_v18, %v511_v27  ;;  %v516_v35 = vadd.s32 127, %v515_v32  ;;  %v6302_v38 = vrot.slane %v6270_v50, %v6048_v5 }
  0x8d   : > { %v1252_v34 = vadd.s32 1, %v5414_v44  ;;  %v9578_v42 = vand.u32 2147483647, %v6277_v60  ;;  %vm338_vm14 = vcmp.lt.s32.totalorder %v6065_v11, 0  ;;  %v6308_v20 = vrot.slane %v6270_v50, %v6051_v6 }
  0x8e   : > { %v608_v14 = vsub.s32 0, %v6279_v61  ;;  %v6312_v54 = vsel %vm6287_vm12, 0, %v320_v13  ;;  %5714 = vcosq.f32 %v321_v2  ;;  %v6314_v55 = vmul.f32 %v418_v33, %v416_v8 }
  0x8f   : > { %vm1253_vm13 = vcmp.gt.s32.totalorder %v1252_v34, 0  ;;  %9705 = vst [vmem:[#allocation14_spill] sm:$0xff] %v6308_v20  ;;  %5716 = vsinq.f32 %v321_v2  ;;  %v422_v37 = vsub.s32 4, %v6197_v22  ;;  %v514_v58 = vor.u32 %v513_v51, %v512_v40 }
  0x90   : > { %v5394_v9 = vmin.u32 %v608_v14, %v6279_v61  ;;  %v1254_v53 = vsel %vm1253_vm13, %v1252_v34, 0  ;;  %v517_v59 = vshll.u32 %v516_v35, 23  ;;  %v1249_v48 = vand.u32 8388607, %v9578_v42 }
  0x91   : > { %v1256_v56 = vand.u32 31, %v1254_v53  ;;  %v1348_v1 = vand.u32 2139095040, %v6302_v38  ;;  %v1255_v18 = vshrl.u32 %v1254_v53, 5  ;;  %v6333_v27 = vand.u32 3, %v6312_v54 }
  0x92   : > { %v610_v30 = vclz %v5394_v9  ;;  %v518_v32 = vor.u32 4788187, %v517_v59  ;;  %v1250_v44 = vor.u32 8388608, %v1249_v48  ;;  %v420_v13 = vxor.u32 2147483648, %v6314_v55 }
  0x93   : > { %v1257_v0 = vsub.s32 32, %v1256_v56  ;;  %v1259_v14 = vshll.u32 %v9590_v41, %v1256_v56  ;;  %v1262_v19 = vshll.u32 %v9583_v43, %v1256_v56  ;;  %v1265_v36 = vshll.u32 %v9579_v45, %v1256_v56 }
  0x94   : > { %v5395_v63 = vadd.s32 4294967294, %v610_v30  ;;  %v1268_v16 = vshll.u32 %v9588_v47, %v1256_v56  ;;  %v1271_v23 = vshll.u32 %v9586_v49, %v1256_v56  ;;  %v423_v30 = vsel %vm338_vm14, %v422_v37, %v6197_v22 }
  0x95   : > { %v1260_v7 = vshrl.u32 %v9583_v43, %v1257_v0  ;;  %v1263_v9 = vshrl.u32 %v9579_v45, %v1257_v0  ;;  %v1266_v31 = vshrl.u32 %v9588_v47, %v1257_v0  ;;  %v1269_v21 = vshrl.u32 %v9586_v49, %v1257_v0 }
  0x96   : > { %vm5396_vm15 = vcmp.lt.s32.totalorder %v5395_v63, 0  ;;  %v1272_v24 = vshrl.u32 %v9581_v57, %v1257_v0  ;;  %v598_v2 = vadd.s32 %v6251_v28, %v6260_v26  ;;  %v1349_v34 = vshrl.u32 %v1348_v1, 23 }
  0x97   : > { %v6320_v29 = vsel %vm5396_vm15, 0, %v5395_v63  ;;  %v1261_v8 = vor.u32 %v1260_v7, %v1259_v14  ;;  %v1264_v33 = vor.u32 %v1263_v9, %v1262_v19  ;;  %v1267_v40 = vor.u32 %v1266_v31, %v1265_v36 }
  0x98   : > { %v618_v63 = vsub.s32 4294967266, %v6320_v29  ;;  %v1270_v51 = vor.u32 %v1269_v21, %v1268_v16  ;;  %vm6344_vm0 = vcmp.le.f32.partialorder %v336_v15, 0.7853982  ;;  %v521_v22 = vcvt.s32.f32 %v514_v58 }
  0x99   : > { %v1258_v53 = vshrl.u32 %v9590_v41, %v1257_v0  ;;  %v1273_v56 = vor.u32 %v1272_v24, %v1271_v23  ;;  %vm1274_vm1 = vcmp.lt.s32.totalorder %v1255_v18, 1  ;;  %vm441_vm2 = vcmp.lt.s32.totalorder %v6069_v12, 0 }
  0x9a   : > { %v519_v28 = vand.u32 2147483647, %v518_v32  ;;  %vm1276_vm3 = vcmp.lt.s32.totalorder %v1255_v18, 3  ;;  %vm1277_vm4 = vcmp.lt.s32.totalorder %v1255_v18, 4  ;;  %v1290_v37 = vshll.u32 %v1250_v44, 8 }
  0x9b   : > { %v614_v59 = vsub.s32 32, %v6320_v29  ;;  %vm1275_vm5 = vcmp.lt.s32.totalorder %v1255_v18, 2  ;;  %v1279_v15 = vsel %vm1277_vm4, %v1267_v40, 2102212464  ;;  %v5418_v48 = vadd.s32 4294967169, %v1349_v34  ;;  %v6353_v19 = vpop.eup %5714 }
  0x9c   : > { %v619_v1 = vadd.s32 127, %v618_v63  ;;  %v1282_v58 = vsel %vm1274_vm1, %v1261_v8, %v1264_v33  ;;  %v1283_v14 = vsel %vm1277_vm4, %v1270_v51, 920167782  ;;  %v1286_v0 = vsel %vm1274_vm1, %v1264_v33, %v1267_v40  ;;  %v6358_v16 = vpop.eup %5716 }
  0x9d   : > { %v1278_v36 = vsel %vm1274_vm1, %v1258_v53, %v1261_v8  ;;  %v1280_v7 = vsel %vm1276_vm3, %v1264_v33, %v1279_v15  ;;  %v1284_v9 = vsel %vm1276_vm3, %v1267_v40, %v1283_v14  ;;  %v1287_v31 = vsel %vm1277_vm4, %v1273_v56, 1326507024 }
  0x9e   : > { %vm6362_vm6 = vcmp.le.f32.partialorder %v439_v39, 0.7853982  ;;  %v522_v23 = vmul.f32 %v521_v22, %v519_v28  ;;  %v738_v24 = vadd.s32 3, %v6312_v54  ;;  %v1285_v44 = vsel %vm1275_vm5, %v1282_v58, %v1284_v9 }
  0x9f   : > { %v1288_v63 = vsel %vm1276_vm3, %v1270_v51, %v1287_v31  ;;  %v525_v34 = vsub.s32 4, %v6226_v62  ;;  %v6371_v33 = vmul.u32.u64.low %v1290_v37, %v1285_v44  ;;  %v6372_v40 = vmul.u32.u64.high %v1290_v37, %v1285_v44, %v6371_v33 }
  0xa0   : > { %v1289_v8 = vsel %vm1275_vm5, %v1286_v0, %v1288_v63  ;;  %v1281_v39 = vsel %vm1275_vm5, %v1278_v36, %v1280_v7  ;;  %v1355_v54 = vadd.s32 1, %v5418_v48  ;;  %vm327_vm7 = vcmp.lt.s32.totalorder %v6333_v27, 2 }
  0xa1   : > { %v6376_v53 = vmul.u32.u64.low %v1290_v37, %v1289_v8  ;;  %v6377_v22 = vmul.u32.u64.high %v1290_v37, %v1289_v8, %v6376_v53  ;;  %v421_v51 = vsel %vm338_vm14, %v420_v13, %v6314_v55  ;;  %v615_v56 = vshll.u32 %v6279_v61, %v6320_v29 }
  0xa2   : > { %v616_v28 = vshrl.u32 %v598_v2, %v614_v59  ;;  %vm328_vm8 = vcmp.eq.s32.totalorder %v6333_v27, 0  ;;  %v425_v18 = vsel %vm6344_vm0, 0, %v423_v30  ;;  %v523_v15 = vxor.u32 2147483648, %v522_v23 }
  0xa3   : > { %vm1356_vm9 = vcmp.gt.s32.totalorder %v1355_v54, 0  ;;  %v526_v48 = vsel %vm441_vm2, %v525_v34, %v6226_v62  ;;  %v1297_v58 = vmul.u32 %v1290_v37, %v1281_v39  ;;  %v1300_v14 = vadd.s32 1, %v6372_v40 }
  0xa4   : > { %v1357_v55 = vsel %vm1356_vm9, %v1355_v54, 0  ;;  %v329_v13 = vxor.u32 2147483648, %v6358_v16  ;;  %v332_v61 = vxor.u32 2147483648, %v6353_v19  ;;  %v424_v29 = vsel %vm6344_vm0, %v6065_v11, %v421_v51 }
  0xa5   : > { %v6397_v2 = vand.u32 3, %v738_v24  ;;  %vm331_vm10 = vcmp.eq.s32.totalorder %v6333_v27, 2  ;;  %v617_v30 = vor.u32 %v616_v28, %v615_v56  ;;  %vm1299_vm11 = vc.u32 %v6377_v22, %v6371_v33 }
  0xa6   : > { %v6402_v62 = vand.u32 3, %v425_v18  ;;  %v524_v37 = vsel %vm441_vm2, %v523_v15, %v522_v23  ;;  %v1359_v0 = vand.u32 31, %v1357_v55  ;;  %5718 = vcosq.f32 %v424_v29 }
  0xa7   : > { %v528_v35 = vsel %vm6362_vm6, 0, %v526_v48  ;;  %v842_v36 = vadd.s32 3, %v425_v18  ;;  %v330_v31 = vsel %vm328_vm8, %v6353_v19, %v329_v13  ;;  %v333_v24 = vsel %vm331_vm10, %v332_v61, %v6358_v16 }
  0xa8   : > { %vm744_vm12 = vcmp.eq.s32.totalorder %v6397_v2, 2  ;;  %v9577_v23 = vand.u32 2147483647, %v6302_v38  ;;  %v624_v63 = vcvt.s32.f32 %v617_v30  ;;  %vm325_vm13 = vweird.f32 %v6061_v10 }
  0xa9   : > { %5720 = vsinq.f32 %v424_v29  ;;  %v6421_v8 = vand.u32 3, %v528_v35  ;;  %v6425_v39 = vsub.s32 32, %v1359_v0  ;;  %vm740_vm14 = vcmp.lt.s32.totalorder %v6397_v2, 2 }
  0xaa   : > { %vm741_vm15 = vcmp.eq.s32.totalorder %v6397_v2, 0  ;;  %v746_v53 = vsel %vm744_vm12, %v332_v61, %v6358_v16  ;;  %v6430_v21 = vand.u32 3, %v842_v36  ;;  %v334_v51 = vsel %vm327_vm7, %v330_v31, %v333_v24 }
  0xab   : > { %vm544_vm0 = vcmp.lt.s32.totalorder %v6165_v25, 0  ;;  %v1352_v56 = vand.u32 8388607, %v9577_v23  ;;  %v1451_v28 = vand.u32 2139095040, %v6308_v20  ;;  %v6443_v15 = vshrl.u32 %v1357_v55, 5 }
  0xac   : > { %v1096_v26 = vpop.permute.xlu0 %1095  ;;  %v1362_v48 = vshll.u32 %v9590_v41, %v1359_v0  ;;  %v1363_v27 = vshrl.u32 %v9583_v43, %v6425_v39  ;;  %v1368_v61 = vshll.u32 %v9579_v45, %v1359_v0  ;;  %v1369_v30 = vshrl.u32 %v9588_v47, %v6425_v39 }
  0xad   : > { %5580 = vpush %v1096_v26  ;;  %v620_v26 = vshll.u32 %v619_v1, 23  ;;  %v1301_v1 = vsel %vm1299_vm11, %v1300_v14, %v6372_v40  ;;  %v6423_v40 = vadd.s32 3, %v528_v35  ;;  %v1366_v14 = vshrl.u32 %v9579_v45, %v6425_v39 }
  0xae   : > { %v1302_v9 = vadd.s32 %v1301_v1, %v1297_v58  ;;  %v1365_v58 = vshll.u32 %v9583_v43, %v1359_v0  ;;  %v1371_v55 = vshll.u32 %v9588_v47, %v1359_v0  ;;  %vm6461_vm1 = vcmp.le.f32.partialorder %v542_v52, 0.7853982 }
  0xaf   : > { %v621_v59 = vor.u32 4788187, %v620_v26  ;;  %v1374_v36 = vshll.u32 %v9586_v49, %v1359_v0  ;;  %v743_v31 = vsel %vm741_vm15, %v6353_v19, %v329_v13  ;;  %v1353_v52 = vor.u32 8388608, %v1352_v56 }
  0xb0   : > { %v1101_v32 = vpop.permute.xlu0 %1100  ;;  %v1303_v34 = vadd.s32 536870912, %v1302_v9  ;;  %v1452_v23 = vshrl.u32 %v1451_v28, 23  ;;  %v1370_v0 = vor.u32 %v1369_v30, %v1368_v61  ;;  %vm1377_vm2 = vcmp.lt.s32.totalorder %v6443_v15, 1 }
  0xb1   : > { %5582 = vpush %v1101_v32  ;;  %v527_v32 = vsel %vm6362_vm6, %v6069_v12, %v524_v37  ;;  %v622_v44 = vand.u32 2147483647, %v621_v59  ;;  %v1372_v59 = vshrl.u32 %v9586_v49, %v6425_v39  ;;  %vm1380_vm3 = vcmp.lt.s32.totalorder %v6443_v15, 4 }
  0xb2   : > { %v6432_v54 = vshrl.u32 %v1303_v34, 30  ;;  %5722 = vcosq.f32 %v527_v32  ;;  %v1364_v34 = vor.u32 %v1363_v27, %v1362_v48  ;;  %v6485_v56 = vsel %vm325_vm13, nan, %v334_v51 }
  0xb3   : > { %v625_v26 = vmul.f32 %v624_v63, %v622_v44  ;;  %5724 = vsinq.f32 %v527_v32  ;;  %v1373_v45 = vor.u32 %v1372_v59, %v1371_v55  ;;  %v6478_v32 = vpop.eup %5718  ;;  %vm1379_vm4 = vcmp.lt.s32.totalorder %v6443_v15, 3 }
  0xb4   : > { %v6409_v7 = vpop.permute.xlu1 %192  ;;  %v1305_v16 = vshll.u32 %v6432_v54, 30  ;;  %v6491_v27 = vsel %vm740_vm14, %v743_v31, %v746_v53  ;;  %vm1378_vm5 = vcmp.lt.s32.totalorder %v6443_v15, 2  ;;  %v5422_v53 = vadd.s32 4294967169, %v1452_v23 }
  0xb5   : > { %v1061_v1 = vrot.slane %v6409_v7, 7  ;;  %v626_v44 = vxor.u32 2147483648, %v625_v26  ;;  %vm431_vm6 = vcmp.eq.s32.totalorder %v6402_v62, 0  ;;  %vm434_vm7 = vcmp.eq.s32.totalorder %v6402_v62, 2 }
  0xb6   : > { %v6452_v29 = vsub.s32 %v1302_v9, %v1305_v16  ;;  %v1375_v9 = vshrl.u32 %v9581_v57, %v6425_v39  ;;  %v1367_v16 = vor.u32 %v1366_v14, %v1365_v58  ;;  %v6496_v14 = vshll.u32 %v1353_v52, 8  ;;  %v6498_v61 = vpop.eup %5720 }
  0xb7   : > { %v1063_v57 = vsub.f32 %v6409_v7, %v1061_v1  ;;  %v627_v51 = vsel %vm544_vm0, %v626_v44, %v625_v26  ;;  %vm534_vm8 = vcmp.eq.s32.totalorder %v6421_v8, 0  ;;  %vm537_vm9 = vcmp.eq.s32.totalorder %v6421_v8, 2 }
  0xb8   : > { %v1308_v24 = vsub.s32 0, %v6452_v29  ;;  %v1376_v13 = vor.u32 %v1375_v9, %v1374_v36  ;;  %v1385_v58 = vsel %vm1377_vm2, %v1364_v34, %v1367_v16  ;;  %v1389_v2 = vsel %vm1377_vm2, %v1367_v16, %v1370_v0 }
  0xb9   : > { %v6440_v18 = vpop.permute.xlu1 %196  ;;  %v6509_v30 = vrot.slane %v1063_v57, %v6051_v6  ;;  %v1361_v9 = vshrl.u32 %v9590_v41, %v6425_v39  ;;  %v628_v44 = vsub.s32 4, %v6267_v46  ;;  %v6541_v39 = vand.u32 3, %v6423_v40 }
  0xba   : > { %v1068_v35 = vrot.slane %v6440_v18, 7  ;;  %v5415_v42 = vmin.u32 %v1308_v24, %v6452_v29  ;;  %v1390_v59 = vsel %vm1380_vm3, %v1376_v13, 1326507024  ;;  %vm845_vm10 = vcmp.eq.s32.totalorder %v6430_v21, 0 }
  0xbb   : > { %v1391_v57 = vsel %vm1379_vm4, %v1373_v45, %v1390_v59  ;;  %v1082_v13 = vmul.f32 %v6509_v30, %v6509_v30  ;;  %v1458_v40 = vadd.s32 1, %v5422_v53  ;;  %vm848_vm15 = vcmp.eq.s32.totalorder %v6430_v21, 2 }
  0xbc   : > { %v1070_v19 = vsub.f32 %v6440_v18, %v1068_v35  ;;  %v1310_v48 = vclz %v5415_v42  ;;  %v1386_v42 = vsel %vm1380_vm3, %v1373_v45, 920167782  ;;  %v1392_v31 = vsel %vm1378_vm5, %v1389_v2, %v1391_v57 }
  0xbd   : > { %v6474_v63 = vpop.permute.xlu0 %200  ;;  %v1387_v26 = vsel %vm1379_vm4, %v1370_v0, %v1386_v42  ;;  %v630_v45 = vsel %vm6461_vm1, %v6165_v25, %v627_v51  ;;  %v1381_v2 = vsel %vm1377_vm2, %v1361_v9, %v1364_v34  ;;  %v432_v59 = vxor.u32 2147483648, %v6498_v61 }
  0xbe   : > { %9712 = vst [vmem:[#allocation15_spill] sm:$0xff] %v6474_v63  ;;  %v1075_v28 = vrot.slane %v6474_v63, 7  ;;  %v6512_v55 = vrot.slane %v1070_v19, %v6051_v6  ;;  %v5416_v35 = vadd.s32 4294967294, %v1310_v48  ;;  %v1388_v36 = vsel %vm1378_vm5, %v1385_v58, %v1387_v26 }
  0xbf   : > { %v6518_v1 = vpop.eup %5722  ;;  %v6530_v24 = vmul.u32.u64.low %v6496_v14, %v1388_v36  ;;  %v6531_v52 = vmul.u32.u64.high %v6496_v14, %v1388_v36, %v6530_v24  ;;  %v1382_v19 = vsel %vm1380_vm3, %v1370_v0, 2102212464  ;;  %v435_v0 = vxor.u32 2147483648, %v6478_v32 }
  0xc0   : > { %v1077_v23 = vsub.f32 %v6474_v63, %v1075_v28  ;;  %v1083_v28 = vmul.f32 %v6512_v55, %v6512_v55  ;;  %v6550_v48 = vmul.u32.u64.low %v6496_v14, %v1392_v31  ;;  %v6551_v58 = vmul.u32.u64.high %v6496_v14, %v1392_v31, %v6550_v48  ;;  %v5725_v42 = vpop.eup %5724 }
  0xc1   : > { %vm5417_vm11 = vcmp.lt.s32.totalorder %v5416_v35, 0  ;;  %v1383_v26 = vsel %vm1379_vm4, %v1367_v16, %v1382_v19  ;;  %vm533_vm3 = vcmp.lt.s32.totalorder %v6421_v8, 2  ;;  %v629_v53 = vsel %vm544_vm0, %v628_v44, %v6267_v46 }
  0xc2   : > { %v6555_v51 = vrot.slane %v1077_v23, %v6051_v6  ;;  %5726 = vcosq.f32 %v630_v45  ;;  %vm949_vm14 = vcmp.eq.s32.totalorder %v6541_v39, 0  ;;  %v1084_v23 = vadd.f32 %v1083_v28, %v1082_v13 }
  0xc3   : > { %5728 = vsinq.f32 %v630_v45  ;;  %v6573_v34 = vsel %vm5417_vm11, 0, %v5416_v35  ;;  %v9585_v16 = vand.u32 2147483647, %v6308_v20  ;;  %vm428_vm2 = vweird.f32 %v6065_v11 }
  0xc4   : > { %v1085_v36 = vmul.f32 %v6555_v51, %v6555_v51  ;;  %v1384_v46 = vsel %vm1378_vm5, %v1381_v2, %v1383_v26  ;;  %v1403_v57 = vadd.s32 1, %v6531_v52  ;;  %vm1459_vm0 = vcmp.gt.s32.totalorder %v1458_v40, 0 }
  0xc5   : > { %vm531_vm4 = vweird.f32 %v6069_v12  ;;  %v535_v9 = vxor.u32 2147483648, %v5725_v42  ;;  %v538_v31 = vxor.u32 2147483648, %v6518_v1  ;;  %vm952_vm11 = vcmp.eq.s32.totalorder %v6541_v39, 2 }
  0xc6   : > { %vm1402_vm12 = vc.u32 %v6551_v58, %v6530_v24  ;;  %v433_v35 = vsel %vm431_vm6, %v6478_v32, %v432_v59  ;;  %v436_v15 = vsel %vm434_vm7, %v435_v0, %v6498_v61  ;;  %v850_v44 = vsel %vm848_vm15, %v435_v0, %v6498_v61 }
  0xc7   : > { %v1318_v45 = vsub.s32 4294967266, %v6573_v34  ;;  %v631_v19 = vsel %vm6461_vm1, 0, %v629_v53  ;;  %v847_v13 = vsel %vm845_vm10, %v6478_v32, %v432_v59  ;;  %v1400_v28 = vmul.u32 %v6496_v14, %v1384_v46 }
  0xc8   : > { %v1460_v48 = vsel %vm1459_vm0, %v1458_v40, 0  ;;  %v1050_v2 = vadd.s32 3, %v631_v19  ;;  %v1086_v26 = vadd.f32 %v1085_v36, %v1084_v23  ;;  %v1404_v43 = vsel %vm1402_vm12, %v1403_v57, %v6531_v52 }
  0xc9   : > { %v1455_v61 = vand.u32 8388607, %v9585_v16  ;;  %v536_v37 = vsel %vm534_vm8, %v6518_v1, %v535_v9  ;;  %v539_v0 = vsel %vm537_vm9, %v538_v31, %v5725_v42  ;;  %v951_v32 = vsel %vm949_vm14, %v6518_v1, %v535_v9 }
  0xca   : > { %v954_v14 = vsel %vm952_vm11, %v538_v31, %v5725_v42  ;;  %v1298_v52 = vadd.s32 %v6371_v33, %v6377_v22  ;;  %v1314_v40 = vsub.s32 32, %v6573_v34  ;;  %v1319_v59 = vadd.s32 127, %v1318_v45 }
  0xcb   : > { %v1462_v53 = vand.u32 31, %v1460_v48  ;;  %v6619_v23 = vand.u32 3, %v631_v19  ;;  %v6624_v36 = vsel %vm325_vm13, nan, %v6491_v27  ;;  %v6626_v46 = vstv %s5579_s11 }
  0xcc   : > { %v6628_v1 = vadd.s32 %v1404_v43, %v1400_v28  ;;  %vm9713_vm1 = vcmp.lt.s32.totalorder %v6402_v62, 2  ;;  %vm9714_vm5 = vcmp.lt.s32.totalorder %v6430_v21, 2  ;;  %v6634_v22 = vand.u32 3, %v1050_v2 }
  0xcd   : > { %v437_v42 = vsel %vm9713_vm1, %v433_v35, %v436_v15  ;;  %v851_v33 = vsel %vm9714_vm5, %v847_v13, %v850_v44  ;;  %5730 = vrsqrt.f32 %v1086_v26  ;;  %v540_v57 = vsel %vm533_vm3, %v536_v37, %v539_v0 }
  0xce   : > { %vm9715_vm6 = vcmp.lt.s32.totalorder %v6541_v39, 2  ;;  %v6642_v27 = vrot.slane %v6270_v50, %v6151_v17  ;;  %v1456_v43 = vor.u32 8388608, %v1455_v61  ;;  %v1315_v62 = vshll.u32 %v6452_v29, %v6573_v34 }
  0xcf   : > { %v955_v10 = vsel %vm9715_vm6, %v951_v32, %v954_v14  ;;  %v1316_v9 = vshrl.u32 %v1298_v52, %v1314_v40  ;;  %v1320_v21 = vshll.u32 %v1319_v59, 23  ;;  %v6646_v31 = vsub.s32 32, %v1462_v53  ;;  %v5727_v35 = vpop.eup %5726 }
  0xd0   : > { %9716 = vst [vmem:[#allocation16_spill] sm:$0xff] %v6642_v27  ;;  %v6650_v8 = vsel %vm428_vm2, nan, %v437_v42  ;;  %vm637_vm13 = vcmp.eq.s32.totalorder %v6619_v23, 0  ;;  %v6655_v39 = vsel %vm428_vm2, nan, %v851_v33  ;;  %v1406_v50 = vadd.s32 536870912, %v6628_v1  ;;  %v5729_v15 = vpop.eup %5728 }
  0xd1   : > { %v6660_v29 = vsel %vm531_vm4, nan, %v540_v57  ;;  %vm640_vm7 = vcmp.eq.s32.totalorder %v6619_v23, 2  ;;  %vm1053_vm8 = vcmp.eq.s32.totalorder %v6634_v22, 0  ;;  %vm1056_vm9 = vcmp.eq.s32.totalorder %v6634_v22, 2 }
  0xd2   : > { %vm636_vm10 = vcmp.lt.s32.totalorder %v6619_v23, 2  ;;  %v6668_v11 = vsel %vm531_vm4, nan, %v955_v10  ;;  %v6672_v34 = vsub.f32 %v6409_v7, %v6626_v46  ;;  %v6674_v44 = vshll.u32 %v1456_v43, 8 }
  0xd3   : > { %v1317_v19 = vor.u32 %v1316_v9, %v1315_v62  ;;  %v1321_v13 = vor.u32 4788187, %v1320_v21  ;;  %v1474_v28 = vshll.u32 %v9588_v47, %v1462_v53  ;;  %v1475_v2 = vshrl.u32 %v9586_v49, %v6646_v31 }
  0xd4   : > { %v638_v26 = vxor.u32 2147483648, %v5729_v15  ;;  %v641_v61 = vxor.u32 2147483648, %v5727_v35  ;;  %vm1244_vm12 = vcmp.lt.s32.totalorder %v6277_v60, 0  ;;  %v6681_v12 = vshrl.u32 %v1406_v50, 30 }
  0xd5   : > { %v6683_v37 = vshrl.u32 %v1460_v48, 5  ;;  %vm1052_vm14 = vcmp.lt.s32.totalorder %v6634_v22, 2  ;;  %v1465_v0 = vshll.u32 %v9590_v41, %v1462_v53  ;;  %v9717_v32 = vmov 2475754826  }
  0xd6   : > { %v1466_v14 = vshrl.u32 %v9717_v32, %v6646_v31  ;;  %v1468_v52 = vshll.u32 %v9717_v32, %v1462_v53  ;;  %v9718_v40 = vmov 2131351028   ;;  %v1472_v33 = vshrl.u32 %v9588_v47, %v6646_v31 }
  0xd7   : > { %v1471_v59 = vshll.u32 %v9718_v40, %v1462_v53  ;;  %v1469_v42 = vshrl.u32 %v9718_v40, %v6646_v31  ;;  %v1477_v48 = vshll.u32 %v9586_v49, %v1462_v53  ;;  %v9719_v57 = vmov 1326507024  }
  0xd8   : > { %v1478_v10 = vshrl.u32 %v9719_v57, %v6646_v31  ;;  %vm634_vm15 = vweird.f32 %v6165_v25  ;;  %v6701_v43 = vmul.f32 %v6672_v34, %v6485_v56  ;;  %v1322_v62 = vand.u32 2147483647, %v1321_v13 }
  0xd9   : > { %v1324_v9 = vcvt.s32.f32 %v1317_v19  ;;  %v1476_v21 = vor.u32 %v1475_v2, %v1474_v28  ;;  %v6705_v50 = vmul.f32 %v6672_v34, %v6650_v8  ;;  %v6709_v53 = vmul.f32 %v6672_v34, %v6660_v29 }
  0xda   : > { %v1408_v16 = vshll.u32 %v6681_v12, 30  ;;  %vm1483_vm3 = vcmp.lt.s32.totalorder %v6683_v37, 4  ;;  %v639_v49 = vsel %vm637_vm13, %v5727_v35, %v638_v26  ;;  %v642_v13 = vsel %vm640_vm7, %v641_v61, %v5729_v15  ;;  %v5731_v45 = vpop.eup %5730 }
  0xdb   : > { %v9720_v19 = vand.u32 2147483647, %v6277_v60  ;;  %v1328_v2 = vsub.s32 4, %v6432_v54  ;;  %v1467_v47 = vor.u32 %v1466_v14, %v1465_v0  ;;  %v1470_v17 = vor.u32 %v1469_v42, %v1468_v52 }
  0xdc   : > { %v1473_v6 = vor.u32 %v1472_v33, %v1471_v59  ;;  %v1479_v5 = vor.u32 %v1478_v10, %v1477_v48  ;;  %v1325_v4 = vmul.f32 %v1324_v9, %v1322_v62  ;;  %vm1480_vm0 = vcmp.lt.s32.totalorder %v6683_v37, 1 }
  0xdd   : > { %vm6719_vm2 = vcmp.le.f32.partialorder %v9720_v19, 0.7853982  ;;  %vm1482_vm4 = vcmp.lt.s32.totalorder %v6683_v37, 3  ;;  %v1489_v19 = vsel %vm1483_vm3, %v1476_v21, 920167782  ;;  %v1055_v20 = vsel %vm1053_vm8, %v5727_v35, %v638_v26 }
  0xde   : > { %s5581_s17 = spop %5580  ;;  %v1058_v0 = vsel %vm1056_vm9, %v641_v61, %v5729_v15  ;;  %v6737_v52 = vsub.s32 %v6628_v1, %v1408_v16  ;;  %v643_v59 = vsel %vm636_vm10, %v639_v49, %v642_v13  ;;  %v6742_v42 = vmul.f32 %v5731_v45, %v6509_v30 }
  0xdf   : > { %v6724_v41 = vstv %s5581_s17  ;;  %v1329_v35 = vsel %vm1244_vm12, %v1328_v2, %v6432_v54  ;;  %vm1347_vm11 = vcmp.lt.s32.totalorder %v6302_v38, 0  ;;  %vm1481_vm1 = vcmp.lt.s32.totalorder %v6683_v37, 2 }
  0xe0   : > { %v1106_v33 = vsub.f32 %v6440_v18, %v6724_v41  ;;  %v1488_v16 = vsel %vm1480_vm0, %v1467_v47, %v1470_v17  ;;  %v1490_v49 = vsel %vm1482_vm4, %v1473_v6, %v1489_v19  ;;  %v1493_v30 = vsel %vm1483_vm3, %v1479_v5, 1326507024 }
  0xe1   : > { %v6758_v23 = vmul.f32 %v5731_v45, %v6512_v55  ;;  %v1326_v54 = vxor.u32 2147483648, %v1325_v4  ;;  %v9723_v15 = vmov 683565275   ;;  %v1059_v61 = vsel %vm1052_vm14, %v1055_v20, %v1058_v0 }
  0xe2   : > { %s5583_s19 = spop %5582  ;;  %v1464_v26 = vshrl.u32 %v9723_v15, %v6646_v31  ;;  %v6767_v48 = vmul.f32 %v5731_v45, %v6555_v51  ;;  %v9724_v10 = vand.u32 2147483647, %v6302_v38  ;;  %v9725_v5 = vmov 0 }
  0xe3   : > { %v6734_v14 = vstv %s5583_s19  ;;  %v1411_v55 = vsub.s32 0, %v6737_v52  ;;  %v1485_v62 = vsel %vm1483_vm3, %v1473_v6, 2102212464  ;;  %v1109_v9 = vmul.f32 %v1106_v33, %v6758_v23 }
  0xe4   : > { %v1107_v1 = vsub.f32 %v6474_v63, %v6734_v14  ;;  %vm6771_vm5 = vcmp.le.f32.partialorder %v9724_v10, 0.7853982  ;;  %v1491_v22 = vsel %vm1481_vm1, %v1488_v16, %v1490_v49  ;;  %v1492_v20 = vsel %vm1480_vm0, %v1470_v17, %v1473_v6 }
  0xe5   : > { %v9726_v5 = vsel %vm6771_vm5, 4294967295, %v9725_v5  ;;  %v1494_v51 = vsel %vm1482_vm4, %v1476_v21, %v1493_v30  ;;  %v644_v31 = vsel %vm634_vm15, nan, %v643_v59  ;;  %v1108_v45 = vmul.f32 %v6672_v34, %v6742_v42 }
  0xe6   : > { %9727 = vst [vmem:[#allocation17_spill] sm:$0xff] %v9726_v5  ;;  %v6791_v13 = vsel %vm6719_vm2, 0, %v1329_v35  ;;  %v1431_v2 = vsub.s32 4, %v6681_v12  ;;  %v1111_v19 = vmul.f32 %v1107_v1, %v6767_v48  ;;  %v1327_v6 = vsel %vm1244_vm12, %v1326_v54, %v1325_v4 }
  0xe7   : > { %9728 = vst [vmem:[#allocation18_spill] sm:$0xff] %v6791_v13  ;;  %v1484_v21 = vsel %vm1480_vm0, %v1464_v26, %v1467_v47  ;;  %v1486_v0 = vsel %vm1482_vm4, %v1470_v17, %v1485_v62  ;;  %v6803_v59 = vsel %vm634_vm15, nan, %v1059_v61  ;;  %v1495_v35 = vsel %vm1481_vm1, %v1492_v20, %v1494_v51 }
  0xe8   : > { %v6808_v16 = vmul.u32.u64.low %v6674_v44, %v1491_v22  ;;  %v6809_v49 = vmul.u32.u64.high %v6674_v44, %v1491_v22, %v6808_v16  ;;  %v1110_v30 = vadd.f32 %v1109_v9, %v1108_v45  ;;  %v6813_v4 = vmul.f32 %v6672_v34, %v644_v31 }
  0xe9   : > { %v6816_v47 = vand.u32 3, %v6791_v13  ;;  %v5419_v17 = vmin.u32 %v1411_v55, %v6737_v52  ;;  %v1187_v25 = vmul.f32 %v1106_v33, %v6742_v42  ;;  %v1330_v54 = vsel %vm6719_vm2, %v6277_v60, %v1327_v6 }
  0xea   : > { %v1432_v26 = vsel %vm1347_vm11, %v1431_v2, %v6681_v12  ;;  %v1487_v61 = vsel %vm1481_vm1, %v1484_v21, %v1486_v0  ;;  %v1112_v10 = vadd.f32 %v1111_v19, %v1110_v30  ;;  %v1125_v62 = vmul.f32 %v1107_v1, %v6758_v23 }
  0xeb   : > { %9729 = vst [vmem:[#allocation19_spill] sm:$0xff] %v6816_v47  ;;  %v6830_v9 = vmul.u32.u64.low %v6674_v44, %v1495_v35  ;;  %v6831_v22 = vmul.u32.u64.high %v6674_v44, %v1495_v35, %v6830_v9  ;;  %v1156_v55 = vmul.f32 %v6672_v34, %v6767_v48  ;;  %v1188_v28 = vmul.f32 %v6672_v34, %v6758_v23 }
  0xec   : > { %v6839_v20 = vadd.s32 %v6530_v24, %v6551_v58  ;;  %v1554_v12 = vand.u32 2139095040, %v6642_v27  ;;  %v1126_v37 = vmul.f32 %v1106_v33, %v6767_v48  ;;  %5732 = vcosq.f32 %v1330_v54 }
  0xed   : > { %v1413_v51 = vclz %v5419_v17  ;;  %v6845_v45 = vsel %vm6771_vm5, 0, %v1432_v26  ;;  %v6848_v2 = vmul.f32 %v1106_v33, %v6485_v56  ;;  %v1189_v19 = vsub.f32 %v1187_v25, %v1188_v28 }
  0xee   : > { %9730 = vst [vmem:[#allocation20_spill] sm:$0xff] %v6845_v45  ;;  %5734 = vsinq.f32 %v1330_v54  ;;  %v1503_v34 = vmul.u32 %v6674_v44, %v1487_v61  ;;  %v1113_v24 = vmul.f32 %v1112_v10, %v6485_v56  ;;  %v1127_v58 = vsub.f32 %v1125_v62, %v1126_v37 }
  0xef   : > { %v1153_v6 = vmul.f32 %v1106_v33, %v6650_v8  ;;  %v1157_v21 = vmul.f32 %v1107_v1, %v6742_v42  ;;  %v1114_v0 = vmul.f32 %v1112_v10, %v6650_v8  ;;  %v6856_v35 = vmul.f32 %v1106_v33, %v6660_v29 }
  0xf0   : > { %v1155_v30 = vmul.f32 %v1106_v33, %v644_v31  ;;  %v1506_v17 = vadd.s32 1, %v6809_v49  ;;  %v1115_v25 = vmul.f32 %v1112_v10, %v6660_v29  ;;  %v1116_v54 = vmul.f32 %v1112_v10, %v644_v31 }
  0xf1   : > { %v1183_v44 = vmul.f32 %v1107_v1, %v6485_v56  ;;  %v5420_v26 = vadd.s32 4294967294, %v1413_v51  ;;  %v6862_v61 = vmul.f32 %v1107_v1, %v6650_v8  ;;  %v6865_v62 = vmul.f32 %v1107_v1, %v6660_v29 }
  0xf2   : > { %v6867_v9 = vmul.f32 %v1107_v1, %v644_v31  ;;  %v1190_v28 = vmul.f32 %v1189_v19, %v6624_v36  ;;  %v6870_v37 = vsub.f32 %v1112_v10, %v1113_v24  ;;  %v1128_v33 = vmul.f32 %v1127_v58, %v6624_v36 }
  0xf3   : > { %v1158_v45 = vsub.f32 %v1156_v55, %v1157_v21  ;;  %vm1505_vm6 = vc.u32 %v6831_v22, %v6808_v16  ;;  %v6875_v56 = vsub.f32 %v1112_v10, %v1114_v0  ;;  %v1129_v8 = vmul.f32 %v1127_v58, %v6655_v39 }
  0xf4   : > { %v6879_v51 = vmul.f32 %v1189_v19, %v6655_v39  ;;  %v6882_v29 = vmul.f32 %v1189_v19, %v6668_v11  ;;  %v6884_v1 = vsub.f32 %v1112_v10, %v1115_v25  ;;  %v6886_v31 = vsub.f32 %v1112_v10, %v1116_v54 }
  0xf5   : > { %v1130_v24 = vmul.f32 %v1127_v58, %v6668_v11  ;;  %vm5421_vm13 = vcmp.lt.s32.totalorder %v5420_v26, 0  ;;  %v1131_v55 = vmul.f32 %v1127_v58, %v6803_v59  ;;  %v6891_v21 = vmul.f32 %v1189_v19, %v6803_v59 }
  0xf6   : > { %v1507_v0 = vsel %vm1505_vm6, %v1506_v17, %v6809_v49  ;;  %v1555_v60 = vshrl.u32 %v1554_v12, 23  ;;  %v1132_v13 = vadd.f32 %v1128_v33, %v6701_v43  ;;  %v1136_v47 = vmul.f32 %v6870_v37, %v6742_v42 }
  0xf7   : > { %v6897_v25 = vadd.f32 %v1190_v28, %v1183_v44  ;;  %v1508_v10 = vadd.s32 %v1507_v0, %v1503_v34  ;;  %v1133_v54 = vadd.f32 %v1129_v8, %v6705_v50  ;;  %v1137_v3 = vmul.f32 %v6875_v56, %v6742_v42 }
  0xf8   : > { %v1416_v58 = vsel %vm5421_vm13, 0, %v5420_v26  ;;  %v5426_v5 = vadd.s32 4294967169, %v1555_v60  ;;  %v1134_v19 = vadd.f32 %v1130_v24, %v6709_v53  ;;  %v1138_v49 = vmul.f32 %v6884_v1, %v6742_v42 }
  0xf9   : > { %v1139_v43 = vmul.f32 %v6886_v31, %v6742_v42  ;;  %v1509_v12 = vadd.s32 536870912, %v1508_v10  ;;  %v6907_v17 = vpop.eup %5732  ;;  %v1135_v34 = vadd.f32 %v1131_v55, %v6813_v4  ;;  %v1159_v50 = vmul.f32 %v1158_v45, %v6624_v36 }
  0xfa   : > { %9731 = vst [vmem:[#allocation21_spill] sm:$0xff] %v6907_v17  ;;  %v1160_v44 = vmul.f32 %v1158_v45, %v6655_v39  ;;  %v1561_v28 = vadd.s32 1, %v5426_v5  ;;  %v1140_v60 = vadd.f32 %v1136_v47, %v1132_v13  ;;  %v1162_v53 = vmul.f32 %v1158_v45, %v6803_v59 }
  0xfb   : > { %v6912_v26 = vpop.eup %5734  ;;  %v1421_v33 = vsub.s32 4294967266, %v1416_v58  ;;  %v6915_v8 = vshrl.u32 %v1509_v12, 30  ;;  %v1141_v24 = vadd.f32 %v1137_v3, %v1133_v54  ;;  %v6918_v42 = vmul.f32 %v1158_v45, %v6668_v11 }
  0xfc   : > { %9732 = vst [vmem:[#allocation22_spill] sm:$0xff] %v6912_v26  ;;  %v1417_v0 = vsub.s32 32, %v1416_v58  ;;  %vm1562_vm7 = vcmp.gt.s32.totalorder %v1561_v28, 0  ;;  %v6920_v4 = vadd.f32 %v1138_v49, %v1134_v19  ;;  %v1143_v36 = vadd.f32 %v1139_v43, %v1135_v34 }
  0xfd   : > { %9733 = vst [vmem:[#allocation23_spill] sm:$0xff] %v6915_v8  ;;  %v1511_v39 = vshll.u32 %v6915_v8, 30  ;;  %v1563_v5 = vsel %vm1562_vm7, %v1561_v28, 0  ;;  %v6924_v55 = vadd.f32 %v1159_v50, %v6848_v2  ;;  %v6926_v13 = vadd.f32 %v1160_v44, %v1153_v6  ;;  %v6938_v6 = vpop.permute.xlu1 %206 }
  0xfe   : > { %v9734_v59 = vand.u32 2147483647, %v6642_v27  ;;  %v1565_v3 = vand.u32 31, %v1563_v5  ;;  %v6931_v11 = vadd.f32 %v1140_v60, %v6626_v46  ;;  %v1166_v45 = vadd.f32 %v1162_v53, %v1155_v30 }
  0xff   : > { %v1422_v54 = vadd.s32 127, %v1421_v33  ;;  %v6933_v19 = vsub.s32 %v1508_v10, %v1511_v39  ;;  %v1418_v49 = vshll.u32 %v6737_v52, %v1416_v58  ;;  %v1419_v43 = vshrl.u32 %v6839_v20, %v1417_v0 }
 0x100   : > { %v1558_v47 = vand.u32 8388607, %v9734_v59  ;;  %v1566_v12 = vsub.s32 32, %v1565_v3  ;;  %v1571_v2 = vshll.u32 %v9717_v32, %v1565_v3  ;;  %v1145_v34 = vadd.f32 %v1141_v24, %v6626_v46 }
 0x101   : > { %v1514_v50 = vsub.s32 0, %v6933_v19  ;;  %v1568_v44 = vshll.u32 %v9723_v15, %v1565_v3  ;;  %v1574_v30 = vshll.u32 %v9718_v40, %v1565_v3  ;;  %v9735_v58 = vmov 2102212464  }
 0x102   : > { %v1559_v28 = vor.u32 8388608, %v1558_v47  ;;  %v1569_v10 = vshrl.u32 %v9717_v32, %v1566_v12  ;;  %v1572_v52 = vshrl.u32 %v9718_v40, %v1566_v12  ;;  %v1575_v20 = vshrl.u32 %v9735_v58, %v1566_v12 }
 0x103   : > { %v1147_v60 = vadd.f32 %v1143_v36, %v6626_v46  ;;  %v1423_v53 = vshll.u32 %v1422_v54, 23  ;;  %v5423_v33 = vmin.u32 %v1514_v50, %v6933_v19  ;;  %v1564_v0 = vshrl.u32 %v1563_v5, 5 }
 0x104   : > { %vm209_vm8 = vcmp.ne.f32.partialorder %v6938_v6, 0.0  ;;  %v1170_v24 = vmul.f32 %v6886_v31, %v6758_v23  ;;  %v1420_v39 = vor.u32 %v1419_v43, %v1418_v49  ;;  %v1567_v59 = vshrl.u32 %v9723_v15, %v1566_v12 }
 0x105   : > { %v1573_v47 = vor.u32 %v1572_v52, %v1571_v2  ;;  %v1516_v32 = vclz %v5423_v33  ;;  %v1570_v27 = vor.u32 %v1569_v10, %v1568_v44  ;;  %v1576_v40 = vor.u32 %v1575_v20, %v1574_v30 }
 0x106   : > { %v1577_v8 = vshll.u32 %v9735_v58, %v1565_v3  ;;  %v9736_v63 = vmov 920167782   ;;  %v1581_v5 = vshrl.u32 %v9719_v57, %v1566_v12  ;;  %v1599_v50 = vshll.u32 %v1559_v28, 8 }
 0x107   : > { %v1578_v36 = vshrl.u32 %v9736_v63, %v1566_v12  ;;  %v1580_v54 = vshll.u32 %v9736_v63, %v1565_v3  ;;  %v1424_v17 = vor.u32 4788187, %v1423_v53  ;;  %v5424_v26 = vadd.s32 4294967294, %v1516_v32 }
 0x108   : > { %vm1583_vm9 = vcmp.lt.s32.totalorder %v1564_v0, 1  ;;  %vm1585_vm10 = vcmp.lt.s32.totalorder %v1564_v0, 3  ;;  %vm1586_vm12 = vcmp.lt.s32.totalorder %v1564_v0, 4  ;;  %vm1584_vm15 = vcmp.lt.s32.totalorder %v1564_v0, 2 }
 0x109   : > { %v1579_v49 = vor.u32 %v1578_v36, %v1577_v8  ;;  %v1582_v43 = vor.u32 %v1581_v5, %v1580_v54  ;;  %v1587_v2 = vsel %vm1583_vm9, %v1567_v59, %v1570_v27  ;;  %vm5425_vm14 = vcmp.lt.s32.totalorder %v5424_v26, 0 }
 0x10a   : > { %v1588_v44 = vsel %vm1586_vm12, %v1576_v40, 2102212464  ;;  %v1591_v30 = vsel %vm1583_vm9, %v1570_v27, %v1573_v47  ;;  %v1595_v10 = vsel %vm1583_vm9, %v1573_v47, %v1576_v40  ;;  %v1167_v12 = vmul.f32 %v6870_v37, %v6758_v23 }
 0x10b   : > { %v1589_v52 = vsel %vm1585_vm10, %v1573_v47, %v1588_v44  ;;  %v1592_v20 = vsel %vm1586_vm12, %v1579_v49, 920167782  ;;  %v1596_v3 = vsel %vm1586_vm12, %v1582_v43, 1326507024  ;;  %v1168_v32 = vmul.f32 %v6875_v56, %v6758_v23 }
 0x10c   : > { %v1169_v8 = vmul.f32 %v6884_v1, %v6758_v23  ;;  %v1590_v28 = vsel %vm1584_vm15, %v1587_v2, %v1589_v52  ;;  %v1174_v53 = vadd.f32 %v1170_v24, %v1166_v45  ;;  %v1519_v33 = vsel %vm5425_vm14, 0, %v5424_v26 }
 0x10d   : > { %v1593_v27 = vsel %vm1585_vm10, %v1576_v40, %v1592_v20  ;;  %v1597_v59 = vsel %vm1585_vm10, %v1579_v49, %v1596_v3  ;;  %v1425_v36 = vand.u32 2147483647, %v1424_v17  ;;  %v1427_v47 = vcvt.s32.f32 %v1420_v39 }
 0x10e   : > { %v1594_v54 = vsel %vm1584_vm15, %v1591_v30, %v1593_v27  ;;  %v1598_v5 = vsel %vm1584_vm15, %v1595_v10, %v1597_v59  ;;  %v1146_v23 = vadd.f32 %v6920_v4, %v6626_v46  ;;  %v6978_v40 = vsel %vm209_vm8, %v6931_v11, %v6409_v7 }
 0x10f   : > { %v6966_v43 = vmul.u32.u64.low %v1599_v50, %v1598_v5  ;;  %v6967_v44 = vmul.u32.u64.high %v1599_v50, %v1598_v5, %v6966_v43  ;;  %v6969_v57 = vmul.u32.u64.low %v1599_v50, %v1594_v54  ;;  %v6970_v63 = vmul.u32.u64.high %v1599_v50, %v1594_v54, %v6969_v57  ;;  %9737 = vst [vmem:[#allocation24_spill] sm:$0xff] %v6978_v40 }
 0x110   : > { %v1165_v17 = vadd.f32 %v6918_v42, %v6856_v35  ;;  %v1524_v26 = vsub.s32 4294967266, %v1519_v33  ;;  %v6985_v45 = vsel %vm209_vm8, %v1145_v34, %v6409_v7  ;;  %v6990_v0 = vsel %vm209_vm8, %v1147_v60, %v6409_v7  ;;  %v9745_v43 = vld [vmem:[#allocation15_spill] sm:$0xff] }
 0x111   : > { %9738 = vst [vmem:[#allocation25_spill] sm:$0xff] %v6985_v45  ;;  %v1171_v46 = vadd.f32 %v1167_v12, %v6924_v55  ;;  %v1172_v4 = vadd.f32 %v1168_v32, %v6926_v13  ;;  %v1178_v24 = vadd.f32 %v1174_v53, %v6724_v41  ;;  %v1201_v35 = vmul.f32 %v6886_v31, %v6767_v48 }
 0x112   : > { %v1173_v11 = vadd.f32 %v1169_v8, %v1165_v17  ;;  %v1606_v42 = vmul.u32 %v1599_v50, %v1590_v28  ;;  %v1428_v39 = vmul.f32 %v1427_v47, %v1425_v36  ;;  %v6998_v34 = vadd.s32 %v6969_v57, %v6967_v44  ;;  %v9743_v47 = vld [vmem:[#allocation22_spill] sm:$0xff] }
 0x113   : > { %vm1608_vm3 = vc.u32 %v6967_v44, %v6969_v57  ;;  %v1609_v60 = vadd.s32 1, %v6970_v63  ;;  %v1197_v55 = vadd.f32 %v6891_v21, %v6867_v9  ;;  %v1504_v13 = vadd.s32 %v6808_v16, %v6831_v22 }
 0x114   : > { %v1520_v49 = vsub.s32 32, %v1519_v33  ;;  %v1525_v2 = vadd.s32 127, %v1524_v26  ;;  %v1195_v31 = vadd.f32 %v6879_v51, %v6862_v61  ;;  %v1198_v50 = vmul.f32 %v6870_v37, %v6767_v48 }
 0x115   : > { %v1199_v30 = vmul.f32 %v6875_v56, %v6767_v48  ;;  %v1610_v57 = vsel %vm1608_vm3, %v1609_v60, %v6970_v63  ;;  %v1175_v10 = vadd.f32 %v1171_v46, %v6724_v41  ;;  %v1176_v9 = vadd.f32 %v1172_v4, %v6724_v41 }
 0x116   : > { %v1205_v21 = vadd.f32 %v1201_v35, %v1197_v55  ;;  %v1611_v52 = vadd.s32 %v1610_v57, %v1606_v42  ;;  %v1177_v16 = vadd.f32 %v1173_v11, %v6724_v41  ;;  %v7019_v22 = vsel %vm209_vm8, %v1178_v24, %v6440_v18  ;;  %v9748_v24 = vld [vmem:[#allocation8_spill] sm:$0xff]  ;;  %v9751_v57 = vld [vmem:[#allocation14_spill] sm:$0xff] }
 0x117   : > { %9739 = vst [vmem:[#allocation26_spill] sm:$0xff] %v7019_v22  ;;  %v1200_v61 = vmul.f32 %v6884_v1, %v6767_v48  ;;  %v1429_v37 = vxor.u32 2147483648, %v1428_v39  ;;  %v1521_v56 = vshll.u32 %v6933_v19, %v1519_v33  ;;  %v1522_v63 = vshrl.u32 %v1504_v13, %v1520_v49 }
 0x118   : > { %v1526_v51 = vshll.u32 %v1525_v2, 23  ;;  %v1612_v20 = vadd.s32 536870912, %v1611_v52  ;;  %v7027_v3 = vsel %vm209_vm8, %v1146_v23, %v6409_v7  ;;  %v1196_v41 = vadd.f32 %v6882_v29, %v6865_v62 }
 0x119   : > { %v1202_v12 = vadd.f32 %v1198_v50, %v6897_v25  ;;  %v1203_v32 = vadd.f32 %v1199_v30, %v1195_v31  ;;  %v7035_v48 = vsel %vm209_vm8, %v1175_v10, %v6440_v18  ;;  %v7040_v1 = vsel %vm209_vm8, %v1176_v9, %v6440_v18 }
 0x11a   : > { %9740 = vst [vmem:[#allocation27_spill] sm:$0xff] %v7035_v48  ;;  %9741 = vst [vmem:[#allocation28_spill] sm:$0xff] %v7040_v1  ;;  %v1209_v19 = vadd.f32 %v1205_v21, %v6734_v14  ;;  %v7043_v7 = vshrl.u32 %v1612_v20, 30  ;;  %v7048_v62 = vsel %vm209_vm8, %v1177_v16, %v6440_v18  ;;  %v1204_v29 = vadd.f32 %v1200_v61, %v1196_v41  ;;  %v9744_v18 = vld [vmem:[#allocation21_spill] sm:$0xff] }
 0x11b   : > { %9742 = vst [vmem:[#allocation29_spill] sm:$0xff] %v7048_v62  ;;  %v2077_v25 = vrot.slane %v6990_v0, 7  ;;  %v2109_v8 = vrot.slane %v7019_v22, 7  ;;  %v1430_v28 = vsel %vm1347_vm11, %v1429_v37, %v1428_v39  ;;  %v1523_v53 = vor.u32 %v1522_v63, %v1521_v56 }
 0x11c   : > { %v1527_v33 = vor.u32 4788187, %v1526_v51  ;;  %v1614_v27 = vshll.u32 %v7043_v7, 30  ;;  %v1206_v59 = vadd.f32 %v1202_v12, %v6734_v14  ;;  %v1207_v36 = vadd.f32 %v1203_v32, %v6734_v14  ;;  %v9753_v12 = vld [vmem:[#allocation19_spill] sm:$0xff] }
 0x11d   : > { %v1338_v54 = vxor.u32 2147483648, %v9743_v47  ;;  %v1341_v5 = vxor.u32 2147483648, %v9744_v18  ;;  %v7062_v44 = vsel %vm209_vm8, %v1209_v19, %v9745_v43  ;;  %v2074_v17 = vrot.slane %v6978_v40, 7 }
 0x11e   : > { %9746 = vst [vmem:[#allocation22_spill] sm:$0xff] %v7062_v44  ;;  %v7064_v23 = vsub.s32 %v1611_v52, %v1614_v27  ;;  %v2075_v26 = vrot.slane %v6985_v45, 7  ;;  %v1433_v4 = vsel %vm6771_vm5, %v6302_v38, %v1430_v28  ;;  %v2085_v11 = vsub.f32 %v6990_v0, %v2077_v25 }
 0x11f   : > { %v7073_v35 = vsub.s32 5, %v9748_v24  ;;  %v2117_v42 = vsub.f32 %v7019_v22, %v2109_v8  ;;  %v1528_v39 = vand.u32 2147483647, %v1527_v33  ;;  %v1530_v60 = vcvt.s32.f32 %v1523_v53 }
 0x120   : > { %v1617_v55 = vsub.s32 0, %v7064_v23  ;;  %v2106_v13 = vrot.slane %v7035_v48, 7  ;;  %v1208_v49 = vadd.f32 %v1204_v29, %v6734_v14  ;;  %v7082_v2 = vsel %vm209_vm8, %v1206_v59, %v9745_v43 }
 0x121   : > { %9749 = vst [vmem:[#allocation21_spill] sm:$0xff] %v7082_v2  ;;  %v2107_v31 = vrot.slane %v7040_v1, 7  ;;  %v2141_v50 = vrot.slane %v7062_v44, 7  ;;  %v7089_v30 = vsel %vm209_vm8, %v1207_v36, %v9745_v43  ;;  %vm1450_vm2 = vcmp.lt.s32.totalorder %v9751_v57, 0 }
 0x122   : > { %9750 = vst [vmem:[#allocation15_spill] sm:$0xff] %v7089_v30  ;;  %v5427_v10 = vmin.u32 %v1617_v55, %v7064_v23  ;;  %v2076_v14 = vrot.slane %v7027_v3, 7  ;;  %v2082_v9 = vsub.f32 %v6978_v40, %v2074_v17  ;;  %5736 = vcosq.f32 %v1433_v4 }
 0x123   : > { %v7096_v21 = vrot.slane %v2085_v11, %v7073_v35  ;;  %v2108_v52 = vrot.slane %v7048_v62, 7  ;;  %v7100_v16 = vrot.slane %v2117_v42, %v7073_v35  ;;  %v1531_v61 = vmul.f32 %v1530_v60, %v1528_v39 }
 0x124   : > { %v1619_v37 = vclz %v5427_v10  ;;  %v2083_v56 = vsub.f32 %v6985_v45, %v2075_v26  ;;  %v2114_v63 = vsub.f32 %v7035_v48, %v2106_v13  ;;  %v7107_v51 = vsel %vm209_vm8, %v1208_v49, %v9745_v43 }
 0x125   : > { %9752 = vst [vmem:[#allocation17_spill] sm:$0xff] %v7107_v51  ;;  %5738 = vsinq.f32 %v1433_v4  ;;  %v2115_v20 = vsub.f32 %v7040_v1, %v2107_v31  ;;  %v2149_v41 = vsub.f32 %v7062_v44, %v2141_v50  ;;  %vm1337_vm0 = vcmp.eq.s32.totalorder %v9753_v12, 0 }
 0x126   : > { %v9754_v32 = vand.u32 2147483647, %v9751_v57  ;;  %v5428_v29 = vadd.s32 4294967294, %v1619_v37  ;;  %v2084_v25 = vsub.f32 %v7027_v3, %v2076_v14  ;;  %v7120_v6 = vrot.slane %v2082_v9, %v7073_v35 }
 0x127   : > { %v2138_v8 = vrot.slane %v7082_v2, 7  ;;  %v2116_v28 = vsub.f32 %v7048_v62, %v2108_v52  ;;  %v2139_v53 = vrot.slane %v7089_v30, 7  ;;  %v2169_v33 = vmul.f32 %v7096_v21, %v7096_v21 }
 0x128   : > { %vm7114_vm4 = vcmp.le.f32.partialorder %v9754_v32, 0.7853982  ;;  %v2173_v27 = vmul.f32 %v7100_v16, %v7100_v16  ;;  %v1532_v59 = vxor.u32 2147483648, %v1531_v61  ;;  %vm5429_vm11 = vcmp.lt.s32.totalorder %v5428_v29, 0  ;;  %v9757_v32 = vld [vmem:[#allocation18_spill] sm:$0xff] }
 0x129   : > { %v7130_v36 = vrot.slane %v2083_v56, %v7073_v35  ;;  %v7133_v43 = vrot.slane %v2114_v63, %v7073_v35  ;;  %vm1340_vm1 = vcmp.eq.s32.totalorder %v9753_v12, 2  ;;  %v1622_v17 = vsel %vm5429_vm11, 0, %v5428_v29 }
 0x12a   : > { %v7137_v26 = vrot.slane %v2115_v20, %v7073_v35  ;;  %v2140_v46 = vrot.slane %v7107_v51, 7  ;;  %v7141_v4 = vrot.slane %v2149_v41, %v7073_v35  ;;  %v1623_v11 = vsub.s32 32, %v1622_v17 }
 0x12b   : > { %v1624_v42 = vshll.u32 %v7064_v23, %v1622_v17  ;;  %v1627_v39 = vsub.s32 4294967266, %v1622_v17  ;;  %v2146_v60 = vsub.f32 %v7082_v2, %v2138_v8  ;;  %v7146_v55 = vrot.slane %v2084_v25, %v7073_v35 }
 0x12c   : > { %v7149_v13 = vrot.slane %v2116_v28, %v7073_v35  ;;  %v2147_v49 = vsub.f32 %v7089_v30, %v2139_v53  ;;  %v2177_v31 = vadd.f32 %v2173_v27, %v2169_v33  ;;  %vm1336_vm5 = vcmp.lt.s32.totalorder %v9753_v12, 2  ;;  %v9758_v53 = vld [vmem:[#allocation13_spill] sm:$0xff] }
 0x12d   : > { %v1625_v50 = vshrl.u32 %v6998_v34, %v1623_v11  ;;  %v1628_v10 = vadd.s32 127, %v1627_v39  ;;  %v2166_v23 = vmul.f32 %v7120_v6, %v7120_v6  ;;  %v2170_v14 = vmul.f32 %v7133_v43, %v7133_v43  ;;  %v9759_v11 = vld [vmem:[#allocation20_spill] sm:$0xff] }
 0x12e   : > { %v1533_v9 = vsel %vm1450_vm2, %v1532_v59, %v1531_v61  ;;  %v2167_v52 = vmul.f32 %v7130_v36, %v7130_v36  ;;  %v2171_v37 = vmul.f32 %v7137_v26, %v7137_v26  ;;  %v2181_v56 = vmul.f32 %v7141_v4, %v7141_v4 }
 0x12f   : > { %v1626_v34 = vor.u32 %v1625_v50, %v1624_v42  ;;  %v1629_v63 = vshll.u32 %v1628_v10, 23  ;;  %v2148_v20 = vsub.f32 %v7107_v51, %v2140_v46  ;;  %v7168_v41 = vrot.slane %v2146_v60, %v7073_v35  ;;  %v7176_v28 = vpop.eup %5736 }
 0x130   : > { %v1747_v29 = vadd.s32 3, %v9757_v32  ;;  %v7172_v61 = vrot.slane %v2147_v49, %v7073_v35  ;;  %v2168_v25 = vmul.f32 %v7146_v55, %v7146_v55  ;;  %v2185_v8 = vadd.f32 %v2181_v56, %v2177_v31  ;;  %v9761_v32 = vld [vmem:[#allocation16_spill] sm:$0xff] }
 0x131   : > { %vm1334_vm6 = vweird.f32 %v9758_v53  ;;  %v1630_v33 = vor.u32 4788187, %v1629_v63  ;;  %v1633_v27 = vcvt.s32.f32 %v1626_v34  ;;  %v2172_v59 = vmul.f32 %v7149_v13, %v7149_v13  ;;  %v9760_v63 = vld [vmem:[#allocation23_spill] sm:$0xff] }
 0x132   : > { %v2174_v17 = vadd.f32 %v2170_v14, %v2166_v23  ;;  %v1339_v46 = vsel %vm1337_vm0, %v9744_v18, %v1338_v54  ;;  %v7187_v42 = vand.u32 3, %v9759_v11  ;;  %v1536_v39 = vsel %vm7114_vm4, %v9751_v57, %v1533_v9  ;;  %v7192_v49 = vpop.eup %5738 }
 0x133   : > { %v2175_v60 = vadd.f32 %v2171_v37, %v2167_v52  ;;  %v1631_v31 = vand.u32 2147483647, %v1630_v33  ;;  %v7195_v50 = vrot.slane %v2148_v20, %v7073_v35  ;;  %v2178_v10 = vmul.f32 %v7168_v41, %v7168_v41 }
 0x134   : > { %5740 = vrsqrt.f32 %v2185_v8  ;;  %v1637_v23 = vsub.s32 4, %v7043_v7  ;;  %v1748_v14 = vand.u32 3, %v1747_v29  ;;  %v1851_v56 = vadd.s32 3, %v9759_v11 }
 0x135   : > { %v2179_v34 = vmul.f32 %v7172_v61, %v7172_v61  ;;  %v1342_v9 = vsel %vm1340_vm1, %v1341_v5, %v9743_v47  ;;  %v1634_v35 = vmul.f32 %v1633_v27, %v1631_v31  ;;  %v2176_v52 = vadd.f32 %v2172_v59, %v2168_v25 }
 0x136   : > { %v2182_v37 = vadd.f32 %v2178_v10, %v2174_v17  ;;  %v1534_v20 = vsub.s32 4, %v9760_v63  ;;  %5742 = vcosq.f32 %v1536_v39  ;;  %vm1553_vm13 = vcmp.lt.s32.totalorder %v9761_v32, 0 }
 0x137   : > { %v2183_v29 = vadd.f32 %v2179_v34, %v2175_v60  ;;  %vm1440_vm7 = vcmp.eq.s32.totalorder %v7187_v42, 0  ;;  %v9762_v8 = vand.u32 2147483647, %v9761_v32  ;;  %v1635_v11 = vxor.u32 2147483648, %v1634_v35 }
 0x138   : > { %v2180_v27 = vmul.f32 %v7195_v50, %v7195_v50  ;;  %v1343_v25 = vsel %vm1336_vm5, %v1339_v46, %v1342_v9  ;;  %vm1439_vm9 = vcmp.lt.s32.totalorder %v7187_v42, 2  ;;  %v1638_v59 = vsel %vm1553_vm13, %v1637_v23, %v7043_v7 }
 0x139   : > { %vm7213_vm8 = vcmp.le.f32.partialorder %v9762_v8, 0.7853982  ;;  %vm1750_vm10 = vcmp.eq.s32.totalorder %v1748_v14, 0  ;;  %v7223_v17 = vand.u32 3, %v1851_v56  ;;  %v1636_v60 = vsel %vm1553_vm13, %v1635_v11, %v1634_v35 }
 0x13a   : > { %v2184_v31 = vadd.f32 %v2180_v27, %v2176_v52  ;;  %5744 = vrsqrt.f32 %v2182_v37  ;;  %v7226_v10 = vsub.s32 4, %v9748_v24  ;;  %v1535_v34 = vsel %vm1450_vm2, %v1534_v20, %v9760_v63 }
 0x13b   : > { %v1639_v12 = vsel %vm7213_vm8, %v9761_v32, %v1636_v60  ;;  %vm1753_vm12 = vcmp.eq.s32.totalorder %v1748_v14, 2  ;;  %5746 = vrsqrt.f32 %v2183_v29  ;;  %v1441_v7 = vxor.u32 2147483648, %v7192_v49 }
 0x13c   : > { %v1444_v46 = vxor.u32 2147483648, %v7176_v28  ;;  %v1640_v23 = vsel %vm7213_vm8, 0, %v1638_v59  ;;  %5748 = vcosq.f32 %v1639_v12  ;;  %v7240_v24 = vsel %vm1334_vm6, nan, %v1343_v25 }
 0x13d   : > { %vm1443_vm14 = vcmp.eq.s32.totalorder %v7187_v42, 2  ;;  %5750 = vsinq.f32 %v1639_v12  ;;  %v2059_v56 = vadd.s32 3, %v1640_v23  ;;  %v1537_v9 = vsel %vm7114_vm4, 0, %v1535_v34 }
 0x13e   : > { %5752 = vrsqrt.f32 %v2184_v31  ;;  %v7247_v35 = vrot.slane %v6990_v0, %v7226_v10  ;;  %v7251_v52 = vrot.slane %v7019_v22, %v7226_v10  ;;  %vm1749_vm15 = vcmp.lt.s32.totalorder %v1748_v14, 2 }
 0x13f   : > { %v1752_v37 = vsel %vm1750_vm10, %v9744_v18, %v1338_v54  ;;  %v1755_v19 = vsel %vm1753_vm12, %v1341_v5, %v9743_v47  ;;  %v1955_v63 = vadd.s32 3, %v1537_v9  ;;  %v1442_v20 = vsel %vm1440_vm7, %v7176_v28, %v1441_v7 }
 0x140   : > { %9765 = vst [vmem:[#allocation8_spill] sm:$0xff] %v7251_v52  ;;  %v1445_v29 = vsel %vm1443_vm14, %v1444_v46, %v7192_v49  ;;  %vm1854_vm3 = vcmp.eq.s32.totalorder %v7223_v17, 0  ;;  %vm1857_vm2 = vcmp.eq.s32.totalorder %v7223_v17, 2  ;;  %5754 = vsinq.f32 %v1536_v39 }
 0x141   : > { %v5741_v8 = vpop.eup %5740  ;;  %v7267_v33 = vand.u32 3, %v1640_v23  ;;  %v7269_v54 = vand.u32 3, %v2059_v56  ;;  %v7273_v47 = vrot.slane %v7062_v44, %v7226_v10  ;;  %v7283_v11 = vsub.f32 %v6990_v0, %v7247_v35 }
 0x142   : > { %v7276_v18 = vmul.f32 %v5741_v8, %v7096_v21  ;;  %v7279_v5 = vmul.f32 %v5741_v8, %v7100_v16  ;;  %v7287_v39 = vsub.f32 %v7019_v22, %v7251_v52  ;;  %v7289_v27 = vand.u32 3, %v1537_v9 }
 0x143   : > { %9766 = vst [vmem:[#allocation14_spill] sm:$0xff] %v7273_v47  ;;  %v7292_v25 = vsel %vm1749_vm15, %v1752_v37, %v1755_v19  ;;  %v7295_v59 = vsel %vm1857_vm2, %v1444_v46, %v7192_v49  ;;  %v7297_v21 = vand.u32 3, %v1955_v63  ;;  %v7299_v16 = vpop.eup %5742  ;;  %v7303_v60 = vsel %vm1439_vm9, %v1442_v20, %v1445_v29 }
 0x144   : > { %9767 = vst [vmem:[#allocation19_spill] sm:$0xff] %v7292_v25  ;;  %9768 = vst [vmem:[#allocation18_spill] sm:$0xff] %v7295_v59  ;;  %vm1643_vm0 = vweird.f32 %v9761_v32  ;;  %v7309_v31 = vsel %vm1854_vm3, %v7176_v28, %v1441_v7  ;;  %v2265_v14 = vmul.f32 %v7283_v11, %v7276_v18  ;;  %v2269_v49 = vmul.f32 %v7287_v39, %v7279_v5 }
 0x145   : > { %9769 = vst [vmem:[#allocation20_spill] sm:$0xff] %v7309_v31  ;;  %vm1645_vm4 = vcmp.lt.s32.totalorder %v7267_v33, 2  ;;  %vm1646_vm11 = vcmp.eq.s32.totalorder %v7267_v33, 0  ;;  %vm1649_vm1 = vcmp.eq.s32.totalorder %v7267_v33, 2  ;;  %v7320_v42 = vrot.slane %v6978_v40, %v7226_v10 }
 0x146   : > { %vm2061_vm5 = vcmp.lt.s32.totalorder %v7269_v54, 2  ;;  %v7324_v28 = vmul.f32 %v5741_v8, %v7141_v4  ;;  %v7328_v34 = vrot.slane %v6985_v45, %v7226_v10  ;;  %v7332_v12 = vsub.f32 %v7062_v44, %v7273_v47 }
 0x147   : > { %9770 = vst [vmem:[#allocation23_spill] sm:$0xff] %v7320_v42  ;;  %v5745_v7 = vpop.eup %5744  ;;  %vm2062_vm13 = vcmp.eq.s32.totalorder %v7269_v54, 0  ;;  %vm2065_vm7 = vcmp.eq.s32.totalorder %v7269_v54, 2  ;;  %v7339_v23 = vrot.slane %v7035_v48, %v7226_v10  ;;  %v7343_v56 = vrot.slane %v7027_v3, %v7226_v10 }
 0x148   : > { %9771 = vst [vmem:[#allocation16_spill] sm:$0xff] %v7328_v34  ;;  %v5747_v4 = vpop.eup %5746  ;;  %v7347_v9 = vrot.slane %v7040_v1, %v7226_v10  ;;  %v2273_v37 = vadd.f32 %v2269_v49, %v2265_v14  ;;  %v2297_v19 = vmul.f32 %v7332_v12, %v7279_v5  ;;  %v7353_v20 = vrot.slane %v7048_v62, %v7226_v10 }
 0x149   : > { %9772 = vst [vmem:[#allocation30_spill] sm:$0xff] %v7339_v23  ;;  %v5749_v63 = vpop.eup %5748  ;;  %v7357_v29 = vrot.slane %v7082_v2, %v7226_v10  ;;  %v7361_v8 = vrot.slane %v7089_v30, %v7226_v10  ;;  %v7365_v46 = vsub.f32 %v6978_v40, %v7320_v42  ;;  %vm1546_vm8 = vcmp.eq.s32.totalorder %v7289_v27, 2 }
 0x14a   : > { %9773 = vst [vmem:[#allocation31_spill] sm:$0xff] %v7353_v20  ;;  %v5751_v14 = vpop.eup %5750  ;;  %v1650_v49 = vxor.u32 2147483648, %v5749_v63  ;;  %v7370_v44 = vsub.f32 %v6985_v45, %v7328_v34  ;;  %v2277_v47 = vmul.f32 %v7332_v12, %v7324_v28  ;;  %v2301_v22 = vmul.f32 %v7287_v39, %v7324_v28  ;;  %v7387_v34 = vpop.permute.xlu1 %1215 }
 0x14b   : > { %9774 = vst [vmem:[#allocation32_spill] sm:$0xff] %v7357_v29  ;;  %9775 = vst [vmem:[#allocation33_spill] sm:$0xff] %v7361_v8  ;;  %v5753_v52 = vpop.eup %5752  ;;  %v1647_v58 = vxor.u32 2147483648, %v5751_v14  ;;  %vm1961_vm9 = vcmp.eq.s32.totalorder %v7297_v21, 2  ;;  %v7378_v15 = vmul.f32 %v5745_v7, %v7120_v6  ;;  %v7381_v40 = vmul.f32 %v5745_v7, %v7133_v43 }
 0x14c   : > { %v7385_v45 = vsub.f32 %v7035_v48, %v7339_v23  ;;  %vm1543_vm10 = vcmp.eq.s32.totalorder %v7289_v27, 0  ;;  %v1651_v42 = vsel %vm1649_vm1, %v1650_v49, %v5751_v14  ;;  %v2067_v53 = vsel %vm2065_vm7, %v1650_v49, %v5751_v14 }
 0x14d   : > { %v2281_v25 = vadd.f32 %v2277_v47, %v2273_v37  ;;  %v2305_v6 = vsub.f32 %v2297_v19, %v2301_v22  ;;  %v1648_v43 = vsel %vm1646_vm11, %v5749_v63, %v1647_v58  ;;  %vm1958_vm12 = vcmp.eq.s32.totalorder %v7297_v21, 0  ;;  %v5755_v59 = vpop.eup %5754 }
 0x14e   : > { %v2064_v48 = vsel %vm2062_vm13, %v5749_v63, %v1647_v58  ;;  %v7400_v23 = vmul.f32 %v5747_v4, %v7130_v36  ;;  %v7403_v31 = vmul.f32 %v5747_v4, %v7137_v26  ;;  %v1652_v14 = vsel %vm1645_vm4, %v1648_v43, %v1651_v42 }
 0x14f   : > { %v2068_v22 = vsel %vm2061_vm5, %v2064_v48, %v2067_v53  ;;  %v7410_v47 = vmul.f32 %v5753_v52, %v7146_v55  ;;  %v7414_v37 = vsub.f32 %v7040_v1, %v7347_v9  ;;  %vm1218_vm14 = vcmp.ne.f32.partialorder %v7387_v34, 0.0 }
 0x150   : > { %v7419_v58 = vsel %vm1643_vm0, nan, %v1652_v14  ;;  %v7423_v36 = vsel %vm1643_vm0, nan, %v2068_v22  ;;  %v7426_v26 = vmul.f32 %v5753_v52, %v7149_v13  ;;  %v2262_v48 = vmul.f32 %v7365_v46, %v7378_v15 }
 0x151   : > { %vm1542_vm15 = vcmp.lt.s32.totalorder %v7289_v27, 2  ;;  %v2266_v55 = vmul.f32 %v7385_v45, %v7381_v40  ;;  %v2285_v53 = vmul.f32 %v2281_v25, %v7419_v58  ;;  %v2293_v33 = vmul.f32 %v7283_v11, %v7419_v58 }
 0x152   : > { %v2309_v32 = vmul.f32 %v2305_v6, %v7423_v36  ;;  %v7439_v54 = vsub.f32 %v7027_v3, %v7343_v56  ;;  %v7443_v13 = vsub.f32 %v7048_v62, %v7353_v20  ;;  %v2263_v42 = vmul.f32 %v7370_v44, %v7400_v23  ;;  %v9786_v20 = vld [vmem:[#allocation9_spill] sm:$0xff] }
 0x153   : > { %v2267_v19 = vmul.f32 %v7414_v37, %v7403_v31  ;;  %vm1437_vm3 = vweird.f32 %v6302_v38  ;;  %v1544_v63 = vxor.u32 2147483648, %v5755_v59  ;;  %vm1853_vm2 = vcmp.lt.s32.totalorder %v7223_v17, 2 }
 0x154   : > { %vm1957_vm0 = vcmp.lt.s32.totalorder %v7297_v21, 2  ;;  %v7453_v49 = vmul.f32 %v5745_v7, %v7168_v41  ;;  %v7455_v6 = vsub.f32 %v2281_v25, %v2285_v53  ;;  %v2313_v43 = vadd.f32 %v2309_v32, %v2293_v33 }
 0x155   : > { %vm1540_vm4 = vweird.f32 %v9751_v57  ;;  %v7459_v14 = vmul.f32 %v5747_v4, %v7172_v61  ;;  %v7463_v22 = vrot.slane %v7107_v51, %v7226_v10  ;;  %v2264_v62 = vmul.f32 %v7439_v54, %v7410_v47 }
 0x156   : > { %v2268_v1 = vmul.f32 %v7443_v13, %v7426_v26  ;;  %v7471_v41 = vsub.f32 %v7082_v2, %v7357_v29  ;;  %v2270_v25 = vadd.f32 %v2266_v55, %v2262_v48  ;;  %v2317_v7 = vmul.f32 %v7455_v6, %v7276_v18 }
 0x157   : > { %9776 = vst [vmem:[#allocation34_spill] sm:$0xff] %v7459_v14  ;;  %9777 = vst [vmem:[#allocation35_spill] sm:$0xff] %v7463_v22  ;;  %v2337_v61 = vmul.f32 %v7283_v11, %v7324_v28  ;;  %v9778_v10 = vxor.u32 2147483648, %v7299_v16  ;;  %v7482_v53 = vmul.f32 %v5753_v52, %v7195_v50  ;;  %v7486_v33 = vsub.f32 %v7089_v30, %v7361_v8 }
 0x158   : > { %v2271_v32 = vadd.f32 %v2267_v19, %v2263_v42  ;;  %v2274_v2 = vmul.f32 %v7471_v41, %v7453_v49  ;;  %v2321_v29 = vadd.f32 %v2317_v7, %v2313_v43  ;;  %v1545_v50 = vsel %vm1543_vm10, %v7299_v16, %v1544_v63 }
 0x159   : > { %v1548_v4 = vsel %vm1546_vm8, %v9778_v10, %v5755_v59  ;;  %9779 = vst [vmem:[#allocation36_spill] sm:$0xff] %v7482_v53  ;;  %v9780_v48 = vmov %v9778_v10  ;;  %v2341_v10 = vmul.f32 %v7332_v12, %v7276_v18  ;;  %v7501_v52 = vsub.f32 %v7107_v51, %v7463_v22  ;;  %v7552_v22 = vld [vmem:[%s6036_s9 + $0x3] ss:$8 sm:$0xf] }
 0x15a   : > { %v1963_v55 = vsel %vm1961_vm9, %v9780_v48, %v5755_v59  ;;  %v2272_v42 = vadd.f32 %v2268_v1, %v2264_v62  ;;  %v2275_v19 = vmul.f32 %v7486_v33, %v7459_v14  ;;  %v1960_v59 = vsel %vm1958_vm12, %v7299_v16, %v1544_v63 }
 0x15b   : > { %v2278_v43 = vadd.f32 %v2274_v2, %v2270_v25  ;;  %v2325_v7 = vadd.f32 %v2321_v29, %v7247_v35  ;;  %v2345_v48 = vsub.f32 %v2337_v61, %v2341_v10  ;;  %v2276_v30 = vmul.f32 %v7501_v52, %v7482_v53 }
 0x15c   : > { %v2279_v8 = vadd.f32 %v2275_v19, %v2271_v32  ;;  %v2294_v51 = vmul.f32 %v7471_v41, %v7381_v40  ;;  %v2357_v1 = vmul.f32 %v7455_v6, %v7279_v5  ;;  %v2298_v62 = vmul.f32 %v7385_v45, %v7453_v49 }
 0x15d   : > { %v7520_v2 = vsel %vm1218_vm14, %v2325_v7, %v6990_v0  ;;  %v2333_v35 = vmul.f32 %v7287_v39, %v7419_v58  ;;  %v2349_v16 = vmul.f32 %v2345_v48, %v7423_v36  ;;  %v1549_v29 = vsel %vm1542_vm15, %v1545_v50, %v1548_v4  ;;  %v9783_v4 = vld [vmem:[#allocation20_spill] sm:$0xff] }
 0x15e   : > { %9781 = vst [vmem:[#allocation37_spill] sm:$0xff] %v7520_v2  ;;  %v2280_v63 = vadd.f32 %v2276_v30, %v2272_v42  ;;  %v2295_v25 = vmul.f32 %v7486_v33, %v7403_v31  ;;  %v2296_v61 = vmul.f32 %v7501_v52, %v7426_v26  ;;  %v2282_v32 = vmul.f32 %v2278_v43, %v7240_v24  ;;  %v9782_v30 = vld [vmem:[#allocation18_spill] sm:$0xff] }
 0x15f   : > { %v2299_v0 = vmul.f32 %v7414_v37, %v7459_v14  ;;  %v2300_v10 = vmul.f32 %v7443_v13, %v7482_v53  ;;  %v2353_v19 = vadd.f32 %v2349_v16, %v2333_v35  ;;  %v1447_v27 = vsel %vm1437_vm3, nan, %v7303_v60  ;;  %v9784_v60 = vld [vmem:[#allocation19_spill] sm:$0xff] }
 0x160   : > { %v1860_v50 = vsel %vm1853_vm2, %v9783_v4, %v9782_v30  ;;  %v1964_v42 = vsel %vm1957_vm0, %v1960_v59, %v1963_v55  ;;  %v2377_v7 = vmul.f32 %v7287_v39, %v7276_v18  ;;  %v1550_v48 = vsel %vm1540_vm4, nan, %v1549_v29 }
 0x161   : > { %v2283_v2 = vmul.f32 %v2279_v8, %v1447_v27  ;;  %v2302_v35 = vsub.f32 %v2294_v51, %v2298_v62  ;;  %v7549_v16 = vadd.f32 %v2357_v1, %v2353_v19  ;;  %v7557_v17 = vsel %vm1334_vm6, nan, %v9784_v60 }
 0x162   : > { %v2284_v30 = vmul.f32 %v2280_v63, %v1550_v48  ;;  %v2381_v21 = vmul.f32 %v7283_v11, %v7279_v5  ;;  %v7561_v55 = vsub.f32 %v2278_v43, %v2282_v32  ;;  %v2303_v18 = vsub.f32 %v2295_v25, %v2299_v0  ;;  %v9788_v11 = vld [vmem:[#allocation10_spill] sm:$0xff]  ;;  %v9789_v25 = vld [vmem:[#allocation11_spill] sm:$0xff] }
 0x163   : > { %v2304_v39 = vsub.f32 %v2296_v61, %v2300_v10  ;;  %v7565_v51 = vsel %vm1437_vm3, nan, %v1860_v50  ;;  %v7569_v59 = vsel %vm1540_vm4, nan, %v1964_v42  ;;  %v2416_v62 = vrot.slane %v7552_v22, %v9786_v20 }
 0x164   : > { %v2385_v1 = vsub.f32 %v2377_v7, %v2381_v21  ;;  %v7573_v29 = vsub.f32 %v2279_v8, %v2283_v2  ;;  %v2306_v5 = vmul.f32 %v2302_v35, %v7557_v17  ;;  %v2420_v43 = vrot.slane %v7552_v22, %v9788_v11 }
 0x165   : > { %v2424_v38 = vrot.slane %v7552_v22, %v9789_v25  ;;  %v7580_v61 = vsub.f32 %v2280_v63, %v2284_v30  ;;  %v2290_v57 = vmul.f32 %v7365_v46, %v7240_v24  ;;  %v2373_v32 = vmul.f32 %v7332_v12, %v7419_v58 }
 0x166   : > { %9787 = vst [vmem:[#allocation18_spill] sm:$0xff] %v7573_v29  ;;  %v2389_v0 = vmul.f32 %v2385_v1, %v7423_v36  ;;  %v2307_v8 = vmul.f32 %v2303_v18, %v7565_v51  ;;  %v2308_v2 = vmul.f32 %v2304_v39, %v7569_v59  ;;  %v2314_v10 = vmul.f32 %v7561_v55, %v7378_v15  ;;  %v7614_v1 = vld [vmem:[%s6036_s9 + $0x4] ss:$8 sm:$0xf] }
 0x167   : > { %9790 = vst [vmem:[#allocation20_spill] sm:$0xff] %v7580_v61  ;;  %v2397_v19 = vmul.f32 %v7455_v6, %v7324_v28  ;;  %v2291_v63 = vmul.f32 %v7370_v44, %v1447_v27  ;;  %v2292_v4 = vmul.f32 %v7439_v54, %v1550_v48  ;;  %v2330_v12 = vmul.f32 %v7385_v45, %v7240_v24 }
 0x168   : > { %v2393_v58 = vadd.f32 %v2389_v0, %v2373_v32  ;;  %v2310_v36 = vadd.f32 %v2306_v5, %v2290_v57  ;;  %v2315_v50 = vmul.f32 %v7573_v29, %v7400_v23  ;;  %v2331_v42 = vmul.f32 %v7414_v37, %v1447_v27  ;;  %9793 = vst [vmem:[#allocation38_spill] sm:$0xff] %v7614_v1 }
 0x169   : > { %v2332_v7 = vmul.f32 %v7443_v13, %v1550_v48  ;;  %v2316_v28 = vmul.f32 %v7580_v61, %v7410_v47  ;;  %v2334_v6 = vmul.f32 %v7365_v46, %v7453_v49  ;;  %v2338_v35 = vmul.f32 %v7471_v41, %v7378_v15 }
 0x16a   : > { %v7607_v60 = vadd.f32 %v2397_v19, %v2393_v58  ;;  %v2311_v30 = vadd.f32 %v2307_v8, %v2291_v63  ;;  %v2312_v21 = vadd.f32 %v2308_v2, %v2292_v4  ;;  %v2318_v18 = vadd.f32 %v2314_v10, %v2310_v36  ;;  %v9798_v36 = vld [vmem:[#allocation23_spill] sm:$0xff] }
 0x16b   : > { %v7611_v39 = vmul.f32 %v7471_v41, %v7240_v24  ;;  %v2335_v5 = vmul.f32 %v7370_v44, %v7459_v14  ;;  %v2336_v57 = vmul.f32 %v7439_v54, %v7482_v53  ;;  %v2339_v32 = vmul.f32 %v7486_v33, %v7400_v23  ;;  %v9796_v41 = vld [vmem:[#allocation12_spill] sm:$0xff] }
 0x16c   : > { %9791 = vst [vmem:[#allocation19_spill] sm:$0xff] %v7607_v60  ;;  %v2340_v0 = vmul.f32 %v7501_v52, %v7410_v47  ;;  %v2319_v8 = vadd.f32 %v2315_v50, %v2311_v30  ;;  %v7625_v2 = vmul.f32 %v7486_v33, %v1447_v27  ;;  %v7628_v24 = vmul.f32 %v7501_v52, %v1550_v48 }
 0x16d   : > { %9792 = vst [vmem:[#allocation13_spill] sm:$0xff] %v7611_v39  ;;  %v2320_v19 = vadd.f32 %v2316_v28, %v2312_v21  ;;  %v2342_v63 = vsub.f32 %v2334_v6, %v2338_v35  ;;  %v7634_v58 = vmul.f32 0.5, %v2416_v62  ;;  %v2322_v60 = vadd.f32 %v2318_v18, %v9798_v36  ;;  %v9800_v6 = vld [vmem:[#allocation16_spill] sm:$0xff] }
 0x16e   : > { %9794 = vst [vmem:[#allocation39_spill] sm:$0xff] %v7625_v2  ;;  %9795 = vst [vmem:[#allocation40_spill] sm:$0xff] %v7628_v24  ;;  %v7639_v33 = vmul.f32 0.5, %v2420_v43  ;;  %v7641_v27 = vmul.f32 0.5, %v2424_v38  ;;  %v2343_v52 = vsub.f32 %v2335_v5, %v2339_v32  ;;  %v2344_v48 = vsub.f32 %v2336_v57, %v2340_v0 }
 0x16f   : > { %9797 = vst [vmem:[#allocation41_spill] sm:$0xff] %v7634_v58  ;;  %v9646_v30 = vand.u32 2147483647, %v7634_v58  ;;  %v2554_v28 = vand.u32 2139095040, %v7634_v58  ;;  %v2323_v35 = vadd.f32 %v2319_v8, %v9800_v6  ;;  %v2324_v43 = vadd.f32 %v2320_v19, %v7343_v56  ;;  %v9801_v6 = vld [vmem:[#allocation24_spill] sm:$0xff] }
 0x170   : > { %9799 = vst [vmem:[#allocation23_spill] sm:$0xff] %v7639_v33  ;;  %v9645_v21 = vand.u32 2147483647, %v7639_v33  ;;  %v2657_v18 = vand.u32 2139095040, %v7639_v33  ;;  %v2346_v38 = vmul.f32 %v2342_v63, %v7557_v17  ;;  %v2760_v36 = vand.u32 2139095040, %v7641_v27 }
 0x171   : > { %v2555_v57 = vshrl.u32 %v2554_v28, 23  ;;  %v2558_v32 = vand.u32 8388607, %v9646_v30  ;;  %v7662_v62 = vsel %vm1218_vm14, %v2322_v60, %v9801_v6  ;;  %v2347_v56 = vmul.f32 %v2343_v52, %v7565_v51  ;;  %v9803_v28 = vld [vmem:[#allocation25_spill] sm:$0xff] }
 0x172   : > { %v2658_v0 = vshrl.u32 %v2657_v18, 23  ;;  %v2661_v8 = vand.u32 8388607, %v9645_v21  ;;  %9802 = vst [vmem:[#allocation16_spill] sm:$0xff] %v7662_v62  ;;  %v2348_v19 = vmul.f32 %v2344_v48, %v7569_v59  ;;  %v7669_v5 = vsel %vm1218_vm14, %v2323_v35, %v9803_v28 }
 0x173   : > { %v5451_v63 = vadd.s32 4294967169, %v2555_v57  ;;  %9804 = vst [vmem:[#allocation24_spill] sm:$0xff] %v7669_v5  ;;  %v2354_v18 = vmul.f32 %v7561_v55, %v7381_v40  ;;  %v2761_v4 = vshrl.u32 %v2760_v36, 23  ;;  %v7676_v60 = vsel %vm1218_vm14, %v2324_v43, %v7027_v3 }
 0x174   : > { %v5455_v50 = vadd.s32 4294967169, %v2658_v0  ;;  %9805 = vst [vmem:[#allocation25_spill] sm:$0xff] %v7676_v60  ;;  %v2350_v6 = vadd.f32 %v2346_v38, %v2330_v12  ;;  %v7680_v52 = vmul.f32 %v7573_v29, %v7403_v31  ;;  %v2559_v57 = vor.u32 8388608, %v2558_v32 }
 0x175   : > { %v2561_v48 = vadd.s32 1, %v5451_v63  ;;  %v2662_v21 = vor.u32 8388608, %v2661_v8  ;;  %v5459_v28 = vadd.s32 4294967169, %v2761_v4  ;;  %v7682_v30 = vadd.f32 %v2347_v56, %v2331_v42 }
 0x176   : > { %v2664_v35 = vadd.s32 1, %v5455_v50  ;;  %v7684_v10 = vadd.f32 %v2348_v19, %v2332_v7  ;;  %v7688_v0 = vmul.f32 %v7580_v61, %v7426_v26  ;;  %v7690_v3 = vadd.f32 %v2354_v18, %v2350_v6 }
 0x177   : > { %vm2562_vm6 = vcmp.gt.s32.totalorder %v2561_v48, 0  ;;  %v7694_v12 = vmul.f32 %v7385_v45, %v7378_v15  ;;  %v7697_v7 = vshll.u32 %v2559_v57, 8  ;;  %v7699_v8 = vshll.u32 %v2662_v21, 8 }
 0x178   : > { %v2563_v43 = vsel %vm2562_vm6, %v2561_v48, 0  ;;  %vm2665_vm11 = vcmp.gt.s32.totalorder %v2664_v35, 0  ;;  %v7701_v36 = vadd.s32 1, %v5459_v28  ;;  %v9806_v19 = vmov 683565275  }
 0x179   : > { %v2564_v38 = vshrl.u32 %v2563_v43, 5  ;;  %v2565_v50 = vand.u32 31, %v2563_v43  ;;  %v2666_v4 = vsel %vm2665_vm11, %v2664_v35, 0  ;;  %v9807_v18 = vmov 2475754826  }
 0x17a   : > { %v2668_v32 = vand.u32 31, %v2666_v4  ;;  %v9808_v45 = vmov 2131351028   ;;  %v9809_v48 = vmov 2102212464   ;;  %v7708_v42 = vshrl.u32 %v2666_v4, 5 }
 0x17b   : > { %v2566_v56 = vsub.s32 32, %v2565_v50  ;;  %v2568_v63 = vshll.u32 %v9806_v19, %v2565_v50  ;;  %v2571_v15 = vshll.u32 %v9807_v18, %v2565_v50  ;;  %v2574_v6 = vshll.u32 %v9808_v45, %v2565_v50 }
 0x17c   : > { %v2577_v60 = vshll.u32 %v9809_v48, %v2565_v50  ;;  %v9810_v43 = vmov 920167782   ;;  %vm2583_vm1 = vcmp.lt.s32.totalorder %v2564_v38, 1  ;;  %v9811_v1 = vmov 1326507024  }
 0x17d   : > { %v2580_v35 = vshll.u32 %v9810_v43, %v2565_v50  ;;  %v2567_v57 = vshrl.u32 %v9806_v19, %v2566_v56  ;;  %v2569_v21 = vshrl.u32 %v9807_v18, %v2566_v56  ;;  %v2572_v28 = vshrl.u32 %v9808_v45, %v2566_v56 }
 0x17e   : > { %v2575_v5 = vshrl.u32 %v9809_v48, %v2566_v56  ;;  %v2578_v62 = vshrl.u32 %v9810_v43, %v2566_v56  ;;  %v2581_v33 = vshrl.u32 %v9811_v1, %v2566_v56  ;;  %vm2584_vm5 = vcmp.lt.s32.totalorder %v2564_v38, 2 }
 0x17f   : > { %vm2586_vm13 = vcmp.lt.s32.totalorder %v2564_v38, 4  ;;  %v2570_v25 = vor.u32 %v2569_v21, %v2568_v63  ;;  %v2573_v11 = vor.u32 %v2572_v28, %v2571_v15  ;;  %v2669_v20 = vsub.s32 32, %v2668_v32 }
 0x180   : > { %v2576_v50 = vor.u32 %v2575_v5, %v2574_v6  ;;  %v2579_v4 = vor.u32 %v2578_v62, %v2577_v60  ;;  %v2582_v24 = vor.u32 %v2581_v33, %v2580_v35  ;;  %vm2585_vm7 = vcmp.lt.s32.totalorder %v2564_v38, 3 }
 0x181   : > { %v2671_v61 = vshll.u32 %v9806_v19, %v2668_v32  ;;  %v2587_v53 = vsel %vm2583_vm1, %v2567_v57, %v2570_v25  ;;  %v2591_v58 = vsel %vm2583_vm1, %v2570_v25, %v2573_v11  ;;  %v2674_v63 = vshll.u32 %v9807_v18, %v2668_v32 }
 0x182   : > { %v2588_v2 = vsel %vm2586_vm13, %v2576_v50, 2102212464  ;;  %v2595_v39 = vsel %vm2583_vm1, %v2573_v11, %v2576_v50  ;;  %v2592_v56 = vsel %vm2586_vm13, %v2579_v4, 920167782  ;;  %v2596_v14 = vsel %vm2586_vm13, %v2582_v24, 1326507024 }
 0x183   : > { %v2589_v29 = vsel %vm2585_vm7, %v2573_v11, %v2588_v2  ;;  %vm2768_vm8 = vcmp.gt.s32.totalorder %v7701_v36, 0  ;;  %v2593_v5 = vsel %vm2585_vm7, %v2576_v50, %v2592_v56  ;;  %v2597_v62 = vsel %vm2585_vm7, %v2579_v4, %v2596_v14 }
 0x184   : > { %v2670_v33 = vshrl.u32 %v9806_v19, %v2669_v20  ;;  %v2672_v60 = vshrl.u32 %v9807_v18, %v2669_v20  ;;  %v2590_v15 = vsel %vm2584_vm5, %v2587_v53, %v2589_v29  ;;  %v2594_v6 = vsel %vm2584_vm5, %v2591_v58, %v2593_v5 }
 0x185   : > { %v2598_v25 = vsel %vm2584_vm5, %v2595_v39, %v2597_v62  ;;  %v2675_v11 = vshrl.u32 %v9808_v45, %v2669_v20  ;;  %v7733_v35 = vmul.u32.u64.low %v7697_v7, %v2594_v6  ;;  %v7734_v57 = vmul.u32.u64.high %v7697_v7, %v2594_v6, %v7733_v35 }
 0x186   : > { %v7729_v2 = vmul.u32.u64.low %v7697_v7, %v2598_v25  ;;  %v7730_v24 = vmul.u32.u64.high %v7697_v7, %v2598_v25, %v7729_v2  ;;  %v2673_v14 = vor.u32 %v2672_v60, %v2671_v61  ;;  %v2677_v28 = vshll.u32 %v9808_v45, %v2668_v32 }
 0x187   : > { %v2676_v21 = vor.u32 %v2675_v11, %v2674_v63  ;;  %v2678_v53 = vshrl.u32 %v9809_v48, %v2669_v20  ;;  %v2680_v29 = vshll.u32 %v9809_v48, %v2668_v32  ;;  %v2681_v39 = vshrl.u32 %v9810_v43, %v2669_v20 }
 0x188   : > { %v2683_v58 = vshll.u32 %v9810_v43, %v2668_v32  ;;  %v2684_v38 = vshrl.u32 %v9811_v1, %v2669_v20  ;;  %v2606_v50 = vmul.u32 %v7697_v7, %v2590_v15  ;;  %vm2686_vm9 = vcmp.lt.s32.totalorder %v7708_v42, 1 }
 0x189   : > { %v2679_v4 = vor.u32 %v2678_v53, %v2677_v28  ;;  %vm2687_vm10 = vcmp.lt.s32.totalorder %v7708_v42, 2  ;;  %vm2608_vm12 = vc.u32 %v7730_v24, %v7733_v35  ;;  %v2609_v61 = vadd.s32 1, %v7734_v57 }
 0x18a   : > { %v2682_v56 = vor.u32 %v2681_v39, %v2680_v29  ;;  %vm2688_vm15 = vcmp.lt.s32.totalorder %v7708_v42, 3  ;;  %v2685_v63 = vor.u32 %v2684_v38, %v2683_v58  ;;  %vm2689_vm3 = vcmp.lt.s32.totalorder %v7708_v42, 4 }
 0x18b   : > { %v2690_v32 = vsel %vm2686_vm9, %v2670_v33, %v2673_v14  ;;  %v2694_v20 = vsel %vm2686_vm9, %v2673_v14, %v2676_v21  ;;  %v2610_v7 = vsel %vm2608_vm12, %v2609_v61, %v7734_v57  ;;  %v2691_v5 = vsel %vm2689_vm3, %v2679_v4, 2102212464 }
 0x18c   : > { %v2695_v62 = vsel %vm2689_vm3, %v2682_v56, 920167782  ;;  %v2698_v60 = vsel %vm2686_vm9, %v2676_v21, %v2679_v4  ;;  %v2611_v15 = vadd.s32 %v2610_v7, %v2606_v50  ;;  %v2692_v6 = vsel %vm2688_vm15, %v2676_v21, %v2691_v5 }
 0x18d   : > { %v2696_v25 = vsel %vm2688_vm15, %v2679_v4, %v2695_v62  ;;  %v2699_v11 = vsel %vm2689_vm3, %v2685_v63, 1326507024  ;;  %v2693_v2 = vsel %vm2687_vm10, %v2690_v32, %v2692_v6  ;;  %v2769_v33 = vsel %vm2768_vm8, %v7701_v36, 0 }
 0x18e   : > { %v2697_v28 = vsel %vm2687_vm10, %v2694_v20, %v2696_v25  ;;  %v2700_v53 = vsel %vm2688_vm15, %v2682_v56, %v2699_v11  ;;  %v2612_v14 = vadd.s32 536870912, %v2611_v15  ;;  %v2359_v39 = vadd.f32 %v7680_v52, %v7682_v30  ;;  %v9815_v25 = vld [vmem:[#allocation31_spill] sm:$0xff] }
 0x18f   : > { %v2701_v57 = vsel %vm2687_vm10, %v2698_v60, %v2700_v53  ;;  %v7762_v29 = vmul.u32.u64.low %v7699_v8, %v2697_v28  ;;  %v7763_v21 = vmul.u32.u64.high %v7699_v8, %v2697_v28, %v7762_v29  ;;  %v9812_v50 = vand.u32 2147483647, %v7641_v27 }
 0x190   : > { %v7769_v58 = vmul.u32.u64.low %v7699_v8, %v2701_v57  ;;  %v7770_v38 = vmul.u32.u64.high %v7699_v8, %v2701_v57, %v7769_v58  ;;  %v7776_v36 = vmul.f32 %v7414_v37, %v7400_v23  ;;  %v7780_v42 = vmul.f32 %v7443_v13, %v7410_v47  ;;  %v9813_v37 = vld [vmem:[#allocation30_spill] sm:$0xff] }
 0x191   : > { %v2764_v4 = vand.u32 8388607, %v9812_v50  ;;  %v7782_v61 = vshrl.u32 %v2612_v14, 30  ;;  %v2771_v56 = vand.u32 31, %v2769_v33  ;;  %v2360_v30 = vadd.f32 %v7688_v0, %v7684_v10 }
 0x192   : > { %v7788_v52 = vmul.f32 %v7365_v46, %v7381_v40  ;;  %v7792_v63 = vmul.f32 %v7370_v44, %v7403_v31  ;;  %v2709_v23 = vmul.u32 %v7699_v8, %v2693_v2  ;;  %v7797_v47 = vadd.f32 %v7690_v3, %v9813_v37 }
 0x193   : > { %v2614_v13 = vshll.u32 %v7782_v61, 30  ;;  %v2712_v32 = vadd.s32 1, %v7763_v21  ;;  %v2772_v20 = vsub.s32 32, %v2771_v56  ;;  %v7802_v10 = vadd.f32 %v2359_v39, %v7347_v9 }
 0x194   : > { %v9814_v40 = vrot.slane %v7552_v22, %v9796_v41  ;;  %vm2711_vm2 = vc.u32 %v7770_v38, %v7762_v29  ;;  %v2765_v44 = vor.u32 8388608, %v2764_v4  ;;  %v7814_v3 = vshrl.u32 %v2769_v33, 5 }
 0x195   : > { %v7811_v31 = vsub.s32 %v2611_v15, %v2614_v13  ;;  %v2713_v0 = vsel %vm2711_vm2, %v2712_v32, %v7763_v21  ;;  %v2774_v8 = vshll.u32 %v9806_v19, %v2771_v56  ;;  %v2775_v9 = vshrl.u32 %v9807_v18, %v2772_v20 }
 0x196   : > { %v7807_v46 = vmul.f32 0.5, %v9814_v40  ;;  %v2714_v7 = vadd.s32 %v2713_v0, %v2709_v23  ;;  %v2777_v5 = vshll.u32 %v9807_v18, %v2771_v56  ;;  %v2778_v22 = vshrl.u32 %v9808_v45, %v2772_v20 }
 0x197   : > { %v7822_v62 = vmul.f32 %v7439_v54, %v7426_v26  ;;  %v2617_v60 = vsub.s32 0, %v7811_v31  ;;  %v2780_v15 = vshll.u32 %v9808_v45, %v2771_v56  ;;  %v2781_v6 = vshrl.u32 %v9809_v48, %v2772_v20 }
 0x198   : > { %v7828_v11 = vadd.f32 %v2360_v30, %v9815_v25  ;;  %v2715_v2 = vadd.s32 536870912, %v2714_v7  ;;  %v2783_v28 = vshll.u32 %v9809_v48, %v2771_v56  ;;  %v2863_v53 = vand.u32 2139095040, %v7807_v46 }
 0x199   : > { %v5452_v33 = vmin.u32 %v2617_v60, %v7811_v31  ;;  %v2776_v14 = vor.u32 %v2775_v9, %v2774_v8  ;;  %vm2789_vm0 = vcmp.lt.s32.totalorder %v7814_v3, 1  ;;  %v7834_v26 = vshll.u32 %v2765_v44, 8 }
 0x19a   : > { %v7836_v54 = vshrl.u32 %v2715_v2, 30  ;;  %v2779_v57 = vor.u32 %v2778_v22, %v2777_v5  ;;  %v2784_v21 = vshrl.u32 %v9810_v43, %v2772_v20  ;;  %v2786_v39 = vshll.u32 %v9810_v43, %v2771_v56 }
 0x19b   : > { %v2619_v58 = vclz %v5452_v33  ;;  %v2782_v50 = vor.u32 %v2781_v6, %v2780_v15  ;;  %v2787_v4 = vshrl.u32 %v9811_v1, %v2772_v20  ;;  %vm2792_vm4 = vcmp.lt.s32.totalorder %v7814_v3, 4 }
 0x19c   : > { %v2717_v30 = vshll.u32 %v7836_v54, 30  ;;  %v2785_v23 = vor.u32 %v2784_v21, %v2783_v28  ;;  %vm2791_vm6 = vcmp.lt.s32.totalorder %v7814_v3, 3  ;;  %v2864_v37 = vshrl.u32 %v2863_v53, 23 }
 0x19d   : > { %v2607_v13 = vadd.s32 %v7733_v35, %v7730_v24  ;;  %v5453_v32 = vadd.s32 4294967294, %v2619_v58  ;;  %v2773_v40 = vshrl.u32 %v9806_v19, %v2772_v20  ;;  %v2788_v44 = vor.u32 %v2787_v4, %v2786_v39 }
 0x19e   : > { %v7847_v56 = vsub.s32 %v2714_v7, %v2717_v30  ;;  %vm2790_vm11 = vcmp.lt.s32.totalorder %v7814_v3, 2  ;;  %v2797_v0 = vsel %vm2789_vm0, %v2776_v14, %v2779_v57  ;;  %v2798_v8 = vsel %vm2792_vm4, %v2785_v23, 920167782 }
 0x19f   : > { %vm5454_vm1 = vcmp.lt.s32.totalorder %v5453_v32, 0  ;;  %v2794_v9 = vsel %vm2792_vm4, %v2782_v50, 2102212464  ;;  %v2799_v24 = vsel %vm2791_vm6, %v2782_v50, %v2798_v8  ;;  %v2802_v35 = vsel %vm2792_vm4, %v2788_v44, 1326507024 }
 0x1a0   : > { %v2622_v20 = vsel %vm5454_vm1, 0, %v5453_v32  ;;  %v2720_v7 = vsub.s32 0, %v7847_v56  ;;  %v2801_v5 = vsel %vm2789_vm0, %v2779_v57, %v2782_v50  ;;  %v5463_v22 = vadd.s32 4294967169, %v2864_v37 }
 0x1a1   : > { %v2623_v60 = vsub.s32 32, %v2622_v20  ;;  %v2627_v15 = vsub.s32 4294967266, %v2622_v20  ;;  %v2793_v6 = vsel %vm2789_vm0, %v2773_v40, %v2776_v14  ;;  %v2803_v25 = vsel %vm2791_vm6, %v2785_v23, %v2802_v35  ;;  %v9816_v40 = vld [vmem:[#allocation8_spill] sm:$0xff] }
 0x1a2   : > { %v2624_v2 = vshll.u32 %v7811_v31, %v2622_v20  ;;  %v5456_v28 = vmin.u32 %v2720_v7, %v7847_v56  ;;  %v2795_v53 = vsel %vm2791_vm6, %v2779_v57, %v2794_v9  ;;  %v2800_v33 = vsel %vm2790_vm11, %v2797_v0, %v2799_v24  ;;  %v9817_v20 = vld [vmem:[#allocation27_spill] sm:$0xff] }
 0x1a3   : > { %v2382_v21 = vsub.f32 %v7694_v12, %v7788_v52  ;;  %v2625_v39 = vshrl.u32 %v2607_v13, %v2623_v60  ;;  %v2628_v58 = vadd.s32 127, %v2627_v15  ;;  %v2804_v14 = vsel %vm2790_vm11, %v2801_v5, %v2803_v25  ;;  %v9822_v25 = vld [vmem:[#allocation18_spill] sm:$0xff] }
 0x1a4   : > { %v2722_v50 = vclz %v5456_v28  ;;  %v7878_v4 = vmul.u32.u64.low %v7834_v26, %v2804_v14  ;;  %v7879_v31 = vmul.u32.u64.high %v7834_v26, %v2804_v14, %v7878_v4  ;;  %v2870_v30 = vadd.s32 1, %v5463_v22 }
 0x1a5   : > { %v2629_v23 = vshll.u32 %v2628_v58, 23  ;;  %v2796_v57 = vsel %vm2790_vm11, %v2793_v6, %v2795_v53  ;;  %v7884_v37 = vmul.u32.u64.low %v7834_v26, %v2800_v33  ;;  %v7885_v32 = vmul.u32.u64.high %v7834_v26, %v2800_v33, %v7884_v37  ;;  %v9821_v6 = vld [vmem:[#allocation34_spill] sm:$0xff]  ;;  %v9823_v53 = vld [vmem:[#allocation13_spill] sm:$0xff] }
 0x1a6   : > { %v2383_v12 = vsub.f32 %v7776_v36, %v7792_v63  ;;  %v2626_v52 = vor.u32 %v2625_v39, %v2624_v2  ;;  %v5457_v13 = vadd.s32 4294967294, %v2722_v50  ;;  %vm2871_vm5 = vcmp.gt.s32.totalorder %v2870_v30, 0 }
 0x1a7   : > { %v7892_v44 = vadd.f32 %v7549_v16, %v9816_v40  ;;  %v2384_v0 = vsub.f32 %v7780_v42, %v7822_v62  ;;  %v2630_v3 = vor.u32 4788187, %v2629_v23  ;;  %v2872_v8 = vsel %vm2871_vm5, %v2870_v30, 0  ;;  %v9819_v62 = vld [vmem:[#allocation28_spill] sm:$0xff] }
 0x1a8   : > { %v2386_v9 = vmul.f32 %v2382_v21, %v7557_v17  ;;  %vm5458_vm13 = vcmp.lt.s32.totalorder %v5457_v13, 0  ;;  %v2812_v24 = vmul.u32 %v7834_v26, %v2796_v57  ;;  %vm2814_vm7 = vc.u32 %v7879_v31, %v7884_v37 }
 0x1a9   : > { %v2725_v36 = vsel %vm5458_vm13, 0, %v5457_v13  ;;  %v2815_v63 = vadd.s32 1, %v7885_v32  ;;  %v9664_v35 = vand.u32 2147483647, %v7807_v46  ;;  %v2874_v16 = vand.u32 31, %v2872_v8 }
 0x1aa   : > { %v7906_v42 = vsel %vm1218_vm14, %v7797_v47, %v9817_v20  ;;  %v7912_v17 = vsel %vm1218_vm14, %v7802_v10, %v9819_v62  ;;  %v2631_v26 = vand.u32 2147483647, %v2630_v3  ;;  %v2633_v7 = vcvt.s32.f32 %v2626_v52 }
 0x1ab   : > { %9818 = vst [vmem:[#allocation30_spill] sm:$0xff] %v7906_v42  ;;  %9820 = vst [vmem:[#allocation31_spill] sm:$0xff] %v7912_v17  ;;  %v2387_v5 = vmul.f32 %v2383_v12, %v7565_v51  ;;  %v7916_v22 = vmul.f32 %v2384_v0, %v7569_v59  ;;  %v2816_v60 = vsel %vm2814_vm7, %v2815_v63, %v7885_v32  ;;  %v2875_v15 = vsub.s32 32, %v2874_v16  ;;  %v9824_v51 = vld [vmem:[#allocation41_spill] sm:$0xff] }
 0x1ac   : > { %v7921_v47 = vmul.f32 %v7561_v55, %v7453_v49  ;;  %v7925_v2 = vmul.f32 %v9822_v25, %v9821_v6  ;;  %v2730_v10 = vsub.s32 4294967266, %v2725_v36  ;;  %v2817_v28 = vadd.s32 %v2816_v60, %v2812_v24 }
 0x1ad   : > { %v7928_v33 = vadd.f32 %v2386_v9, %v9823_v53  ;;  %vm2553_vm8 = vcmp.lt.s32.totalorder %v9824_v51, 0  ;;  %v2867_v59 = vand.u32 8388607, %v9664_v35  ;;  %v2873_v21 = vshrl.u32 %v2872_v8, 5 }
 0x1ae   : > { %v2634_v39 = vmul.f32 %v2633_v7, %v2631_v26  ;;  %v2818_v58 = vadd.s32 536870912, %v2817_v28  ;;  %v2877_v49 = vshll.u32 %v9806_v19, %v2874_v16  ;;  %v2878_v55 = vshrl.u32 %v9807_v18, %v2875_v15 }
 0x1af   : > { %v2710_v14 = vadd.s32 %v7762_v29, %v7770_v38  ;;  %v2726_v50 = vsub.s32 32, %v2725_v36  ;;  %v2880_v4 = vshll.u32 %v9807_v18, %v2874_v16  ;;  %v2881_v30 = vshrl.u32 %v9808_v45, %v2875_v15 }
 0x1b0   : > { %v2731_v23 = vadd.s32 127, %v2730_v10  ;;  %v7939_v57 = vshrl.u32 %v2818_v58, 30  ;;  %v2883_v32 = vshll.u32 %v9808_v45, %v2874_v16  ;;  %v2884_v12 = vshrl.u32 %v9809_v48, %v2875_v15  ;;  %v9828_v58 = vld [vmem:[#allocation39_spill] sm:$0xff] }
 0x1b1   : > { %v2727_v52 = vshll.u32 %v7847_v56, %v2725_v36  ;;  %v2868_v13 = vor.u32 8388608, %v2867_v59  ;;  %v2886_v40 = vshll.u32 %v9809_v48, %v2874_v16  ;;  %v2887_v0 = vshrl.u32 %v9810_v43, %v2875_v15 }
 0x1b2   : > { %v2635_v29 = vxor.u32 2147483648, %v2634_v39  ;;  %v2820_v38 = vshll.u32 %v7939_v57, 30  ;;  %v2879_v3 = vor.u32 %v2878_v55, %v2877_v49  ;;  %vm2892_vm9 = vcmp.lt.s32.totalorder %v2873_v21, 1 }
 0x1b3   : > { %v2882_v8 = vor.u32 %v2881_v30, %v2880_v4  ;;  %v2888_v9 = vor.u32 %v2887_v0, %v2886_v40  ;;  %v2889_v24 = vshll.u32 %v9810_v43, %v2874_v16  ;;  %v2890_v63 = vshrl.u32 %v9811_v1, %v2875_v15 }
 0x1b4   : > { %v2728_v20 = vshrl.u32 %v2710_v14, %v2726_v50  ;;  %v2732_v62 = vshll.u32 %v2731_v23, 23  ;;  %v7949_v26 = vsub.s32 %v2817_v28, %v2820_v38  ;;  %v2885_v56 = vor.u32 %v2884_v12, %v2883_v32 }
 0x1b5   : > { %v9825_v36 = vand.u32 2147483647, %v9824_v51  ;;  %v2876_v60 = vshrl.u32 %v9806_v19, %v2875_v15  ;;  %vm2895_vm12 = vcmp.lt.s32.totalorder %v2873_v21, 4  ;;  %v2908_v6 = vshll.u32 %v2868_v13, 8  ;;  %v9830_v13 = vld [vmem:[#allocation20_spill] sm:$0xff] }
 0x1b6   : > { %v2823_v25 = vsub.s32 0, %v7949_v26  ;;  %v2891_v16 = vor.u32 %v2890_v63, %v2889_v24  ;;  %vm2894_vm15 = vcmp.lt.s32.totalorder %v2873_v21, 3  ;;  %v2897_v10 = vsel %vm2895_vm12, %v2885_v56, 2102212464 }
 0x1b7   : > { %vm7953_vm10 = vcmp.le.f32.partialorder %v9825_v36, 0.7853982  ;;  %v2636_v28 = vsel %vm2553_vm8, %v2635_v29, %v2634_v39  ;;  %vm2893_vm3 = vcmp.lt.s32.totalorder %v2873_v21, 2  ;;  %v2900_v53 = vsel %vm2892_vm9, %v2879_v3, %v2882_v8 }
 0x1b8   : > { %v2901_v59 = vsel %vm2895_vm12, %v2888_v9, 920167782  ;;  %v2391_v49 = vadd.f32 %v2387_v5, %v9828_v58  ;;  %v2729_v55 = vor.u32 %v2728_v20, %v2727_v52  ;;  %v2733_v15 = vor.u32 4788187, %v2732_v62  ;;  %v9829_v52 = vld [vmem:[#allocation36_spill] sm:$0xff] }
 0x1b9   : > { %v5460_v14 = vmin.u32 %v2823_v25, %v7949_v26  ;;  %v2896_v50 = vsel %vm2892_vm9, %v2876_v60, %v2879_v3  ;;  %v2898_v4 = vsel %vm2894_vm15, %v2882_v8, %v2897_v10  ;;  %v2902_v30 = vsel %vm2894_vm15, %v2885_v56, %v2901_v59  ;;  %v7985_v20 = vld [vmem:[%s6036_s9 + $0x5] ss:$8 sm:$0xf] }
 0x1ba   : > { %v2904_v39 = vsel %vm2892_vm9, %v2882_v8, %v2885_v56  ;;  %v2639_v23 = vsel %vm7953_vm10, %v9824_v51, %v2636_v28  ;;  %v2903_v5 = vsel %vm2893_vm3, %v2900_v53, %v2902_v30  ;;  %v2905_v12 = vsel %vm2895_vm12, %v2891_v16, 1326507024  ;;  %v9831_v60 = vld [vmem:[#allocation29_spill] sm:$0xff]  ;;  %v9833_v25 = vld [vmem:[#allocation40_spill] sm:$0xff] }
 0x1bb   : > { %v2825_v32 = vclz %v5460_v14  ;;  %v2396_v40 = vmul.f32 %v9830_v13, %v9829_v52  ;;  %v2906_v0 = vsel %vm2894_vm15, %v2888_v9, %v2905_v12  ;;  %v2736_v3 = vcvt.s32.f32 %v2729_v55  ;;  %v8003_v53 = vld [vmem:[%s6036_s9] ss:$8 sm:$0xf] }
 0x1bc   : > { %v7978_v29 = vmul.u32.u64.low %v2908_v6, %v2903_v5  ;;  %v7979_v38 = vmul.u32.u64.high %v2908_v6, %v2903_v5, %v7978_v29  ;;  %v2899_v24 = vsel %vm2893_vm3, %v2896_v50, %v2898_v4  ;;  %v2907_v63 = vsel %vm2893_vm3, %v2904_v39, %v2906_v0  ;;  %9834 = vst [vmem:[#allocation27_spill] sm:$0xff] %v8003_v53  ;;  %v9835_v55 = vld [vmem:[#allocation26_spill] sm:$0xff]  ;;  %v9842_v5 = vld [vmem:[#allocation33_spill] sm:$0xff] }
 0x1bd   : > { %v5461_v8 = vadd.s32 4294967294, %v2825_v32  ;;  %5756 = vcosq.f32 %v2639_v23  ;;  %v2734_v62 = vand.u32 2147483647, %v2733_v15  ;;  %v7994_v9 = vsel %vm1218_vm14, %v7828_v11, %v9831_v60  ;;  %v9837_v15 = vld [vmem:[#allocation9_spill] sm:$0xff]  ;;  %v9838_v50 = vld [vmem:[#allocation10_spill] sm:$0xff]  ;;  %v9845_v60 = vld [vmem:[#allocation19_spill] sm:$0xff] }
 0x1be   : > { %v7987_v56 = vmul.u32.u64.low %v2908_v6, %v2907_v63  ;;  %v7988_v36 = vmul.u32.u64.high %v2908_v6, %v2907_v63, %v7987_v56  ;;  %9832 = vst [vmem:[#allocation8_spill] sm:$0xff] %v7994_v9  ;;  %v2392_v16 = vadd.f32 %v7916_v22, %v9833_v25  ;;  %v2637_v10 = vsub.s32 4, %v7782_v61  ;;  %v8025_v4 = vld [vmem:[%s6036_s9 + $0x1] ss:$8 sm:$0xf] }
 0x1bf   : > { %5758 = vsinq.f32 %v2639_v23  ;;  %v2398_v21 = vadd.f32 %v7921_v47, %v7928_v33  ;;  %v2399_v28 = vadd.f32 %v7925_v2, %v2391_v49  ;;  %v2915_v59 = vmul.u32 %v2908_v6, %v2899_v24  ;;  %v9839_v2 = vld [vmem:[#allocation11_spill] sm:$0xff]  ;;  %9840 = vst [vmem:[#allocation34_spill] sm:$0xff] %v8025_v4  ;;  %v9841_v23 = vld [vmem:[#allocation32_spill] sm:$0xff]  ;;  %v9844_v56 = vld [vmem:[#allocation14_spill] sm:$0xff] }
 0x1c0   : > { %v2918_v58 = vadd.s32 1, %v7979_v38  ;;  %v8010_v11 = vsel %vm1218_vm14, %v7892_v44, %v9835_v55  ;;  %v2400_v22 = vadd.f32 %v2396_v40, %v2392_v16  ;;  %vm5462_vm2 = vcmp.lt.s32.totalorder %v5461_v8, 0  ;;  %v9843_v40 = vld [vmem:[#allocation35_spill] sm:$0xff]  ;;  %v9862_v33 = vld [vmem:[#allocation22_spill] sm:$0xff] }
 0x1c1   : > { %9836 = vst [vmem:[#allocation28_spill] sm:$0xff] %v8010_v11  ;;  %v2737_v6 = vmul.f32 %v2736_v3, %v2734_v62  ;;  %vm2917_vm0 = vc.u32 %v7988_v36, %v7978_v29  ;;  %v2638_v30 = vsel %vm2553_vm8, %v2637_v10, %v7782_v61  ;;  %v2402_v32 = vadd.f32 %v2398_v21, %v9841_v23  ;;  %v9846_v10 = vld [vmem:[#allocation23_spill] sm:$0xff]  ;;  %v9857_v61 = vld [vmem:[#allocation38_spill] sm:$0xff] }
 0x1c2   : > { %v2919_v39 = vsel %vm2917_vm0, %v2918_v58, %v7979_v38  ;;  %v2403_v12 = vadd.f32 %v2399_v28, %v9842_v5  ;;  %v2828_v52 = vsel %vm5462_vm2, 0, %v5461_v8  ;;  %v2404_v0 = vadd.f32 %v2400_v22, %v9843_v40  ;;  %v9847_v28 = vld [vmem:[#allocation21_spill] sm:$0xff]  ;;  %v9849_v58 = vld [vmem:[#allocation15_spill] sm:$0xff] }
 0x1c3   : > { %v2920_v13 = vadd.s32 %v2919_v39, %v2915_v59  ;;  %v2640_v63 = vsel %vm7953_vm10, 0, %v2638_v30  ;;  %v2738_v8 = vxor.u32 2147483648, %v2737_v6  ;;  %v2405_v25 = vadd.f32 %v9845_v60, %v9844_v56  ;;  %v8062_v22 = vld [vmem:[%s6036_s9 + $0x2] ss:$8 sm:$0xf]  ;;  %s5832_s9 = scalar_lea.vmem %s9518_s27, 1536 }
 0x1c4   : > { %vm2656_vm4 = vcmp.lt.s32.totalorder %v9846_v10, 0  ;;  %v2833_v21 = vsub.s32 4294967266, %v2828_v52  ;;  %v8052_v59 = vsel %vm1218_vm14, %v2402_v32, %v9847_v28  ;;  %v8057_v7 = vsel %vm1218_vm14, %v2403_v12, %v9849_v58  ;;  %9851 = vst [vmem:[#allocation41_spill] sm:$0xff] %v8062_v22  ;;  %v9852_v39 = vld [vmem:[#allocation17_spill] sm:$0xff]  ;;  %p5833_p11 = scmp.ne.s32.totalorder %s9518_s27, %s5832_s9  ;;  %p5840_p5 = scmp.lt.s32.totalorder %s5838_s6, %s5832_s9 }
 0x1c5   : > { %v2921_v62 = vadd.s32 536870912, %v2920_v13  ;;  %9848 = vst [vmem:[#allocation18_spill] sm:$0xff] %v8052_v59  ;;  %9850 = vst [vmem:[#allocation13_spill] sm:$0xff] %v8057_v7  ;;  %v8069_v23 = vsel %vm1218_vm14, %v2404_v0, %v9852_v39  ;;  %v9854_v32 = vand.u32 2147483647, %v9846_v10  ;;  %v2740_v12 = vsub.s32 4, %v7836_v54 }
 0x1c6   : > { %9853 = vst [vmem:[#allocation39_spill] sm:$0xff] %v8069_v23  ;;  %v3056_v40 = vadd.s32 3, %v2640_v63  ;;  %v2739_v56 = vsel %vm2656_vm4, %v2738_v8, %v2737_v6  ;;  %v2829_v60 = vsub.s32 32, %v2828_v52  ;;  %v9858_v55 = vrot.slane %v9857_v61, %v9837_v15  ;;  %p5834_p13 = pnand %p5833_p11, %p9936_p12  ;;  %p5841_p8 = por %p5840_p5, %p5839_p3 }
 0x1c7   : > { %v8064_v30 = vshrl.u32 %v2921_v62, 30  ;;  %vm8073_vm6 = vcmp.le.f32.partialorder %v9854_v32, 0.7853982  ;;  %v2813_v62 = vadd.s32 %v7884_v37, %v7879_v31  ;;  %v2834_v32 = vadd.s32 127, %v2833_v21 }
 0x1c8   : > { %v8090_v16 = vmul.f32 0.5, %v9858_v55  ;;  %v2644_v37 = vand.u32 3, %v2640_v63  ;;  %vm2759_vm11 = vcmp.lt.s32.totalorder %v7641_v27, 0  ;;  %v2741_v58 = vsel %vm2656_vm4, %v2740_v12, %v7836_v54  ;;  %p5835_p1 = pneg %p5834_p13 }
 0x1c9   : > { %v2923_v28 = vshll.u32 %v8064_v30, 30  ;;  %v2742_v21 = vsel %vm8073_vm6, %v9846_v10, %v2739_v56  ;;  %v9859_v55 = vand.u32 2147483647, %v7641_v27  ;;  %v2843_v63 = vsub.s32 4, %v7939_v57 }
 0x1ca   : > { %v5757_v0 = vpop.eup %5756  ;;  %v2830_v31 = vshll.u32 %v7949_v26, %v2828_v52  ;;  %v3057_v38 = vand.u32 3, %v3056_v40  ;;  %v2835_v12 = vshll.u32 %v2834_v32, 23  ;;  %v3386_v3 = vand.u32 2139095040, %v8090_v16  ;;  %p5842_p10 = pnand %p5841_p8, %p5835_p1 }
 0x1cb   : > { %v8095_v8 = vsub.s32 %v2920_v13, %v2923_v28  ;;  %vm8105_vm1 = vcmp.le.f32.partialorder %v9859_v55, 0.7853982  ;;  %v2831_v13 = vshrl.u32 %v2813_v62, %v2829_v60  ;;  %v2650_v54 = vxor.u32 2147483648, %v5757_v0 }
 0x1cc   : > { %v5759_v6 = vpop.eup %5758  ;;  %vm2646_vm5 = vcmp.eq.s32.totalorder %v2644_v37, 0  ;;  %vm2649_vm13 = vcmp.eq.s32.totalorder %v2644_v37, 2  ;;  %5760 = vcosq.f32 %v2742_v21  ;;  %vm2645_vm7 = vcmp.lt.s32.totalorder %v2644_v37, 2 }
 0x1cd   : > { %v2926_v28 = vsub.s32 0, %v8095_v8  ;;  %v2647_v24 = vxor.u32 2147483648, %v5759_v6  ;;  %v2743_v55 = vsel %vm8073_vm6, 0, %v2741_v58  ;;  %v2844_v26 = vsel %vm2759_vm11, %v2843_v63, %v7939_v57 }
 0x1ce   : > { %v3387_v52 = vshrl.u32 %v3386_v3, 23  ;;  %v2832_v40 = vor.u32 %v2831_v13, %v2830_v31  ;;  %vm3059_vm8 = vcmp.eq.s32.totalorder %v3057_v38, 0  ;;  %vm3062_vm9 = vcmp.eq.s32.totalorder %v3057_v38, 2 }
 0x1cf   : > { %v5464_v56 = vmin.u32 %v2926_v28, %v8095_v8  ;;  %v2648_v60 = vsel %vm2646_vm5, %v5757_v0, %v2647_v24  ;;  %v2651_v32 = vsel %vm2649_vm13, %v2650_v54, %v5759_v6  ;;  %v2836_v44 = vor.u32 4788187, %v2835_v12 }
 0x1d0   : > { %v5483_v49 = vadd.s32 4294967169, %v3387_v52  ;;  %v8122_v28 = vsel %vm1218_vm14, %v2405_v25, %v9862_v33  ;;  %vm2643_vm10 = vweird.f32 %v9824_v51  ;;  %v2846_v57 = vsel %vm8105_vm1, 0, %v2844_v26 }
 0x1d1   : > { %v2928_v62 = vclz %v5464_v56  ;;  %9863 = vst [vmem:[#allocation36_spill] sm:$0xff] %v8122_v28  ;;  %vm3058_vm12 = vcmp.lt.s32.totalorder %v3057_v38, 2  ;;  %v3160_v58 = vadd.s32 3, %v2743_v55  ;;  %v2652_v63 = vsel %vm2645_vm7, %v2648_v60, %v2651_v32 }
 0x1d2   : > { %v3393_v31 = vadd.s32 1, %v5483_v49  ;;  %v2839_v13 = vcvt.s32.f32 %v2832_v40  ;;  %v3061_v12 = vsel %vm3059_vm8, %v5757_v0, %v2647_v24  ;;  %v3064_v34 = vsel %vm3062_vm9, %v2650_v54, %v5759_v6 }
 0x1d3   : > { %v5465_v3 = vadd.s32 4294967294, %v2928_v62  ;;  %v2837_v33 = vand.u32 2147483647, %v2836_v44  ;;  %v9864_v25 = vrot.slane %v9857_v61, %v9838_v50  ;;  %v9663_v52 = vand.u32 2147483647, %v8090_v16 }
 0x1d4   : > { %vm3394_vm14 = vcmp.gt.s32.totalorder %v3393_v31, 0  ;;  %v8140_v49 = vand.u32 3, %v2743_v55  ;;  %v8142_v37 = vand.u32 3, %v2846_v57  ;;  %5762 = vsinq.f32 %v2742_v21 }
 0x1d5   : > { %v8135_v56 = vmul.f32 0.5, %v9864_v25  ;;  %v3395_v40 = vsel %vm3394_vm14, %v3393_v31, 0  ;;  %vm5466_vm15 = vcmp.lt.s32.totalorder %v5465_v3, 0  ;;  %v3264_v24 = vadd.s32 3, %v2846_v57 }
 0x1d6   : > { %v3397_v44 = vand.u32 31, %v3395_v40  ;;  %v8146_v0 = vsel %vm2643_vm10, nan, %v2652_v63  ;;  %v2916_v6 = vadd.s32 %v7978_v29, %v7988_v36  ;;  %v3065_v54 = vsel %vm3058_vm12, %v3061_v12, %v3064_v34 }
 0x1d7   : > { %v8151_v62 = vand.u32 3, %v3160_v58  ;;  %v2840_v55 = vmul.f32 %v2839_v13, %v2837_v33  ;;  %v3390_v60 = vand.u32 8388607, %v9663_v52  ;;  %v3489_v21 = vand.u32 2139095040, %v8135_v56 }
 0x1d8   : > { %v3398_v32 = vsub.s32 32, %v3397_v44  ;;  %v8156_v57 = vsel %vm5466_vm15, 0, %v5465_v3  ;;  %v3400_v31 = vshll.u32 %v9806_v19, %v3397_v44  ;;  %v3403_v63 = vshll.u32 %v9807_v18, %v3397_v44 }
 0x1d9   : > { %v3406_v25 = vshll.u32 %v9808_v45, %v3397_v44  ;;  %v8161_v29 = vpop.eup %5760  ;;  %v3409_v13 = vshll.u32 %v9809_v48, %v3397_v44  ;;  %v3396_v12 = vshrl.u32 %v3395_v40, 5  ;;  %v3412_v34 = vshll.u32 %v9810_v43, %v3397_v44 }
 0x1da   : > { %v3401_v36 = vshrl.u32 %v9807_v18, %v3398_v32  ;;  %v3404_v38 = vshrl.u32 %v9808_v45, %v3398_v32  ;;  %v3407_v58 = vshrl.u32 %v9809_v48, %v3398_v32  ;;  %v3410_v3 = vshrl.u32 %v9810_v43, %v3398_v32 }
 0x1db   : > { %v3413_v33 = vshrl.u32 %v9811_v1, %v3398_v32  ;;  %v2936_v26 = vsub.s32 4294967266, %v8156_v57  ;;  %v8173_v5 = vsel %vm2643_vm10, nan, %v3065_v54  ;;  %v8175_v47 = vand.u32 3, %v3264_v24 }
 0x1dc   : > { %9865 = vst [vmem:[#allocation20_spill] sm:$0xff] %v8173_v5  ;;  %v3391_v14 = vor.u32 8388608, %v3390_v60  ;;  %v2753_v52 = vxor.u32 2147483648, %v8161_v29  ;;  %v9866_v40 = vrot.slane %v9857_v61, %v9839_v2  ;;  %v3399_v44 = vshrl.u32 %v9806_v19, %v3398_v32 }
 0x1dd   : > { %v3490_v22 = vshrl.u32 %v3489_v21, 23  ;;  %vm2752_vm3 = vcmp.eq.s32.totalorder %v8140_v49, 2  ;;  %v3402_v4 = vor.u32 %v3401_v36, %v3400_v31  ;;  %v3405_v28 = vor.u32 %v3404_v38, %v3403_v63 }
 0x1de   : > { %v8181_v35 = vmul.f32 0.5, %v9866_v40  ;;  %v3408_v51 = vor.u32 %v3407_v58, %v3406_v25  ;;  %v3411_v54 = vor.u32 %v3410_v3, %v3409_v13  ;;  %vm2749_vm2 = vcmp.eq.s32.totalorder %v8140_v49, 0 }
 0x1df   : > { %v2841_v24 = vxor.u32 2147483648, %v2840_v55  ;;  %v2932_v60 = vsub.s32 32, %v8156_v57  ;;  %vm3166_vm0 = vcmp.eq.s32.totalorder %v8151_v62, 2  ;;  %v3414_v11 = vor.u32 %v3413_v33, %v3412_v34 }
 0x1e0   : > { %vm3415_vm4 = vcmp.lt.s32.totalorder %v3396_v12, 1  ;;  %v2937_v40 = vadd.s32 127, %v2936_v26  ;;  %vm3417_vm6 = vcmp.lt.s32.totalorder %v3396_v12, 3  ;;  %vm3418_vm5 = vcmp.lt.s32.totalorder %v3396_v12, 4 }
 0x1e1   : > { %v3431_v32 = vshll.u32 %v3391_v14, 8  ;;  %vm3416_vm13 = vcmp.lt.s32.totalorder %v3396_v12, 2  ;;  %v3419_v21 = vsel %vm3415_vm4, %v3399_v44, %v3402_v4  ;;  %v3420_v53 = vsel %vm3418_vm5, %v3408_v51, 2102212464  ;;  %v5763_v58 = vpop.eup %5762 }
 0x1e2   : > { %v5487_v31 = vadd.s32 4294967169, %v3490_v22  ;;  %v3421_v63 = vsel %vm3417_vm6, %v3405_v28, %v3420_v53  ;;  %v3423_v25 = vsel %vm3415_vm4, %v3402_v4, %v3405_v28  ;;  %v3424_v36 = vsel %vm3418_vm5, %v3411_v54, 920167782 }
 0x1e3   : > { %v3427_v38 = vsel %vm3415_vm4, %v3405_v28, %v3408_v51  ;;  %v2933_v13 = vshll.u32 %v8095_v8, %v8156_v57  ;;  %v2934_v3 = vshrl.u32 %v2916_v6, %v2932_v60  ;;  %v3425_v34 = vsel %vm3417_vm6, %v3408_v51, %v3424_v36 }
 0x1e4   : > { %v3428_v26 = vsel %vm3418_vm5, %v3414_v11, 1326507024  ;;  %v2842_v14 = vsel %vm2759_vm11, %v2841_v24, %v2840_v55  ;;  %v2938_v33 = vshll.u32 %v2937_v40, 23  ;;  %v3426_v44 = vsel %vm3416_vm13, %v3423_v25, %v3425_v34 }
 0x1e5   : > { %v3429_v22 = vsel %vm3417_vm6, %v3411_v54, %v3428_v26  ;;  %vm3163_vm7 = vcmp.eq.s32.totalorder %v8151_v62, 0  ;;  %v3422_v53 = vsel %vm3416_vm13, %v3419_v21, %v3421_v63  ;;  %v2750_v6 = vxor.u32 2147483648, %v5763_v58 }
 0x1e6   : > { %v3430_v4 = vsel %vm3416_vm13, %v3427_v38, %v3429_v22  ;;  %v8199_v28 = vmul.u32.u64.low %v3431_v32, %v3426_v44  ;;  %v8200_v8 = vmul.u32.u64.high %v3431_v32, %v3426_v44, %v8199_v28  ;;  %v3496_v55 = vadd.s32 1, %v5487_v31 }
 0x1e7   : > { %v8203_v11 = vmul.u32.u64.low %v3431_v32, %v3430_v4  ;;  %v8204_v57 = vmul.u32.u64.high %v3431_v32, %v3430_v4, %v8203_v11  ;;  %v8209_v51 = vsel %vm8105_vm1, %v7641_v27, %v2842_v14  ;;  %vm2862_vm11 = vcmp.lt.s32.totalorder %v7807_v46, 0 }
 0x1e8   : > { %v2935_v54 = vor.u32 %v2934_v3, %v2933_v13  ;;  %v9867_v12 = vrot.slane %v9857_v61, %v9796_v41  ;;  %v9673_v60 = vand.u32 2147483647, %v8135_v56  ;;  %v2939_v40 = vor.u32 4788187, %v2938_v33 }
 0x1e9   : > { %v3438_v21 = vmul.u32 %v3431_v32, %v3422_v53  ;;  %vm3497_vm8 = vcmp.gt.s32.totalorder %v3496_v55, 0  ;;  %v3592_v31 = vand.u32 2139095040, %v8181_v35  ;;  %vm2748_vm9 = vcmp.lt.s32.totalorder %v8140_v49, 2 }
 0x1ea   : > { %v8215_v24 = vmul.f32 0.5, %v9867_v12  ;;  %v2754_v39 = vsel %vm2752_vm3, %v2753_v52, %v5763_v58  ;;  %v2946_v63 = vsub.s32 4, %v8064_v30  ;;  %v3441_v25 = vadd.s32 1, %v8200_v8 }
 0x1eb   : > { %v3498_v36 = vsel %vm3497_vm8, %v3496_v55, 0  ;;  %v2751_v61 = vsel %vm2749_vm2, %v8161_v29, %v2750_v6  ;;  %v3168_v32 = vsel %vm3166_vm0, %v2753_v52, %v5763_v58  ;;  %vm3440_vm1 = vc.u32 %v8204_v57, %v8199_v28 }
 0x1ec   : > { %v3500_v38 = vand.u32 31, %v3498_v36  ;;  %5764 = vcosq.f32 %v8209_v51  ;;  %v2942_v13 = vcvt.s32.f32 %v2935_v54  ;;  %v3442_v3 = vsel %vm3440_vm1, %v3441_v25, %v8200_v8 }
 0x1ed   : > { %v3493_v34 = vand.u32 8388607, %v9673_v60  ;;  %v9868_v26 = vand.u32 2147483647, %v7807_v46  ;;  %v2940_v33 = vand.u32 2147483647, %v2939_v40  ;;  %v3443_v52 = vadd.s32 %v3442_v3, %v3438_v21 }
 0x1ee   : > { %v3501_v58 = vsub.s32 32, %v3500_v38  ;;  %v3593_v44 = vshrl.u32 %v3592_v31, 23  ;;  %vm2746_vm12 = vweird.f32 %v9846_v10  ;;  %vm3162_vm14 = vcmp.lt.s32.totalorder %v8151_v62, 2 }
 0x1ef   : > { %vm8237_vm10 = vcmp.le.f32.partialorder %v9868_v26, 0.7853982  ;;  %v3499_v22 = vshrl.u32 %v3498_v36, 5  ;;  %v3503_v53 = vshll.u32 %v9806_v19, %v3500_v38  ;;  %v3509_v4 = vshll.u32 %v9808_v45, %v3500_v38 }
 0x1f0   : > { %v3512_v8 = vshll.u32 %v9809_v48, %v3500_v38  ;;  %v3444_v11 = vadd.s32 536870912, %v3443_v52  ;;  %v3504_v55 = vshrl.u32 %v9807_v18, %v3501_v58  ;;  %v3506_v54 = vshll.u32 %v9807_v18, %v3500_v38 }
 0x1f1   : > { %v3507_v12 = vshrl.u32 %v9808_v45, %v3501_v58  ;;  %v3510_v40 = vshrl.u32 %v9809_v48, %v3501_v58  ;;  %v3513_v21 = vshrl.u32 %v9810_v43, %v3501_v58  ;;  %v3515_v31 = vshll.u32 %v9810_v43, %v3500_v38 }
 0x1f2   : > { %v3516_v25 = vshrl.u32 %v9811_v1, %v3501_v58  ;;  %v2947_v36 = vsel %vm2862_vm11, %v2946_v63, %v8064_v30  ;;  %v3165_v3 = vsel %vm3163_vm7, %v8161_v29, %v2750_v6  ;;  %v8259_v26 = vshrl.u32 %v3444_v11, 30 }
 0x1f3   : > { %v3494_v60 = vor.u32 8388608, %v3493_v34  ;;  %v2943_v23 = vmul.f32 %v2942_v13, %v2940_v33  ;;  %v3511_v7 = vor.u32 %v3510_v40, %v3509_v4  ;;  %v3514_v59 = vor.u32 %v3513_v21, %v3512_v8 }
 0x1f4   : > { %vm3521_vm15 = vcmp.lt.s32.totalorder %v3499_v22, 4  ;;  %v3446_v9 = vshll.u32 %v8259_v26, 30  ;;  %v3502_v38 = vshrl.u32 %v9806_v19, %v3501_v58  ;;  %v3505_v17 = vor.u32 %v3504_v55, %v3503_v53 }
 0x1f5   : > { %v3508_v42 = vor.u32 %v3507_v12, %v3506_v54  ;;  %v3517_v5 = vor.u32 %v3516_v25, %v3515_v31  ;;  %vm3518_vm3 = vcmp.lt.s32.totalorder %v3499_v22, 1  ;;  %v3523_v30 = vsel %vm3521_vm15, %v3511_v7, 2102212464 }
 0x1f6   : > { %v5491_v63 = vadd.s32 4294967169, %v3593_v44  ;;  %v2755_v29 = vsel %vm2748_vm9, %v2751_v61, %v2754_v39  ;;  %v8266_v6 = vsub.s32 %v3443_v52, %v3446_v9  ;;  %vm3520_vm2 = vcmp.lt.s32.totalorder %v3499_v22, 3 }
 0x1f7   : > { %v3527_v13 = vsel %vm3521_vm15, %v3514_v59, 920167782  ;;  %v2944_v34 = vxor.u32 2147483648, %v2943_v23  ;;  %v2949_v33 = vsel %vm8237_vm10, 0, %v2947_v36  ;;  %vm3519_vm0 = vcmp.lt.s32.totalorder %v3499_v22, 2 }
 0x1f8   : > { %v3534_v58 = vshll.u32 %v3494_v60, 8  ;;  %v3449_v53 = vsub.s32 0, %v8266_v6  ;;  %v3522_v4 = vsel %vm3518_vm3, %v3502_v38, %v3505_v17  ;;  %v3524_v44 = vsel %vm3520_vm2, %v3508_v42, %v3523_v30 }
 0x1f9   : > { %v3526_v49 = vsel %vm3518_vm3, %v3505_v17, %v3508_v42  ;;  %v3528_v9 = vsel %vm3520_vm2, %v3511_v7, %v3527_v13  ;;  %v3530_v39 = vsel %vm3518_vm3, %v3508_v42, %v3511_v7  ;;  %v3531_v61 = vsel %vm3521_vm15, %v3517_v5, 1326507024  ;;  %v8278_v8 = vpop.eup %5764 }
 0x1fa   : > { %v3599_v52 = vadd.s32 1, %v5491_v63  ;;  %v8282_v60 = vsel %vm2746_vm12, nan, %v2755_v29  ;;  %5766 = vsinq.f32 %v8209_v51  ;;  %v3169_v11 = vsel %vm3162_vm14, %v3165_v3, %v3168_v32 }
 0x1fb   : > { %v5484_v17 = vmin.u32 %v3449_v53, %v8266_v6  ;;  %v2945_v55 = vsel %vm2862_vm11, %v2944_v34, %v2943_v23  ;;  %v3525_v42 = vsel %vm3519_vm0, %v3522_v4, %v3524_v44  ;;  %v3529_v7 = vsel %vm3519_vm0, %v3526_v49, %v3528_v9 }
 0x1fc   : > { %v3532_v5 = vsel %vm3520_vm2, %v3514_v59, %v3531_v61  ;;  %v8294_v40 = vmul.u32.u64.low %v3534_v58, %v3529_v7  ;;  %v8295_v21 = vmul.u32.u64.high %v3534_v58, %v3529_v7, %v8294_v40  ;;  %v8298_v62 = vand.u32 3, %v2949_v33 }
 0x1fd   : > { %v3451_v54 = vclz %v5484_v17  ;;  %v3533_v12 = vsel %vm3519_vm0, %v3530_v39, %v3532_v5  ;;  %vm3600_vm4 = vcmp.gt.s32.totalorder %v3599_v52, 0  ;;  %v2948_v23 = vsel %vm8237_vm10, %v7807_v46, %v2945_v55 }
 0x1fe   : > { %v8300_v51 = vmul.u32.u64.low %v3534_v58, %v3533_v12  ;;  %v8301_v32 = vmul.u32.u64.high %v3534_v58, %v3533_v12, %v8300_v51  ;;  %v8308_v59 = vsel %vm2746_vm12, nan, %v3169_v11  ;;  %v3601_v31 = vsel %vm3600_vm4, %v3599_v52, 0 }
 0x1ff   : > { %v5485_v22 = vadd.s32 4294967294, %v3451_v54  ;;  %v8310_v25 = vadd.s32 3, %v2949_v33  ;;  %v3541_v36 = vmul.u32 %v3534_v58, %v3525_v42  ;;  %v3589_v3 = vand.u32 2147483647, %v8181_v35 }
 0x200   : > { %v3603_v38 = vand.u32 31, %v3601_v31  ;;  %v2856_v30 = vxor.u32 2147483648, %v8278_v8  ;;  %v3439_v63 = vadd.s32 %v8199_v28, %v8204_v57  ;;  %v3544_v14 = vadd.s32 1, %v8295_v21 }
 0x201   : > { %vm5486_vm6 = vcmp.lt.s32.totalorder %v5485_v22, 0  ;;  %5768 = vcosq.f32 %v2948_v23  ;;  %vm3543_vm5 = vc.u32 %v8301_v32, %v8294_v40  ;;  %v3596_v53 = vand.u32 8388607, %v3589_v3 }
 0x202   : > { %v3454_v10 = vsel %vm5486_vm6, 0, %v5485_v22  ;;  %v3604_v29 = vsub.s32 32, %v3603_v38  ;;  %5770 = vsinq.f32 %v2948_v23  ;;  %v3545_v33 = vsel %vm3543_vm5, %v3544_v14, %v8295_v21 }
 0x203   : > { %v3455_v13 = vsub.s32 32, %v3454_v10  ;;  %v3459_v34 = vsub.s32 4294967266, %v3454_v10  ;;  %v3546_v58 = vadd.s32 %v3545_v33, %v3541_v36  ;;  %v8322_v4 = vshrl.u32 %v3601_v31, 5 }
 0x204   : > { %v3695_v28 = vand.u32 2139095040, %v8215_v24  ;;  %vm2855_vm13 = vcmp.eq.s32.totalorder %v8142_v37, 2  ;;  %v3456_v57 = vshll.u32 %v8266_v6, %v3454_v10  ;;  %v3606_v9 = vshll.u32 %v9806_v19, %v3603_v38 }
 0x205   : > { %v3457_v44 = vshrl.u32 %v3439_v63, %v3455_v13  ;;  %v3460_v49 = vadd.s32 127, %v3459_v34  ;;  %v3547_v39 = vadd.s32 536870912, %v3546_v58  ;;  %v3607_v61 = vshrl.u32 %v9807_v18, %v3604_v29 }
 0x206   : > { %v3609_v52 = vshll.u32 %v9807_v18, %v3603_v38  ;;  %v3610_v11 = vshrl.u32 %v9808_v45, %v3604_v29  ;;  %vm2852_vm7 = vcmp.eq.s32.totalorder %v8142_v37, 0  ;;  %v3612_v55 = vshll.u32 %v9808_v45, %v3603_v38 }
 0x207   : > { %v3461_v17 = vshll.u32 %v3460_v49, 23  ;;  %v3613_v42 = vshrl.u32 %v9809_v48, %v3604_v29  ;;  %v3615_v6 = vshll.u32 %v9809_v48, %v3603_v38  ;;  %v5767_v7 = vpop.eup %5766  ;;  %vm3267_vm11 = vcmp.eq.s32.totalorder %v8175_v47, 0 }
 0x208   : > { %vm3270_vm8 = vcmp.eq.s32.totalorder %v8175_v47, 2  ;;  %v8337_v5 = vshrl.u32 %v3547_v39, 30  ;;  %v3597_v54 = vor.u32 8388608, %v3596_v53  ;;  %v3616_v12 = vshrl.u32 %v9810_v43, %v3604_v29 }
 0x209   : > { %v3618_v21 = vshll.u32 %v9810_v43, %v3603_v38  ;;  %v3458_v51 = vor.u32 %v3457_v44, %v3456_v57  ;;  %v3462_v23 = vor.u32 4788187, %v3461_v17  ;;  %v3619_v22 = vshrl.u32 %v9811_v1, %v3604_v29 }
 0x20a   : > { %v3696_v31 = vshrl.u32 %v3695_v28, 23  ;;  %vm2851_vm9 = vcmp.lt.s32.totalorder %v8142_v37, 2  ;;  %v3549_v36 = vshll.u32 %v8337_v5, 30  ;;  %v3608_v63 = vor.u32 %v3607_v61, %v3606_v9 }
 0x20b   : > { %v3611_v14 = vor.u32 %v3610_v11, %v3609_v52  ;;  %v3617_v10 = vor.u32 %v3616_v12, %v3615_v6  ;;  %vm3266_vm1 = vcmp.lt.s32.totalorder %v8175_v47, 2  ;;  %v3614_v13 = vor.u32 %v3613_v42, %v3612_v55 }
 0x20c   : > { %v3620_v34 = vor.u32 %v3619_v22, %v3618_v21  ;;  %vm3621_vm10 = vcmp.lt.s32.totalorder %v8322_v4, 1  ;;  %vm3624_vm12 = vcmp.lt.s32.totalorder %v8322_v4, 4  ;;  %v2853_v38 = vxor.u32 2147483648, %v5767_v7 }
 0x20d   : > { %v8347_v33 = vsub.s32 %v3546_v58, %v3549_v36  ;;  %v3605_v53 = vshrl.u32 %v9806_v19, %v3604_v29  ;;  %vm3623_vm14 = vcmp.lt.s32.totalorder %v8322_v4, 3  ;;  %v3463_v28 = vand.u32 2147483647, %v3462_v23 }
 0x20e   : > { %v3465_v57 = vcvt.s32.f32 %v3458_v51  ;;  %vm3622_vm15 = vcmp.lt.s32.totalorder %v8322_v4, 2  ;;  %v5495_v44 = vadd.s32 4294967169, %v3696_v31  ;;  %vm2849_vm3 = vweird.f32 %v7641_v27  ;;  %v8360_v39 = vpop.eup %5768 }
 0x20f   : > { %v3552_v49 = vsub.s32 0, %v8347_v33  ;;  %v3626_v9 = vsel %vm3624_vm12, %v3614_v13, 2102212464  ;;  %v3629_v58 = vsel %vm3621_vm10, %v3608_v63, %v3611_v14  ;;  %v3630_v29 = vsel %vm3624_vm12, %v3617_v10, 920167782  ;;  %v8368_v55 = vpop.eup %5770 }
 0x210   : > { %v3631_v61 = vsel %vm3623_vm14, %v3614_v13, %v3630_v29  ;;  %v3633_v52 = vsel %vm3621_vm10, %v3611_v14, %v3614_v13  ;;  %v3634_v11 = vsel %vm3624_vm12, %v3620_v34, 1326507024  ;;  %v3637_v17 = vshll.u32 %v3597_v54, 8 }
 0x211   : > { %v2857_v42 = vsel %vm2855_vm13, %v2856_v30, %v5767_v7  ;;  %vm3385_vm2 = vcmp.lt.s32.totalorder %v8090_v16, 0  ;;  %v5488_v6 = vmin.u32 %v3552_v49, %v8347_v33  ;;  %v3625_v12 = vsel %vm3621_vm10, %v3605_v53, %v3608_v63 }
 0x212   : > { %v9871_v21 = vand.u32 2147483647, %v8090_v16  ;;  %v3466_v54 = vmul.f32 %v3465_v57, %v3463_v28  ;;  %v3627_v23 = vsel %vm3623_vm14, %v3611_v14, %v3626_v9  ;;  %v3632_v22 = vsel %vm3622_vm15, %v3629_v58, %v3631_v61 }
 0x213   : > { %v3635_v31 = vsel %vm3623_vm14, %v3617_v10, %v3634_v11  ;;  %v2854_v36 = vsel %vm2852_vm7, %v8278_v8, %v2853_v38  ;;  %v3554_v63 = vclz %v5488_v6  ;;  %v3702_v34 = vadd.s32 1, %v5495_v44 }
 0x214   : > { %vm8380_vm0 = vcmp.le.f32.partialorder %v9871_v21, 0.7853982  ;;  %v3636_v13 = vsel %vm3622_vm15, %v3633_v52, %v3635_v31  ;;  %v3269_v53 = vsel %vm3267_vm11, %v8278_v8, %v2853_v38  ;;  %v3272_v14 = vsel %vm3270_vm8, %v2856_v30, %v5767_v7 }
 0x215   : > { %v8402_v28 = vmul.u32.u64.low %v3637_v17, %v3636_v13  ;;  %v8403_v10 = vmul.u32.u64.high %v3637_v17, %v3636_v13, %v8402_v28  ;;  %v5489_v57 = vadd.s32 4294967294, %v3554_v63  ;;  %v3628_v49 = vsel %vm3622_vm15, %v3625_v12, %v3627_v23 }
 0x216   : > { %v8407_v9 = vmul.u32.u64.low %v3637_v17, %v3632_v22  ;;  %v8408_v58 = vmul.u32.u64.high %v3637_v17, %v3632_v22, %v8407_v9  ;;  %v2858_v44 = vsel %vm2851_vm9, %v2854_v36, %v2857_v42  ;;  %v8414_v38 = vand.u32 3, %v8310_v25 }
 0x217   : > { %v3467_v8 = vxor.u32 2147483648, %v3466_v54  ;;  %vm3703_vm4 = vcmp.gt.s32.totalorder %v3702_v34, 0  ;;  %v8418_v30 = vsel %vm3266_vm1, %v3269_v53, %v3272_v14  ;;  %v3542_v4 = vadd.s32 %v8294_v40, %v8301_v32 }
 0x218   : > { %vm5490_vm6 = vcmp.lt.s32.totalorder %v5489_v57, 0  ;;  %v3704_v7 = vsel %vm3703_vm4, %v3702_v34, 0  ;;  %v3644_v61 = vmul.u32 %v3637_v17, %v3628_v49  ;;  %vm3646_vm5 = vc.u32 %v8403_v10, %v8407_v9 }
 0x219   : > { %v3557_v29 = vsel %vm5490_vm6, 0, %v5489_v57  ;;  %v9681_v37 = vand.u32 2147483647, %v8215_v24  ;;  %v3647_v47 = vadd.s32 1, %v8408_v58  ;;  %v8429_v42 = vsel %vm2849_vm3, nan, %v2858_v44 }
 0x21a   : > { %v3558_v25 = vsub.s32 32, %v3557_v29  ;;  %v3559_v52 = vshll.u32 %v8347_v33, %v3557_v29  ;;  %v3562_v11 = vsub.s32 4294967266, %v3557_v29  ;;  %vm2958_vm13 = vcmp.eq.s32.totalorder %v8298_v62, 2 }
 0x21b   : > { %vm3374_vm7 = vcmp.eq.s32.totalorder %v8414_v38, 2  ;;  %v3468_v40 = vsel %vm3385_vm2, %v3467_v8, %v3466_v54  ;;  %v3469_v32 = vsub.s32 4, %v8259_v26  ;;  %v3706_v17 = vand.u32 31, %v3704_v7 }
 0x21c   : > { %v2959_v6 = vxor.u32 2147483648, %v8360_v39  ;;  %v3560_v33 = vshrl.u32 %v3542_v4, %v3558_v25  ;;  %v3563_v12 = vadd.s32 127, %v3562_v11  ;;  %v3648_v21 = vsel %vm3646_vm5, %v3647_v47, %v8408_v58 }
 0x21d   : > { %v2956_v23 = vxor.u32 2147483648, %v8368_v55  ;;  %v3649_v22 = vadd.s32 %v3648_v21, %v3644_v61  ;;  %v3699_v31 = vand.u32 8388607, %v9681_v37  ;;  %v3707_v36 = vsub.s32 32, %v3706_v17 }
 0x21e   : > { %vm2955_vm11 = vcmp.eq.s32.totalorder %v8298_v62, 0  ;;  %v3471_v54 = vsel %vm8380_vm0, %v8090_v16, %v3468_v40  ;;  %v3561_v63 = vor.u32 %v3560_v33, %v3559_v52  ;;  %v3564_v13 = vshll.u32 %v3563_v12, 23 }
 0x21f   : > { %v3709_v34 = vshll.u32 %v9806_v19, %v3706_v17  ;;  %v3650_v53 = vadd.s32 536870912, %v3649_v22  ;;  %v3710_v14 = vshrl.u32 %v9807_v18, %v3707_v36  ;;  %v3712_v28 = vshll.u32 %v9807_v18, %v3706_v17 }
 0x220   : > { %v3718_v57 = vshll.u32 %v9809_v48, %v3706_v17  ;;  %vm3488_vm8 = vcmp.lt.s32.totalorder %v8135_v56, 0  ;;  %v3565_v49 = vor.u32 4788187, %v3564_v13  ;;  %v3568_v58 = vcvt.s32.f32 %v3561_v63 }
 0x221   : > { %v3713_v44 = vshrl.u32 %v9808_v45, %v3707_v36  ;;  %v3719_v8 = vshrl.u32 %v9810_v43, %v3707_v36  ;;  %vm3371_vm9 = vcmp.eq.s32.totalorder %v8414_v38, 0  ;;  %v8453_v4 = vshrl.u32 %v3650_v53, 30 }
 0x222   : > { %v3705_v29 = vshrl.u32 %v3704_v7, 5  ;;  %v3715_v61 = vshll.u32 %v9808_v45, %v3706_v17  ;;  %v3716_v25 = vshrl.u32 %v9809_v48, %v3707_v36  ;;  %5772 = vcosq.f32 %v3471_v54 }
 0x223   : > { %v3566_v52 = vand.u32 2147483647, %v3565_v49  ;;  %v3721_v11 = vshll.u32 %v9810_v43, %v3706_v17  ;;  %v3722_v47 = vshrl.u32 %v9811_v1, %v3707_v36  ;;  %vm2954_vm1 = vcmp.lt.s32.totalorder %v8298_v62, 2 }
 0x224   : > { %v3470_v40 = vsel %vm3385_vm2, %v3469_v32, %v8259_v26  ;;  %5774 = vsinq.f32 %v3471_v54  ;;  %v9874_v33 = vand.u32 2147483647, %v8135_v56  ;;  %v3652_v12 = vshll.u32 %v8453_v4, 30 }
 0x225   : > { %v3700_v21 = vor.u32 8388608, %v3699_v31  ;;  %vm3370_vm12 = vcmp.lt.s32.totalorder %v8414_v38, 2  ;;  %v3569_v17 = vmul.f32 %v3568_v58, %v3566_v52  ;;  %v3711_v63 = vor.u32 %v3710_v14, %v3709_v34 }
 0x226   : > { %vm8465_vm10 = vcmp.le.f32.partialorder %v9874_v33, 0.7853982  ;;  %v3714_v13 = vor.u32 %v3713_v44, %v3712_v28  ;;  %v3720_v53 = vor.u32 %v3719_v8, %v3718_v57  ;;  %v8471_v49 = vsub.s32 %v3649_v22, %v3652_v12 }
 0x227   : > { %v3717_v37 = vor.u32 %v3716_v25, %v3715_v61  ;;  %vm3724_vm14 = vcmp.lt.s32.totalorder %v3705_v29, 1  ;;  %vm3727_vm15 = vcmp.lt.s32.totalorder %v3705_v29, 4  ;;  %v2960_v26 = vsel %vm2958_vm13, %v2959_v6, %v8368_v55 }
 0x228   : > { %v3376_v32 = vsel %vm3374_vm7, %v2959_v6, %v8368_v55  ;;  %v3708_v31 = vshrl.u32 %v9806_v19, %v3707_v36  ;;  %v3723_v54 = vor.u32 %v3722_v47, %v3721_v11  ;;  %vm2952_vm2 = vweird.f32 %v7807_v46 }
 0x229   : > { %v3570_v34 = vxor.u32 2147483648, %v3569_v17  ;;  %v3655_v22 = vsub.s32 0, %v8471_v49  ;;  %vm3726_vm4 = vcmp.lt.s32.totalorder %v3705_v29, 3  ;;  %v3729_v14 = vsel %vm3727_vm15, %v3717_v37, 2102212464 }
 0x22a   : > { %vm3725_vm6 = vcmp.lt.s32.totalorder %v3705_v29, 2  ;;  %v3732_v28 = vsel %vm3724_vm14, %v3711_v63, %v3714_v13  ;;  %v3733_v57 = vsel %vm3727_vm15, %v3720_v53, 920167782  ;;  %v3740_v58 = vshll.u32 %v3700_v21, 8 }
 0x22b   : > { %v2957_v6 = vsel %vm2955_vm11, %v8360_v39, %v2956_v23  ;;  %v3472_v36 = vsel %vm8380_vm0, 0, %v3470_v40  ;;  %v5492_v44 = vmin.u32 %v3655_v22, %v8471_v49  ;;  %v3736_v8 = vsel %vm3724_vm14, %v3714_v13, %v3717_v37 }
 0x22c   : > { %v3728_v61 = vsel %vm3724_vm14, %v3708_v31, %v3711_v63  ;;  %v3730_v25 = vsel %vm3726_vm4, %v3714_v13, %v3729_v14  ;;  %v3734_v52 = vsel %vm3726_vm4, %v3717_v37, %v3733_v57  ;;  %v3737_v11 = vsel %vm3727_vm15, %v3723_v54, 1326507024 }
 0x22d   : > { %v3571_v47 = vsel %vm3488_vm8, %v3570_v34, %v3569_v17  ;;  %v3657_v33 = vclz %v5492_v44  ;;  %v3735_v12 = vsel %vm3725_vm6, %v3732_v28, %v3734_v52  ;;  %v3738_v51 = vsel %vm3726_vm4, %v3720_v53, %v3737_v11 }
 0x22e   : > { %v3373_v40 = vsel %vm3371_vm9, %v8360_v39, %v2956_v23  ;;  %v3739_v21 = vsel %vm3725_vm6, %v3736_v8, %v3738_v51  ;;  %v8508_v63 = vmul.u32.u64.low %v3740_v58, %v3735_v12  ;;  %v8509_v37 = vmul.u32.u64.high %v3740_v58, %v3735_v12, %v8508_v63 }
 0x22f   : > { %v5493_v13 = vadd.s32 4294967294, %v3657_v33  ;;  %v3731_v17 = vsel %vm3725_vm6, %v3728_v61, %v3730_v25  ;;  %v8513_v31 = vmul.u32.u64.low %v3740_v58, %v3739_v21  ;;  %v8514_v54 = vmul.u32.u64.high %v3740_v58, %v3739_v21, %v8513_v31  ;;  %v8528_v34 = vpop.eup %5772 }
 0x230   : > { %v2961_v53 = vsel %vm2954_vm1, %v2957_v6, %v2960_v26  ;;  %v8521_v55 = vsel %vm2849_vm3, nan, %v8418_v30  ;;  %v8523_v39 = vand.u32 3, %v3472_v36  ;;  %v3574_v23 = vsel %vm8465_vm10, %v8135_v56, %v3571_v47 }
 0x231   : > { %v3377_v29 = vsel %vm3370_vm12, %v3373_v40, %v3376_v32  ;;  %v3572_v22 = vsub.s32 4, %v8337_v5  ;;  %v3645_v62 = vadd.s32 %v8407_v9, %v8403_v10  ;;  %vm5494_vm0 = vcmp.lt.s32.totalorder %v5493_v13, 0  ;;  %v8535_v27 = vpop.eup %5774 }
 0x232   : > { %vm3591_vm3 = vcmp.lt.s32.totalorder %v8181_v35, 0  ;;  %v3660_v30 = vsel %vm5494_vm0, 0, %v5493_v13  ;;  %v3747_v26 = vmul.u32 %v3740_v58, %v3731_v17  ;;  %v3750_v14 = vadd.s32 1, %v8509_v37 }
 0x233   : > { %v9877_v28 = vrot.slane %v7985_v20, %v9837_v15  ;;  %5776 = vcosq.f32 %v3574_v23  ;;  %v3661_v38 = vsub.s32 32, %v3660_v30  ;;  %v3662_v32 = vshll.u32 %v8471_v49, %v3660_v30 }
 0x234   : > { %v3665_v6 = vsub.s32 4294967266, %v3660_v30  ;;  %v8547_v10 = vsel %vm2952_vm2, nan, %v2961_v53  ;;  %5778 = vsinq.f32 %v3574_v23  ;;  %vm3749_vm5 = vc.u32 %v8514_v54, %v8508_v63 }
 0x235   : > { %v8542_v57 = vmul.f32 0.5, %v9877_v28  ;;  %v3888_v9 = vadd.s32 3, %v3472_v36  ;;  %vm3478_vm13 = vcmp.eq.s32.totalorder %v8523_v39, 0  ;;  %vm8554_vm7 = vcmp.le.f32.partialorder %v3589_v3, 0.7853982 }
 0x236   : > { %v3663_v44 = vshrl.u32 %v3645_v62, %v3661_v38  ;;  %v3666_v49 = vadd.s32 127, %v3665_v6  ;;  %v3751_v8 = vsel %vm3749_vm5, %v3750_v14, %v8509_v37  ;;  %vm3475_vm11 = vweird.f32 %v8090_v16 }
 0x237   : > { %v3482_v61 = vxor.u32 2147483648, %v8528_v34  ;;  %v3573_v36 = vsel %vm3488_vm8, %v3572_v22, %v8337_v5  ;;  %v3752_v25 = vadd.s32 %v3751_v8, %v3747_v26  ;;  %v4218_v52 = vand.u32 2139095040, %v8542_v57 }
 0x238   : > { %v3479_v3 = vxor.u32 2147483648, %v8535_v27  ;;  %v3664_v11 = vor.u32 %v3663_v44, %v3662_v32  ;;  %v3667_v47 = vshll.u32 %v3666_v49, 23  ;;  %v3675_v33 = vsub.s32 4, %v8453_v4 }
 0x239   : > { %vm3481_vm9 = vcmp.eq.s32.totalorder %v8523_v39, 2  ;;  %v3753_v12 = vadd.s32 536870912, %v3752_v25  ;;  %v3889_v51 = vand.u32 3, %v3888_v9  ;;  %v4219_v40 = vshrl.u32 %v4218_v52, 23 }
 0x23a   : > { %v3575_v21 = vsel %vm8465_vm10, 0, %v3573_v36  ;;  %v3668_v37 = vor.u32 4788187, %v3667_v47  ;;  %v3671_v13 = vcvt.s32.f32 %v3664_v11  ;;  %v9682_v5 = vand.u32 2147483647, %v8542_v57 }
 0x23b   : > { %v8573_v17 = vsel %vm2952_vm2, nan, %v3377_v29  ;;  %vm3477_vm8 = vcmp.lt.s32.totalorder %v8523_v39, 2  ;;  %v8576_v31 = vshrl.u32 %v3753_v12, 30  ;;  %v5515_v53 = vadd.s32 4294967169, %v4219_v40 }
 0x23c   : > { %v3480_v23 = vsel %vm3478_vm13, %v8528_v34, %v3479_v3  ;;  %v3483_v7 = vsel %vm3481_vm9, %v3482_v61, %v8535_v27  ;;  %v3669_v22 = vand.u32 2147483647, %v3668_v37  ;;  %v3676_v62 = vsel %vm3591_vm3, %v3675_v33, %v8453_v4 }
 0x23d   : > { %v8585_v30 = vand.u32 3, %v3575_v21  ;;  %v3755_v46 = vshll.u32 %v8576_v31, 30  ;;  %vm3891_vm1 = vcmp.eq.s32.totalorder %v3889_v51, 0  ;;  %v3992_v29 = vadd.s32 3, %v3575_v21 }
 0x23e   : > { %v3672_v26 = vmul.f32 %v3671_v13, %v3669_v22  ;;  %vm3894_vm10 = vcmp.eq.s32.totalorder %v3889_v51, 2  ;;  %v4222_v14 = vand.u32 8388607, %v9682_v5  ;;  %v4225_v39 = vadd.s32 1, %v5515_v53 }
 0x23f   : > { %v3484_v28 = vsel %vm3477_vm8, %v3480_v23, %v3483_v7  ;;  %v3678_v38 = vsel %vm8554_vm7, 0, %v3676_v62  ;;  %v8592_v32 = vsub.s32 %v3752_v25, %v3755_v46  ;;  %v9880_v4 = vrot.slane %v7985_v20, %v9838_v50 }
 0x240   : > { %v3673_v9 = vxor.u32 2147483648, %v3672_v26  ;;  %v8599_v44 = vand.u32 3, %v3678_v38  ;;  %vm3890_vm12 = vcmp.lt.s32.totalorder %v3889_v51, 2  ;;  %v9881_v49 = vrot.slane %v7985_v20, %v9839_v2  ;;  %v8606_v36 = vpop.eup %5776 }
 0x241   : > { %v8597_v6 = vmul.f32 0.5, %v9880_v4  ;;  %v3758_v52 = vsub.s32 0, %v8592_v32  ;;  %v3893_v25 = vsel %vm3891_vm1, %v8528_v34, %v3479_v3  ;;  %v3896_v11 = vsel %vm3894_vm10, %v3482_v61, %v8535_v27  ;;  %v8612_v47 = vpop.eup %5778 }
 0x242   : > { %v8604_v8 = vmul.f32 0.5, %v9881_v49  ;;  %vm4226_vm14 = vcmp.gt.s32.totalorder %v4225_v39, 0  ;;  %v8616_v33 = vsel %vm3475_vm11, nan, %v3484_v28  ;;  %v3674_v12 = vsel %vm3591_vm3, %v3673_v9, %v3672_v26 }
 0x243   : > { %v4223_v40 = vor.u32 8388608, %v4222_v14  ;;  %v4227_v21 = vsel %vm4226_vm14, %v4225_v39, 0  ;;  %v3677_v37 = vsel %vm8554_vm7, %v8181_v35, %v3674_v12  ;;  %v5496_v34 = vmin.u32 %v3758_v52, %v8592_v32 }
 0x244   : > { %v8624_v3 = vand.u32 3, %v3992_v29  ;;  %v8626_v27 = vadd.s32 3, %v3678_v38  ;;  %v3748_v13 = vadd.s32 %v8508_v63, %v8514_v54  ;;  %v8632_v53 = vsel %vm3890_vm12, %v3893_v25, %v3896_v11 }
 0x245   : > { %v8634_v23 = vshrl.u32 %v4227_v21, 5  ;;  %5780 = vcosq.f32 %v3677_v37  ;;  %v3760_v58 = vclz %v5496_v34  ;;  %v4229_v22 = vand.u32 31, %v4227_v21 }
 0x246   : > { %5782 = vsinq.f32 %v3677_v37  ;;  %v3778_v62 = vsub.s32 4, %v8576_v31  ;;  %v8639_v46 = vshll.u32 %v4223_v40, 8  ;;  %vm3581_vm4 = vcmp.eq.s32.totalorder %v8585_v30, 0 }
 0x247   : > { %vm4247_vm15 = vcmp.lt.s32.totalorder %v8634_v23, 1  ;;  %v5497_v29 = vadd.s32 4294967294, %v3760_v58  ;;  %v4230_v26 = vsub.s32 32, %v4229_v22  ;;  %v4232_v63 = vshll.u32 %v9806_v19, %v4229_v22 }
 0x248   : > { %v4235_v54 = vshll.u32 %v9807_v18, %v4229_v22  ;;  %v4238_v51 = vshll.u32 %v9808_v45, %v4229_v22  ;;  %v4241_v14 = vshll.u32 %v9809_v48, %v4229_v22  ;;  %v4244_v39 = vshll.u32 %v9810_v43, %v4229_v22 }
 0x249   : > { %vm4248_vm2 = vcmp.lt.s32.totalorder %v8634_v23, 2  ;;  %vm3584_vm6 = vcmp.eq.s32.totalorder %v8585_v30, 2  ;;  %vm3694_vm0 = vcmp.lt.s32.totalorder %v8215_v24, 0  ;;  %vm5498_vm3 = vcmp.lt.s32.totalorder %v5497_v29, 0 }
 0x24a   : > { %v4231_v28 = vshrl.u32 %v9806_v19, %v4230_v26  ;;  %v4233_v38 = vshrl.u32 %v9807_v18, %v4230_v26  ;;  %v4236_v4 = vshrl.u32 %v9808_v45, %v4230_v26  ;;  %v3763_v9 = vsel %vm5498_vm3, 0, %v5497_v29 }
 0x24b   : > { %vm3995_vm5 = vcmp.eq.s32.totalorder %v8624_v3, 0  ;;  %v4239_v49 = vshrl.u32 %v9809_v48, %v4230_v26  ;;  %v4242_v52 = vshrl.u32 %v9810_v43, %v4230_v26  ;;  %v4245_v25 = vshrl.u32 %v9811_v1, %v4230_v26 }
 0x24c   : > { %v3764_v11 = vsub.s32 32, %v3763_v9  ;;  %v3765_v12 = vshll.u32 %v8592_v32, %v3763_v9  ;;  %v3768_v40 = vsub.s32 4294967266, %v3763_v9  ;;  %v4234_v21 = vor.u32 %v4233_v38, %v4232_v63 }
 0x24d   : > { %vm3580_vm13 = vcmp.lt.s32.totalorder %v8585_v30, 2  ;;  %v9882_v37 = vand.u32 2147483647, %v8215_v24  ;;  %v4237_v58 = vor.u32 %v4236_v4, %v4235_v54  ;;  %v4240_v22 = vor.u32 %v4239_v49, %v4238_v51 }
 0x24e   : > { %v4243_v29 = vor.u32 %v4242_v52, %v4241_v14  ;;  %v4246_v5 = vor.u32 %v4245_v25, %v4244_v39  ;;  %v3766_v61 = vshrl.u32 %v3748_v13, %v3764_v11  ;;  %v3769_v7 = vadd.s32 127, %v3768_v40 }
 0x24f   : > { %vm8661_vm7 = vcmp.le.f32.partialorder %v9882_v37, 0.7853982  ;;  %vm3994_vm9 = vcmp.lt.s32.totalorder %v8624_v3, 2  ;;  %vm4249_vm8 = vcmp.lt.s32.totalorder %v8634_v23, 3  ;;  %vm4250_vm1 = vcmp.lt.s32.totalorder %v8634_v23, 4 }
 0x250   : > { %v4252_v32 = vsel %vm4250_vm1, %v4240_v22, 2102212464  ;;  %v4255_v26 = vsel %vm4247_vm15, %v4234_v21, %v4237_v58  ;;  %v4256_v63 = vsel %vm4250_vm1, %v4243_v29, 920167782  ;;  %v4321_v38 = vand.u32 2139095040, %v8597_v6 }
 0x251   : > { %v3767_v9 = vor.u32 %v3766_v61, %v3765_v12  ;;  %v3770_v54 = vshll.u32 %v3769_v7, 23  ;;  %v4251_v51 = vsel %vm4247_vm15, %v4231_v28, %v4234_v21  ;;  %v4257_v13 = vsel %vm4249_vm8, %v4240_v22, %v4256_v63 }
 0x252   : > { %vm3578_vm10 = vweird.f32 %v8135_v56  ;;  %v4253_v14 = vsel %vm4249_vm8, %v4237_v58, %v4252_v32  ;;  %v4258_v39 = vsel %vm4248_vm2, %v4255_v26, %v4257_v13  ;;  %v4259_v4 = vsel %vm4247_vm15, %v4237_v58, %v4240_v22  ;;  %v8685_v52 = vpop.eup %5780 }
 0x253   : > { %v4260_v49 = vsel %vm4250_vm1, %v4246_v5, 1326507024  ;;  %v3771_v61 = vor.u32 4788187, %v3770_v54  ;;  %v3774_v7 = vcvt.s32.f32 %v3767_v9  ;;  %vm3998_vm12 = vcmp.eq.s32.totalorder %v8624_v3, 2  ;;  %v8698_v40 = vpop.eup %5782 }
 0x254   : > { %v4261_v28 = vsel %vm4249_vm8, %v4243_v29, %v4260_v49  ;;  %vm3687_vm14 = vcmp.eq.s32.totalorder %v8599_v44, 2  ;;  %v3779_v25 = vsel %vm3694_vm0, %v3778_v62, %v8576_v31  ;;  %v4254_v37 = vsel %vm4248_vm2, %v4251_v51, %v4253_v14 }
 0x255   : > { %v4262_v11 = vsel %vm4248_vm2, %v4259_v4, %v4261_v28  ;;  %v8694_v5 = vmul.u32.u64.low %v8639_v46, %v4258_v39  ;;  %v8695_v12 = vmul.u32.u64.high %v8639_v46, %v4258_v39, %v8694_v5  ;;  %v3772_v21 = vand.u32 2147483647, %v3771_v61 }
 0x256   : > { %v8703_v58 = vmul.u32.u64.low %v8639_v46, %v4262_v11  ;;  %v8704_v22 = vmul.u32.u64.high %v8639_v46, %v4262_v11, %v8703_v58  ;;  %v9885_v31 = vxor.u32 2147483648, %v8612_v47  ;;  %v9886_v29 = vxor.u32 2147483648, %v8606_v36 }
 0x257   : > { %v9683_v26 = vand.u32 2147483647, %v8597_v6  ;;  %v4322_v23 = vshrl.u32 %v4321_v38, 23  ;;  %v3775_v63 = vmul.f32 %v3774_v7, %v3772_v21  ;;  %v3781_v9 = vsel %vm8661_vm7, 0, %v3779_v25 }
 0x258   : > { %v3583_v62 = vsel %vm3581_vm4, %v8606_v36, %v9885_v31  ;;  %v3586_v32 = vsel %vm3584_vm6, %v9886_v29, %v8612_v47  ;;  %v9887_v54 = vmov %v9885_v31  ;;  %v9888_v13 = vmov %v9886_v29 }
 0x259   : > { %v3997_v51 = vsel %vm3995_vm5, %v8606_v36, %v9887_v54  ;;  %v4000_v14 = vsel %vm3998_vm12, %v9888_v13, %v8612_v47  ;;  %v8730_v39 = vand.u32 3, %v8626_v27  ;;  %v4270_v38 = vmul.u32 %v8639_v46, %v4254_v37 }
 0x25a   : > { %v4273_v4 = vadd.s32 1, %v8695_v12  ;;  %v5519_v49 = vadd.s32 4294967169, %v4322_v23  ;;  %v3587_v61 = vsel %vm3580_vm13, %v3583_v62, %v3586_v32  ;;  %v3776_v7 = vxor.u32 2147483648, %v3775_v63 }
 0x25b   : > { %v8739_v28 = vsel %vm3475_vm11, nan, %v8632_v53  ;;  %v9889_v36 = vrot.slane %v7985_v20, %v9796_v41  ;;  %v4001_v27 = vsel %vm3994_vm9, %v3997_v51, %v4000_v14  ;;  %v4200_v46 = vadd.s32 3, %v3781_v9 }
 0x25c   : > { %vm4272_vm15 = vc.u32 %v8704_v22, %v8694_v5  ;;  %v4328_v30 = vadd.s32 1, %v5519_v49  ;;  %vm3684_vm2 = vcmp.eq.s32.totalorder %v8599_v44, 0  ;;  %v3688_v25 = vxor.u32 2147483648, %v8685_v52 }
 0x25d   : > { %v8744_v47 = vmul.f32 0.5, %v9889_v36  ;;  %v3777_v16 = vsel %vm3694_vm0, %v3776_v7, %v3775_v63  ;;  %v4274_v53 = vsel %vm4272_vm15, %v4273_v4, %v8695_v12  ;;  %v4325_v20 = vand.u32 8388607, %v9683_v26 }
 0x25e   : > { %vm4099_vm11 = vcmp.eq.s32.totalorder %v8730_v39, 0  ;;  %vm4102_vm4 = vcmp.eq.s32.totalorder %v8730_v39, 2  ;;  %v4275_v3 = vadd.s32 %v4274_v53, %v4270_v38  ;;  %vm4329_vm6 = vcmp.gt.s32.totalorder %v4328_v30, 0 }
 0x25f   : > { %v8761_v11 = vsel %vm3578_vm10, nan, %v3587_v61  ;;  %v8763_v21 = vand.u32 3, %v3781_v9  ;;  %v8767_v37 = vsel %vm3578_vm10, nan, %v4001_v27  ;;  %v4330_v12 = vsel %vm4329_vm6, %v4328_v30, 0 }
 0x260   : > { %v3780_v58 = vsel %vm8661_vm7, %v8215_v24, %v3777_v16  ;;  %v8772_v31 = vand.u32 3, %v4200_v46  ;;  %v4276_v62 = vadd.s32 536870912, %v4275_v3  ;;  %v4332_v29 = vand.u32 31, %v4330_v12 }
 0x261   : > { %v3685_v32 = vxor.u32 2147483648, %v8698_v40  ;;  %v3689_v23 = vsel %vm3687_vm14, %v3688_v25, %v8698_v40  ;;  %v4326_v63 = vor.u32 8388608, %v4325_v20  ;;  %v4424_v56 = vand.u32 2139095040, %v8604_v8 }
 0x262   : > { %vm3683_vm0 = vcmp.lt.s32.totalorder %v8599_v44, 2  ;;  %vm4098_vm3 = vcmp.lt.s32.totalorder %v8730_v39, 2  ;;  %v8781_v9 = vshrl.u32 %v4276_v62, 30  ;;  %v4331_v34 = vshrl.u32 %v4330_v12, 5 }
 0x263   : > { %v4333_v54 = vsub.s32 32, %v4332_v29  ;;  %v4335_v51 = vshll.u32 %v9806_v19, %v4332_v29  ;;  %5784 = vcosq.f32 %v3780_v58  ;;  %v4338_v13 = vshll.u32 %v9807_v18, %v4332_v29 }
 0x264   : > { %v4341_v14 = vshll.u32 %v9808_v45, %v4332_v29  ;;  %v4344_v38 = vshll.u32 %v9809_v48, %v4332_v29  ;;  %5786 = vsinq.f32 %v3780_v58  ;;  %v4278_v4 = vshll.u32 %v8781_v9, 30 }
 0x265   : > { %v4336_v49 = vshrl.u32 %v9807_v18, %v4333_v54  ;;  %v4347_v61 = vshll.u32 %v9810_v43, %v4332_v29  ;;  %v4339_v7 = vshrl.u32 %v9808_v45, %v4333_v54  ;;  %v4342_v36 = vshrl.u32 %v9809_v48, %v4333_v54 }
 0x266   : > { %v4345_v27 = vshrl.u32 %v9810_v43, %v4333_v54  ;;  %v4348_v46 = vshrl.u32 %v9811_v1, %v4333_v54  ;;  %vm3681_vm5 = vweird.f32 %v8181_v35  ;;  %v4104_v30 = vsel %vm4102_vm4, %v3688_v25, %v8698_v40 }
 0x267   : > { %v8798_v16 = vsub.s32 %v4275_v3, %v4278_v4  ;;  %v4337_v53 = vor.u32 %v4336_v49, %v4335_v51  ;;  %vm4350_vm13 = vcmp.lt.s32.totalorder %v4331_v34, 1  ;;  %v4334_v20 = vshrl.u32 %v9806_v19, %v4333_v54 }
 0x268   : > { %v4340_v12 = vor.u32 %v4339_v7, %v4338_v13  ;;  %v4343_v58 = vor.u32 %v4342_v36, %v4341_v14  ;;  %v4346_v62 = vor.u32 %v4345_v27, %v4344_v38  ;;  %v3686_v29 = vsel %vm3684_vm2, %v8685_v52, %v3685_v32 }
 0x269   : > { %v4101_v26 = vsel %vm4099_vm11, %v8685_v52, %v3685_v32  ;;  %v4281_v41 = vsub.s32 0, %v8798_v16  ;;  %v4349_v40 = vor.u32 %v4348_v46, %v4347_v61  ;;  %vm4217_vm7 = vcmp.lt.s32.totalorder %v8542_v57, 0 }
 0x26a   : > { %vm4352_vm9 = vcmp.lt.s32.totalorder %v4331_v34, 3  ;;  %vm4353_vm8 = vcmp.lt.s32.totalorder %v4331_v34, 4  ;;  %v4366_v25 = vshll.u32 %v4326_v63, 8  ;;  %v4425_v3 = vshrl.u32 %v4424_v56, 23 }
 0x26b   : > { %v5516_v54 = vmin.u32 %v4281_v41, %v8798_v16  ;;  %vm4351_vm1 = vcmp.lt.s32.totalorder %v4331_v34, 2  ;;  %v4358_v51 = vsel %vm4350_vm13, %v4337_v53, %v4340_v12  ;;  %v4362_v13 = vsel %vm4350_vm13, %v4340_v12, %v4343_v58 }
 0x26c   : > { %v4354_v14 = vsel %vm4350_vm13, %v4334_v20, %v4337_v53  ;;  %v4355_v38 = vsel %vm4353_vm8, %v4343_v58, 2102212464  ;;  %v4359_v52 = vsel %vm4353_vm8, %v4346_v62, 920167782  ;;  %v4363_v32 = vsel %vm4353_vm8, %v4349_v40, 1326507024 }
 0x26d   : > { %vm3790_vm10 = vcmp.eq.s32.totalorder %v8763_v21, 2  ;;  %v9890_v4 = vand.u32 2147483647, %v8542_v57  ;;  %v4283_v63 = vclz %v5516_v54  ;;  %v4356_v41 = vsel %vm4352_vm9, %v4340_v12, %v4355_v38 }
 0x26e   : > { %v4360_v56 = vsel %vm4352_vm9, %v4343_v58, %v4359_v52  ;;  %v4364_v61 = vsel %vm4352_vm9, %v4346_v62, %v4363_v32  ;;  %v3690_v7 = vsel %vm3683_vm0, %v3686_v29, %v3689_v23  ;;  %vm3787_vm14 = vcmp.eq.s32.totalorder %v8763_v21, 0 }
 0x26f   : > { %vm8816_vm12 = vcmp.le.f32.partialorder %v9890_v4, 0.7853982  ;;  %v4105_v36 = vsel %vm4098_vm3, %v4101_v26, %v4104_v30  ;;  %v4361_v27 = vsel %vm4351_vm1, %v4358_v51, %v4360_v56  ;;  %v4365_v46 = vsel %vm4351_vm1, %v4362_v13, %v4364_v61 }
 0x270   : > { %v5517_v53 = vadd.s32 4294967294, %v4283_v63  ;;  %v4301_v20 = vsub.s32 4, %v8781_v9  ;;  %v8831_v12 = vmul.u32.u64.low %v4366_v25, %v4365_v46  ;;  %v8832_v40 = vmul.u32.u64.high %v4366_v25, %v4365_v46, %v8831_v12  ;;  %v5785_v62 = vpop.eup %5784 }
 0x271   : > { %vm4203_vm15 = vcmp.eq.s32.totalorder %v8772_v31, 0  ;;  %v4357_v44 = vsel %vm4351_vm1, %v4354_v14, %v4356_v41  ;;  %v8836_v23 = vmul.u32.u64.low %v4366_v25, %v4361_v27  ;;  %v8837_v58 = vmul.u32.u64.high %v4366_v25, %v4361_v27, %v8836_v23  ;;  %v5787_v29 = vpop.eup %5786 }
 0x272   : > { %v4271_v26 = vadd.s32 %v8694_v5, %v8704_v22  ;;  %vm5518_vm2 = vcmp.lt.s32.totalorder %v5517_v53, 0  ;;  %v9685_v39 = vand.u32 2147483647, %v8604_v8  ;;  %v5523_v30 = vadd.s32 4294967169, %v4425_v3 }
 0x273   : > { %v8844_v54 = vsel %vm3681_vm5, nan, %v3690_v7  ;;  %v8848_v34 = vsel %vm3681_vm5, nan, %v4105_v36  ;;  %vm4206_vm11 = vcmp.eq.s32.totalorder %v8772_v31, 2  ;;  %v4286_v51 = vsel %vm5518_vm2, 0, %v5517_v53 }
 0x274   : > { %v4287_v13 = vsub.s32 32, %v4286_v51  ;;  %v4288_v14 = vshll.u32 %v8798_v16, %v4286_v51  ;;  %v4302_v5 = vsel %vm4217_vm7, %v4301_v20, %v8781_v9  ;;  %v4373_v22 = vmul.u32 %v4366_v25, %v4357_v44 }
 0x275   : > { %v3791_v3 = vxor.u32 2147483648, %v5785_v62  ;;  %v4291_v38 = vsub.s32 4294967266, %v4286_v51  ;;  %vm4375_vm4 = vc.u32 %v8832_v40, %v8836_v23  ;;  %v4376_v52 = vadd.s32 1, %v8837_v58 }
 0x276   : > { %v3788_v35 = vxor.u32 2147483648, %v5787_v29  ;;  %v4289_v32 = vshrl.u32 %v4271_v26, %v4287_v13  ;;  %v4428_v4 = vand.u32 8388607, %v9685_v39  ;;  %v4431_v63 = vadd.s32 1, %v5523_v30 }
 0x277   : > { %v4292_v41 = vadd.s32 127, %v4291_v38  ;;  %v8861_v16 = vsel %vm8816_vm12, 0, %v4302_v5  ;;  %v4377_v9 = vsel %vm4375_vm4, %v4376_v52, %v8837_v58  ;;  %v9688_v25 = vand.u32 2147483647, %v8744_v47 }
 0x278   : > { %v4290_v56 = vor.u32 %v4289_v32, %v4288_v14  ;;  %v4378_v61 = vadd.s32 %v4377_v9, %v4373_v22  ;;  %vm4432_vm6 = vcmp.gt.s32.totalorder %v4431_v63, 0  ;;  %v4527_v7 = vand.u32 2139095040, %v8744_v47 }
 0x279   : > { %v8868_v36 = vsel %vm3790_vm10, %v3791_v3, %v5787_v29  ;;  %v4293_v27 = vshll.u32 %v4292_v41, 23  ;;  %v8871_v46 = vand.u32 3, %v8861_v16  ;;  %v4433_v53 = vsel %vm4432_vm6, %v4431_v63, 0 }
 0x27a   : > { %v8875_v20 = vsel %vm3787_vm14, %v5785_v62, %v3788_v35  ;;  %v8879_v12 = vsel %vm4206_vm11, %v3791_v3, %v5787_v29  ;;  %v4379_v44 = vadd.s32 536870912, %v4378_v61  ;;  %v4435_v58 = vand.u32 31, %v4433_v53 }
 0x27b   : > { %v8883_v26 = vsel %vm4203_vm15, %v5785_v62, %v3788_v35  ;;  %v4294_v30 = vor.u32 4788187, %v4293_v27  ;;  %v4297_v51 = vcvt.s32.f32 %v4290_v56  ;;  %v4429_v13 = vor.u32 8388608, %v4428_v4 }
 0x27c   : > { %v4380_v14 = vshrl.u32 %v4379_v44, 30  ;;  %v4434_v5 = vshrl.u32 %v4433_v53, 5  ;;  %v4436_v22 = vsub.s32 32, %v4435_v58  ;;  %v4528_v38 = vshrl.u32 %v4527_v7, 23 }
 0x27d   : > { %v4295_v52 = vand.u32 2147483647, %v4294_v30  ;;  %v4438_v32 = vshll.u32 %v9806_v19, %v4435_v58  ;;  %v4441_v63 = vshll.u32 %v9807_v18, %v4435_v58  ;;  %v4444_v29 = vshll.u32 %v9808_v45, %v4435_v58 }
 0x27e   : > { %v4381_v3 = vshll.u32 %v4380_v14, 30  ;;  %v4439_v41 = vshrl.u32 %v9807_v18, %v4436_v22  ;;  %v4447_v62 = vshll.u32 %v9809_v48, %v4435_v58  ;;  %v4450_v35 = vshll.u32 %v9810_v43, %v4435_v58 }
 0x27f   : > { %v4298_v9 = vmul.f32 %v4297_v51, %v4295_v52  ;;  %v4442_v4 = vshrl.u32 %v9808_v45, %v4436_v22  ;;  %v4445_v56 = vshrl.u32 %v9809_v48, %v4436_v22  ;;  %v4448_v7 = vshrl.u32 %v9810_v43, %v4436_v22 }
 0x280   : > { %vm4320_vm0 = vcmp.lt.s32.totalorder %v8597_v6, 0  ;;  %v4374_v27 = vadd.s32 %v8836_v23, %v8832_v40  ;;  %v8896_v53 = vsub.s32 %v4378_v61, %v4381_v3  ;;  %v4451_v44 = vshrl.u32 %v9811_v1, %v4436_v22 }
 0x281   : > { %v8899_v30 = vshll.u32 %v4429_v13, 8  ;;  %v4299_v39 = vxor.u32 2147483648, %v4298_v9  ;;  %v4437_v58 = vshrl.u32 %v9806_v19, %v4436_v22  ;;  %v5527_v51 = vadd.s32 4294967169, %v4528_v38 }
 0x282   : > { %v8904_v52 = vand.u32 8388607, %v9688_v25  ;;  %vm3786_vm3 = vcmp.lt.s32.totalorder %v8763_v21, 2  ;;  %vm4202_vm5 = vcmp.lt.s32.totalorder %v8772_v31, 2  ;;  %v4384_v40 = vsub.s32 0, %v8896_v53 }
 0x283   : > { %v4440_v23 = vor.u32 %v4439_v41, %v4438_v32  ;;  %v4443_v61 = vor.u32 %v4442_v4, %v4441_v63  ;;  %v4446_v3 = vor.u32 %v4445_v56, %v4444_v29  ;;  %v4300_v13 = vsel %vm4217_vm7, %v4299_v39, %v4298_v9 }
 0x284   : > { %v4449_v2 = vor.u32 %v4448_v7, %v4447_v62  ;;  %v4452_v50 = vor.u32 %v4451_v44, %v4450_v35  ;;  %vm4453_vm13 = vcmp.lt.s32.totalorder %v4434_v5, 1  ;;  %v4303_v22 = vsel %vm8816_vm12, %v8542_v57, %v4300_v13 }
 0x285   : > { %v5520_v38 = vmin.u32 %v4384_v40, %v8896_v53  ;;  %v4404_v25 = vsub.s32 4, %v4380_v14  ;;  %vm4454_vm9 = vcmp.lt.s32.totalorder %v4434_v5, 2  ;;  %5788 = vcosq.f32 %v4303_v22 }
 0x286   : > { %vm4455_vm8 = vcmp.lt.s32.totalorder %v4434_v5, 3  ;;  %vm4456_vm1 = vcmp.lt.s32.totalorder %v4434_v5, 4  ;;  %v4457_v32 = vsel %vm4453_vm13, %v4437_v58, %v4440_v23  ;;  %5790 = vsinq.f32 %v4303_v22 }
 0x287   : > { %v9893_v63 = vand.u32 2147483647, %v8597_v6  ;;  %v4386_v29 = vclz %v5520_v38  ;;  %v4458_v41 = vsel %vm4456_vm1, %v4446_v3, 2102212464  ;;  %v4461_v49 = vsel %vm4453_vm13, %v4440_v23, %v4443_v61 }
 0x288   : > { %v4459_v62 = vsel %vm4455_vm8, %v4443_v61, %v4458_v41  ;;  %v4462_v35 = vsel %vm4456_vm1, %v4449_v2, 920167782  ;;  %v4465_v9 = vsel %vm4453_vm13, %v4443_v61, %v4446_v3  ;;  %v4466_v4 = vsel %vm4456_vm1, %v4452_v50, 1326507024 }
 0x289   : > { %vm8918_vm7 = vcmp.le.f32.partialorder %v9893_v63, 0.7853982  ;;  %v5521_v56 = vadd.s32 4294967294, %v4386_v29  ;;  %v4463_v7 = vsel %vm4455_vm8, %v4446_v3, %v4462_v35  ;;  %v4467_v44 = vsel %vm4455_vm8, %v4449_v2, %v4466_v4 }
 0x28a   : > { %v4720_v58 = vadd.s32 3, %v8861_v16  ;;  %v4405_v40 = vsel %vm4320_vm0, %v4404_v25, %v4380_v14  ;;  %v4464_v13 = vsel %vm4454_vm9, %v4461_v49, %v4463_v7  ;;  %v4468_v22 = vsel %vm4454_vm9, %v4465_v9, %v4467_v44 }
 0x28b   : > { %v4534_v38 = vadd.s32 1, %v5527_v51  ;;  %vm5522_vm10 = vcmp.lt.s32.totalorder %v5521_v56, 0  ;;  %v4460_v23 = vsel %vm4454_vm9, %v4457_v32, %v4459_v62  ;;  %v8944_v5 = vsel %vm3786_vm3, %v8875_v20, %v8868_v36 }
 0x28c   : > { %v8931_v63 = vmul.u32.u64.low %v8899_v30, %v4468_v22  ;;  %v8932_v61 = vmul.u32.u64.high %v8899_v30, %v4468_v22, %v8931_v63  ;;  %v4389_v50 = vsel %vm5522_vm10, 0, %v5521_v56  ;;  %v8950_v51 = vsel %vm4202_vm5, %v8883_v26, %v8879_v12 }
 0x28d   : > { %v8935_v2 = vmul.u32.u64.low %v8899_v30, %v4464_v13  ;;  %v8936_v3 = vmul.u32.u64.high %v8899_v30, %v4464_v13, %v8935_v2  ;;  %vm4535_vm12 = vcmp.gt.s32.totalorder %v4534_v38, 0  ;;  %v4390_v16 = vsub.s32 32, %v4389_v50 }
 0x28e   : > { %v4391_v25 = vshll.u32 %v8896_v53, %v4389_v50  ;;  %v4394_v14 = vsub.s32 4294967266, %v4389_v50  ;;  %v4536_v29 = vsel %vm4535_vm12, %v4534_v38, 0  ;;  %vm4310_vm14 = vcmp.eq.s32.totalorder %v8871_v46, 0 }
 0x28f   : > { %vm4313_vm15 = vcmp.eq.s32.totalorder %v8871_v46, 2  ;;  %v4538_v32 = vand.u32 31, %v4536_v29  ;;  %v4392_v53 = vshrl.u32 %v4374_v27, %v4390_v16  ;;  %v4476_v49 = vmul.u32 %v8899_v30, %v4460_v23 }
 0x290   : > { %v4395_v41 = vadd.s32 127, %v4394_v14  ;;  %vm4478_vm2 = vc.u32 %v8932_v61, %v8935_v2  ;;  %v8959_v21 = vsel %vm8918_vm7, 0, %v4405_v40  ;;  %v4479_v31 = vadd.s32 1, %v8936_v3 }
 0x291   : > { %v4532_v36 = vor.u32 8388608, %v8904_v52  ;;  %v4539_v20 = vsub.s32 32, %v4538_v32  ;;  %v4393_v12 = vor.u32 %v4392_v53, %v4391_v25  ;;  %v8964_v62 = vand.u32 3, %v8959_v21 }
 0x292   : > { %v4396_v26 = vshll.u32 %v4395_v41, 23  ;;  %v8966_v27 = vand.u32 3, %v4720_v58  ;;  %v4480_v30 = vsel %vm4478_vm2, %v4479_v31, %v8936_v3  ;;  %v4541_v35 = vshll.u32 %v9806_v19, %v4538_v32  ;;  %v8972_v56 = vpop.eup %5788 }
 0x293   : > { %v4544_v9 = vshll.u32 %v9807_v18, %v4538_v32  ;;  %v4547_v4 = vshll.u32 %v9808_v45, %v4538_v32  ;;  %v4400_v52 = vcvt.s32.f32 %v4393_v12  ;;  %v4481_v44 = vadd.s32 %v4480_v30, %v4476_v49  ;;  %v8975_v13 = vpop.eup %5790 }
 0x294   : > { %v4397_v7 = vor.u32 4788187, %v4396_v26  ;;  %v4550_v40 = vshll.u32 %v9809_v48, %v4538_v32  ;;  %vm4309_vm11 = vcmp.lt.s32.totalorder %v8871_v46, 2  ;;  %v4542_v58 = vshrl.u32 %v9807_v18, %v4539_v20 }
 0x295   : > { %v4545_v22 = vshrl.u32 %v9808_v45, %v4539_v20  ;;  %v4548_v38 = vshrl.u32 %v9809_v48, %v4539_v20  ;;  %v4551_v23 = vshrl.u32 %v9810_v43, %v4539_v20  ;;  %v4311_v63 = vxor.u32 2147483648, %v8975_v13 }
 0x296   : > { %v4314_v50 = vxor.u32 2147483648, %v8972_v56  ;;  %v4398_v3 = vand.u32 2147483647, %v4397_v7  ;;  %v4482_v16 = vadd.s32 536870912, %v4481_v44  ;;  %vm4423_vm4 = vcmp.lt.s32.totalorder %v8604_v8, 0 }
 0x297   : > { %v4537_v25 = vshrl.u32 %v4536_v29, 5  ;;  %v4553_v14 = vshll.u32 %v9810_v43, %v4538_v32  ;;  %v4554_v53 = vshrl.u32 %v9811_v1, %v4539_v20  ;;  %v8987_v18 = vshll.u32 %v4532_v36, 8 }
 0x298   : > { %v4401_v45 = vmul.f32 %v4400_v52, %v4398_v3  ;;  %v4483_v41 = vshrl.u32 %v4482_v16, 30  ;;  %v4540_v48 = vshrl.u32 %v9806_v19, %v4539_v20  ;;  %vm4723_vm6 = vcmp.eq.s32.totalorder %v8966_v27, 0 }
 0x299   : > { %vm3784_vm3 = vweird.f32 %v8215_v24  ;;  %v4543_v49 = vor.u32 %v4542_v58, %v4541_v35  ;;  %v4546_v31 = vor.u32 %v4545_v22, %v4544_v9  ;;  %v4549_v12 = vor.u32 %v4548_v38, %v4547_v4 }
 0x29a   : > { %v4552_v26 = vor.u32 %v4551_v23, %v4550_v40  ;;  %vm4307_vm5 = vweird.f32 %v8542_v57  ;;  %v4312_v1 = vsel %vm4310_vm14, %v8972_v56, %v4311_v63  ;;  %v4315_v43 = vsel %vm4313_vm15, %v4314_v50, %v8975_v13 }
 0x29b   : > { %v4402_v29 = vxor.u32 2147483648, %v4401_v45  ;;  %v4484_v19 = vshll.u32 %v4483_v41, 30  ;;  %v4555_v32 = vor.u32 %v4554_v53, %v4553_v14  ;;  %vm4556_vm13 = vcmp.lt.s32.totalorder %v4537_v25, 1 }
 0x29c   : > { %vm4558_vm9 = vcmp.lt.s32.totalorder %v4537_v25, 3  ;;  %vm4559_vm8 = vcmp.lt.s32.totalorder %v4537_v25, 4  ;;  %vm4722_vm1 = vcmp.lt.s32.totalorder %v8966_v27, 2  ;;  %v4507_v30 = vsub.s32 4, %v4483_v41 }
 0x29d   : > { %v4403_v36 = vsel %vm4320_vm0, %v4402_v29, %v4401_v45  ;;  %v9002_v20 = vsub.s32 %v4481_v44, %v4484_v19  ;;  %v4561_v35 = vsel %vm4559_vm8, %v4549_v12, 2102212464  ;;  %v9896_v4 = vand.u32 2147483647, %v8604_v8 }
 0x29e   : > { %v4406_v9 = vsel %vm8918_vm7, %v8597_v6, %v4403_v36  ;;  %v4560_v52 = vsel %vm4556_vm13, %v4540_v48, %v4543_v49  ;;  %v4562_v40 = vsel %vm4558_vm9, %v4546_v31, %v4561_v35  ;;  %v4565_v44 = vsel %vm4559_vm8, %v4552_v26, 920167782 }
 0x29f   : > { %vm9010_vm10 = vcmp.le.f32.partialorder %v9896_v4, 0.7853982  ;;  %5792 = vcosq.f32 %v4406_v9  ;;  %v4487_v58 = vsub.s32 0, %v9002_v20  ;;  %vm4557_vm0 = vcmp.lt.s32.totalorder %v4537_v25, 2 }
 0x2a0   : > { %v4564_v22 = vsel %vm4556_vm13, %v4543_v49, %v4546_v31  ;;  %5794 = vsinq.f32 %v4406_v9  ;;  %v4566_v39 = vsel %vm4558_vm9, %v4549_v12, %v4565_v44  ;;  %v4568_v38 = vsel %vm4556_vm13, %v4546_v31, %v4549_v12 }
 0x2a1   : > { %v4569_v23 = vsel %vm4559_vm8, %v4555_v32, 1326507024  ;;  %v4316_v3 = vsel %vm4309_vm11, %v4312_v1, %v4315_v43  ;;  %v5524_v16 = vmin.u32 %v4487_v58, %v9002_v20  ;;  %v4508_v14 = vsel %vm4423_vm4, %v4507_v30, %v4483_v41 }
 0x2a2   : > { %v4563_v53 = vsel %vm4557_vm0, %v4560_v52, %v4562_v40  ;;  %v4567_v45 = vsel %vm4557_vm0, %v4564_v22, %v4566_v39  ;;  %v4570_v48 = vsel %vm4558_vm9, %v4552_v26, %v4569_v23  ;;  %v4725_v49 = vsel %vm4723_vm6, %v8972_v56, %v4311_v63 }
 0x2a3   : > { %vm4726_vm7 = vcmp.eq.s32.totalorder %v8966_v27, 2  ;;  %v4489_v31 = vclz %v5524_v16  ;;  %v4571_v12 = vsel %vm4557_vm0, %v4568_v38, %v4570_v48  ;;  %v4824_v26 = vadd.s32 3, %v8959_v21  ;;  %v9902_v48 = vld [vmem:[#allocation20_spill] sm:$0xff] }
 0x2a4   : > { %v9033_v46 = vmul.u32.u64.low %v8987_v18, %v4567_v45  ;;  %v9034_v1 = vmul.u32.u64.high %v8987_v18, %v4567_v45, %v9033_v46  ;;  %v9038_v43 = vmul.u32.u64.low %v8987_v18, %v4571_v12  ;;  %v9039_v41 = vmul.u32.u64.high %v8987_v18, %v4571_v12, %v9038_v43 }
 0x2a5   : > { %v4728_v25 = vsel %vm4726_vm7, %v4314_v50, %v8975_v13  ;;  %v9046_v56 = vsel %vm3784_vm3, nan, %v8944_v5  ;;  %v9051_v63 = vsel %vm3784_vm3, nan, %v8950_v51  ;;  %vm4413_vm12 = vcmp.eq.s32.totalorder %v8964_v62, 0 }
 0x2a6   : > { %v5525_v29 = vadd.s32 4294967294, %v4489_v31  ;;  %v9056_v19 = vsel %vm4307_vm5, nan, %v4316_v3  ;;  %vm4412_vm14 = vcmp.lt.s32.totalorder %v8964_v62, 2  ;;  %vm4416_vm15 = vcmp.eq.s32.totalorder %v8964_v62, 2 }
 0x2a7   : > { %v4477_v5 = vadd.s32 %v8935_v2, %v8932_v61  ;;  %v4579_v21 = vmul.u32 %v8987_v18, %v4563_v53  ;;  %vm4410_vm2 = vweird.f32 %v8597_v6  ;;  %v4510_v24 = vsel %vm9010_vm10, 0, %v4508_v14 }
 0x2a8   : > { %vm5526_vm11 = vcmp.lt.s32.totalorder %v5525_v29, 0  ;;  %v4582_v51 = vadd.s32 1, %v9034_v1  ;;  %v4729_v13 = vsel %vm4722_vm1, %v4725_v49, %v4728_v25  ;;  %v9069_v32 = vand.u32 3, %v4510_v24 }
 0x2a9   : > { %v4492_v50 = vsel %vm5526_vm11, 0, %v5525_v29  ;;  %vm4581_vm6 = vc.u32 %v9039_v41, %v9033_v46  ;;  %v4825_v61 = vand.u32 3, %v4824_v26  ;;  %vm4526_vm3 = vcmp.lt.s32.totalorder %v8744_v47, 0 }
 0x2aa   : > { %v4493_v2 = vsub.s32 32, %v4492_v50  ;;  %v4494_v18 = vshll.u32 %v9002_v20, %v4492_v50  ;;  %v4497_v36 = vsub.s32 4294967266, %v4492_v50  ;;  %v4583_v30 = vsel %vm4581_vm6, %v4582_v51, %v9034_v1 }
 0x2ab   : > { %v9899_v35 = vand.u32 2147483647, %v8744_v47  ;;  %v4584_v9 = vadd.s32 %v4583_v30, %v4579_v21  ;;  %v9084_v4 = vsel %vm4307_vm5, nan, %v4729_v13  ;;  %v4928_v52 = vadd.s32 3, %v4510_v24 }
 0x2ac   : > { %v9088_v20 = vmul.f32 %v8616_v33, %v8146_v0  ;;  %v4495_v40 = vshrl.u32 %v4477_v5, %v4493_v2  ;;  %v4498_v44 = vadd.s32 127, %v4497_v36  ;;  %v9092_v58 = vmul.f32 %v8761_v11, %v8282_v60  ;;  %v5793_v39 = vpop.eup %5792 }
 0x2ad   : > { %vm9078_vm13 = vcmp.le.f32.partialorder %v9899_v35, 0.7853982  ;;  %v9096_v22 = vmul.f32 %v8844_v54, %v8429_v42  ;;  %v4585_v38 = vadd.s32 536870912, %v4584_v9  ;;  %vm4826_vm9 = vcmp.lt.s32.totalorder %v4825_v61, 2  ;;  %v5795_v57 = vpop.eup %5794 }
 0x2ae   : > { %vm4827_vm5 = vcmp.eq.s32.totalorder %v4825_v61, 0  ;;  %vm4830_vm8 = vcmp.eq.s32.totalorder %v4825_v61, 2  ;;  %v4417_v23 = vxor.u32 2147483648, %v5793_v39  ;;  %v4496_v3 = vor.u32 %v4495_v40, %v4494_v18 }
 0x2af   : > { %v4499_v16 = vshll.u32 %v4498_v44, 23  ;;  %v5047_v14 = vmul.f32 %v9088_v20, %v9056_v19  ;;  %v4414_v53 = vxor.u32 2147483648, %v5795_v57  ;;  %v4586_v45 = vshrl.u32 %v4585_v38, 30 }
 0x2b0   : > { %v9102_v49 = vmul.f32 %v8739_v28, %v9902_v48  ;;  %v9106_v31 = vmul.f32 %v8767_v37, %v8308_v59  ;;  %v4418_v12 = vsel %vm4416_vm15, %v4417_v23, %v5795_v57  ;;  %v4503_v43 = vcvt.s32.f32 %v4496_v3 }
 0x2b1   : > { %v4500_v1 = vor.u32 4788187, %v4499_v16  ;;  %v4832_v25 = vsel %vm4830_vm8, %v4417_v23, %v5795_v57  ;;  %v4415_v26 = vsel %vm4413_vm12, %v5793_v39, %v4414_v53  ;;  %v4587_v29 = vshll.u32 %v4586_v45, 30 }
 0x2b2   : > { %v4610_v5 = vsub.s32 4, %v4586_v45  ;;  %v4829_v21 = vsel %vm4827_vm5, %v5793_v39, %v4414_v53  ;;  %v4419_v24 = vsel %vm4412_vm14, %v4415_v26, %v4418_v12  ;;  %v5055_v50 = vmul.f32 %v9102_v49, %v9084_v4 }
 0x2b3   : > { %v4501_v51 = vand.u32 2147483647, %v4500_v1  ;;  %v4833_v13 = vsel %vm4826_vm9, %v4829_v21, %v4832_v25  ;;  %v4420_v2 = vsel %vm4410_vm2, nan, %v4419_v24  ;;  %v9120_v18 = vsub.s32 %v4584_v9, %v4587_v29 }
 0x2b4   : > { %v4611_v36 = vsel %vm4526_vm3, %v4610_v5, %v4586_v45  ;;  %v4834_v30 = vsel %vm4410_vm2, nan, %v4833_v13  ;;  %v5048_v61 = vmul.f32 %v9092_v58, %v4420_v2  ;;  %v9131_v39 = vand.u32 3, %v4928_v52 }
 0x2b5   : > { %v4504_v35 = vmul.f32 %v4503_v43, %v4501_v51  ;;  %v4613_v62 = vsel %vm9078_vm13, 0, %v4611_v36  ;;  %v5056_v40 = vmul.f32 %v9106_v31, %v4834_v30  ;;  %v4590_v44 = vsub.s32 0, %v9120_v18 }
 0x2b6   : > { %v5032_v9 = vadd.s32 3, %v4613_v62  ;;  %v9135_v38 = vmul.f32 %v9046_v56, %v8547_v10  ;;  %v4580_v6 = vadd.s32 %v9033_v46, %v9039_v41  ;;  %v5063_v23 = vmul.f32 %v8616_v33, %v9902_v48 }
 0x2b7   : > { %v4505_v57 = vxor.u32 2147483648, %v4504_v35  ;;  %v5064_v3 = vmul.f32 %v8761_v11, %v8308_v59  ;;  %v5528_v16 = vmin.u32 %v4590_v44, %v9120_v18  ;;  %v9146_v52 = vmul.f32 %v8848_v34, %v8521_v55 }
 0x2b8   : > { %v9150_v53 = vmul.f32 %v9051_v63, %v8573_v17  ;;  %v9152_v45 = vadd.f32 %v5055_v50, %v5047_v14  ;;  %v9156_v41 = vand.u32 3, %v4613_v62  ;;  %v9158_v33 = vadd.f32 %v5056_v40, %v5048_v61 }
 0x2b9   : > { %v4506_v46 = vsel %vm4423_vm4, %v4505_v57, %v4504_v35  ;;  %v9162_v59 = vmul.f32 %v8844_v54, %v8521_v55  ;;  %v4592_v48 = vclz %v5528_v16  ;;  %v9167_v12 = vand.u32 3, %v5032_v9 }
 0x2ba   : > { %v4509_v11 = vsel %vm9010_vm10, %v8604_v8, %v4506_v46  ;;  %v5071_v14 = vmul.f32 %v8739_v28, %v8146_v0  ;;  %v9173_v1 = vmul.f32 %v9046_v56, %v8573_v17  ;;  %v5067_v43 = vmul.f32 %v5063_v23, %v9056_v19 }
 0x2bb   : > { %5796 = vcosq.f32 %v4509_v11  ;;  %v5068_v25 = vmul.f32 %v5064_v3, %v4420_v2  ;;  %v5529_v55 = vadd.s32 4294967294, %v4592_v48  ;;  %v5072_v54 = vmul.f32 %v8767_v37, %v8282_v60 }
 0x2bc   : > { %5798 = vsinq.f32 %v4509_v11  ;;  %v9180_v7 = vmul.f32 %v8848_v34, %v8429_v42  ;;  %v9184_v0 = vmul.f32 %v9051_v63, %v8547_v10  ;;  %v5075_v28 = vmul.f32 %v5071_v14, %v9084_v4 }
 0x2bd   : > { %v5083_v17 = vmul.f32 %v5071_v14, %v9056_v19  ;;  %v5087_v56 = vmul.f32 %v5063_v23, %v9084_v4  ;;  %vm5530_vm4 = vcmp.lt.s32.totalorder %v5529_v55, 0  ;;  %v5076_v26 = vmul.f32 %v5072_v54, %v4834_v30 }
 0x2be   : > { %v5084_v29 = vmul.f32 %v5072_v54, %v4420_v2  ;;  %v5088_v5 = vmul.f32 %v5064_v3, %v4834_v30  ;;  %v4595_v21 = vsel %vm5530_vm4, 0, %v5529_v55  ;;  %v9189_v60 = vsub.f32 %v5067_v43, %v5075_v28 }
 0x2bf   : > { %v5091_v37 = vadd.f32 %v5087_v56, %v5083_v17  ;;  %v5095_v42 = vmul.f32 %v9088_v20, %v9084_v4  ;;  %vm4519_vm1 = vcmp.eq.s32.totalorder %v9069_v32, 2  ;;  %v4596_v10 = vsub.s32 32, %v4595_v21 }
 0x2c0   : > { %v4597_v34 = vshll.u32 %v9120_v18, %v4595_v21  ;;  %v4600_v63 = vsub.s32 4294967266, %v4595_v21  ;;  %vm4934_vm10 = vcmp.eq.s32.totalorder %v9131_v39, 2  ;;  %v9196_v24 = vsub.f32 %v5068_v25, %v5076_v26 }
 0x2c1   : > { %vm4516_vm0 = vcmp.eq.s32.totalorder %v9069_v32, 0  ;;  %vm4931_vm7 = vcmp.eq.s32.totalorder %v9131_v39, 0  ;;  %v5092_v51 = vadd.f32 %v5088_v5, %v5084_v29  ;;  %v5096_v13 = vmul.f32 %v9092_v58, %v4834_v30 }
 0x2c2   : > { %v5099_v4 = vmul.f32 %v9102_v49, %v9056_v19  ;;  %v5100_v20 = vmul.f32 %v9106_v31, %v4420_v2  ;;  %vm4515_vm12 = vcmp.lt.s32.totalorder %v9069_v32, 2  ;;  %v4598_v50 = vshrl.u32 %v4580_v6, %v4596_v10 }
 0x2c3   : > { %v4601_v18 = vadd.s32 127, %v4600_v63  ;;  %vm4930_vm14 = vcmp.lt.s32.totalorder %v9131_v39, 2  ;;  %v9206_v36 = vmul.f32 2.0, %v5091_v37  ;;  %v9209_v35 = vmul.f32 2.0, %v9189_v60 }
 0x2c4   : > { %vm4513_vm15 = vweird.f32 %v8604_v8  ;;  %v9212_v62 = vsub.f32 %v5095_v42, %v5099_v4  ;;  %v9214_v58 = vsub.f32 %v5096_v13, %v5100_v20  ;;  %v9216_v19 = vmul.f32 2.0, %v5092_v51 }
 0x2c5   : > { %v9219_v49 = vmul.f32 2.0, %v9196_v24  ;;  %v4599_v31 = vor.u32 %v4598_v50, %v4597_v34  ;;  %v4602_v2 = vshll.u32 %v4601_v18, 23  ;;  %v9222_v30 = vmul.f32 %v9206_v36, %v5091_v37 }
 0x2c6   : > { %v9225_v61 = vmul.f32 %v9209_v35, %v5091_v37  ;;  %v9228_v40 = vmul.f32 %v9216_v19, %v5092_v51  ;;  %v5119_v44 = vmul.f32 2.0, %v9212_v62  ;;  %v5120_v9 = vmul.f32 2.0, %v9214_v58 }
 0x2c7   : > { %v9233_v57 = vmul.f32 %v9219_v49, %v5092_v51  ;;  %v4603_v6 = vor.u32 4788187, %v4602_v2  ;;  %v4606_v23 = vcvt.s32.f32 %v4599_v31  ;;  %v5115_v3 = vsub.f32 1.0, %v9222_v30 }
 0x2c8   : > { %v9238_v16 = vmul.f32 %v9209_v35, %v9212_v62  ;;  %v5116_v46 = vsub.f32 1.0, %v9228_v40  ;;  %v5123_v11 = vmul.f32 %v5119_v44, %v9212_v62  ;;  %v5124_v48 = vmul.f32 %v5120_v9, %v9214_v58  ;;  %v5797_v43 = vpop.eup %5796 }
 0x2c9   : > { %v9244_v14 = vmul.f32 %v5119_v44, %v9152_v45  ;;  %v4604_v25 = vand.u32 2147483647, %v4603_v6  ;;  %v9247_v55 = vmul.f32 %v5120_v9, %v9158_v33  ;;  %v9251_v54 = vmul.f32 %v9219_v49, %v9214_v58  ;;  %v5799_v17 = vpop.eup %5798 }
 0x2ca   : > { %v9255_v28 = vmul.f32 %v9206_v36, %v9152_v45  ;;  %v4520_v56 = vxor.u32 2147483648, %v5797_v43  ;;  %v9257_v26 = vsub.f32 %v5115_v3, %v5123_v11  ;;  %v9259_v29 = vsub.f32 %v5116_v46, %v5124_v48 }
 0x2cb   : > { %v5143_v5 = vsub.f32 %v9225_v61, %v9244_v14  ;;  %v4517_v21 = vxor.u32 2147483648, %v5799_v17  ;;  %v4607_v37 = vmul.f32 %v4606_v23, %v4604_v25  ;;  %v5144_v42 = vsub.f32 %v9233_v57, %v9247_v55 }
 0x2cc   : > { %v9267_v10 = vmul.f32 %v9216_v19, %v9158_v33  ;;  %v4521_v34 = vsel %vm4519_vm1, %v4520_v56, %v5799_v17  ;;  %v4936_v63 = vsel %vm4934_vm10, %v4520_v56, %v5799_v17  ;;  %v9275_v51 = vadd.f32 %v9255_v28, %v9238_v16 }
 0x2cd   : > { %v9279_v13 = vadd.f32 %v9244_v14, %v9225_v61  ;;  %v4518_v4 = vsel %vm4516_vm0, %v5797_v43, %v4517_v21  ;;  %v4608_v20 = vxor.u32 2147483648, %v4607_v37  ;;  %v4933_v50 = vsel %vm4931_vm7, %v5797_v43, %v4517_v21 }
 0x2ce   : > { %v9287_v18 = vadd.f32 %v9267_v10, %v9251_v54  ;;  %v4522_v31 = vsel %vm4515_vm12, %v4518_v4, %v4521_v34  ;;  %v4937_v2 = vsel %vm4930_vm14, %v4933_v50, %v4936_v63  ;;  %v9295_v44 = vadd.f32 %v9247_v55, %v9233_v57 }
 0x2cf   : > { %v9299_v9 = vmul.f32 %v9209_v35, %v9189_v60  ;;  %v4523_v6 = vsel %vm4513_vm15, nan, %v4522_v31  ;;  %v4609_v23 = vsel %vm4526_vm3, %v4608_v20, %v4607_v37  ;;  %v4938_v32 = vsel %vm4513_vm15, nan, %v4937_v2 }
 0x2d0   : > { %v5164_v39 = vmul.f32 %v9219_v49, %v9196_v24  ;;  %v4612_v3 = vsel %vm9078_vm13, %v8744_v47, %v4609_v23  ;;  %v5049_v46 = vmul.f32 %v9096_v22, %v4523_v6  ;;  %v5057_v60 = vmul.f32 %v9146_v52, %v4938_v32 }
 0x2d1   : > { %v5069_v43 = vmul.f32 %v9162_v59, %v4523_v6  ;;  %5800 = vcosq.f32 %v4612_v3  ;;  %v5077_v25 = vmul.f32 %v9180_v7, %v4938_v32  ;;  %v5085_v17 = vmul.f32 %v9180_v7, %v4523_v6 }
 0x2d2   : > { %v5089_v8 = vmul.f32 %v9162_v59, %v4938_v32  ;;  %5802 = vsinq.f32 %v4612_v3  ;;  %v5061_v56 = vadd.f32 %v5057_v60, %v5049_v46  ;;  %v5097_v24 = vmul.f32 %v9096_v22, %v4938_v32 }
 0x2d3   : > { %v5101_v27 = vmul.f32 %v9146_v52, %v4523_v6  ;;  %v5081_v21 = vsub.f32 %v5069_v43, %v5077_v25  ;;  %v5167_v34 = vsub.f32 1.0, %v9299_v9  ;;  %v5168_v63 = vsub.f32 1.0, %v5164_v39 }
 0x2d4   : > { %v5093_v37 = vadd.f32 %v5089_v8, %v5085_v17  ;;  %v9323_v20 = vmul.f32 %v9206_v36, %v9212_v62  ;;  %v9327_v7 = vmul.f32 %v9216_v19, %v9214_v58  ;;  %v9331_v59 = vmul.f32 %v9209_v35, %v9152_v45 }
 0x2d5   : > { %v5105_v4 = vsub.f32 %v5097_v24, %v5101_v27  ;;  %v5133_v52 = vmul.f32 2.0, %v5081_v21  ;;  %v9333_v50 = vsub.f32 %v5167_v34, %v5123_v11  ;;  %v9335_v31 = vsub.f32 %v5168_v63, %v5124_v48 }
 0x2d6   : > { %v5109_v22 = vmul.f32 2.0, %v5093_v37  ;;  %vm4622_vm2 = vcmp.eq.s32.totalorder %v9156_v41, 2  ;;  %vm5038_vm11 = vcmp.eq.s32.totalorder %v9167_v12, 2  ;;  %v9341_v62 = vmul.f32 %v9219_v49, %v9158_v33 }
 0x2d7   : > { %v5121_v36 = vmul.f32 2.0, %v5105_v4  ;;  %v5187_v45 = vsub.f32 %v9238_v16, %v9255_v28  ;;  %vm4619_vm6 = vcmp.eq.s32.totalorder %v9156_v41, 0  ;;  %vm5035_vm3 = vcmp.eq.s32.totalorder %v9167_v12, 0 }
 0x2d8   : > { %v5113_v35 = vmul.f32 %v5109_v22, %v5093_v37  ;;  %v5137_v19 = vmul.f32 %v5133_v52, %v5093_v37  ;;  %v5149_v11 = vmul.f32 %v5133_v52, %v5105_v4  ;;  %v5153_v48 = vmul.f32 %v5109_v22, %v5061_v56 }
 0x2d9   : > { %vm4618_vm13 = vcmp.lt.s32.totalorder %v9156_v41, 2  ;;  %vm5034_vm9 = vcmp.lt.s32.totalorder %v9167_v12, 2  ;;  %v5125_v33 = vmul.f32 %v5121_v36, %v5105_v4  ;;  %v5141_v49 = vmul.f32 %v5121_v36, %v5061_v56  ;;  %v9905_v36 = vld [vmem:[#allocation25_spill] sm:$0xff]  ;;  %v9914_v41 = vld [vmem:[#allocation10_spill] sm:$0xff] }
 0x2da   : > { %v5165_v2 = vmul.f32 %v5133_v52, %v5081_v21  ;;  %v9351_v9 = vmul.f32 %v5109_v22, %v5105_v4  ;;  %vm4616_vm5 = vweird.f32 %v8744_v47  ;;  %v5117_v16 = vsub.f32 1.0, %v5113_v35  ;;  %v9903_v21 = vld [vmem:[#allocation16_spill] sm:$0xff] }
 0x2db   : > { %v9354_v28 = vadd.f32 %v5153_v48, %v5149_v11  ;;  %v9356_v6 = vmul.f32 %v5133_v52, %v5061_v56  ;;  %v5145_v32 = vsub.f32 %v5137_v19, %v5141_v49  ;;  %v5161_v39 = vadd.f32 %v5141_v49, %v5137_v19  ;;  %v9904_v4 = vld [vmem:[#allocation24_spill] sm:$0xff]  ;;  %v9909_v49 = vld [vmem:[#allocation18_spill] sm:$0xff] }
 0x2dc   : > { %v5169_v3 = vsub.f32 1.0, %v5165_v2  ;;  %v5188_v46 = vsub.f32 %v9251_v54, %v9267_v10  ;;  %v5129_v60 = vsub.f32 %v5117_v16, %v5125_v33  ;;  %v5189_v25 = vsub.f32 %v5149_v11, %v5153_v48  ;;  %v9906_v11 = vld [vmem:[#allocation30_spill] sm:$0xff] }
 0x2dd   : > { %v5191_v17 = vadd.f32 %v9331_v59, %v9323_v20  ;;  %v5192_v56 = vadd.f32 %v9341_v62, %v9327_v7  ;;  %v9370_v24 = vadd.f32 %v9356_v6, %v9351_v9  ;;  %v9373_v27 = vsub.f32 %v5167_v34, %v9222_v30  ;;  %v9908_v34 = vld [vmem:[#allocation8_spill] sm:$0xff] }
 0x2de   : > { %v5173_v8 = vsub.f32 %v5169_v3, %v5125_v33  ;;  %v9376_v54 = vsub.f32 %v5168_v63, %v9228_v40  ;;  %v9378_v10 = vsub.f32 %v5169_v3, %v5113_v35  ;;  %v5199_v37 = vmul.f32 %v9257_v26, %v9903_v21  ;;  %v5801_v52 = vpop.eup %5800  ;;  %v9907_v33 = vld [vmem:[#allocation31_spill] sm:$0xff]  ;;  %v9910_v26 = vld [vmem:[#allocation13_spill] sm:$0xff] }
 0x2df   : > { %v5200_v22 = vmul.f32 %v9259_v29, %v9904_v4  ;;  %v5201_v19 = vmul.f32 %v5129_v60, %v9905_v36  ;;  %v5203_v48 = vmul.f32 %v9279_v13, %v9906_v11  ;;  %v5204_v30 = vmul.f32 %v9295_v44, %v9907_v33  ;;  %v5803_v63 = vpop.eup %5802  ;;  %v9911_v3 = vld [vmem:[#allocation39_spill] sm:$0xff] }
 0x2e0   : > { %v5205_v40 = vmul.f32 %v5161_v39, %v9908_v34  ;;  %v4623_v35 = vxor.u32 2147483648, %v5801_v52  ;;  %v5211_v2 = vmul.f32 %v5187_v45, %v9909_v49  ;;  %v5212_v16 = vmul.f32 %v5188_v46, %v9910_v26 }
 0x2e1   : > { %v5213_v29 = vmul.f32 %v5189_v25, %v9911_v3  ;;  %v4620_v43 = vxor.u32 2147483648, %v5803_v63  ;;  %v5207_v23 = vadd.f32 %v5203_v48, %v5199_v37  ;;  %v5208_v60 = vadd.f32 %v5204_v30, %v5200_v22 }
 0x2e2   : > { %v5209_v58 = vadd.f32 %v5205_v40, %v5201_v19  ;;  %v4624_v13 = vsel %vm4622_vm2, %v4623_v35, %v5803_v63  ;;  %v5040_v44 = vsel %vm5038_vm11, %v4623_v35, %v5803_v63  ;;  %v5227_v39 = vmul.f32 %v5143_v5, %v9903_v21 }
 0x2e3   : > { %v5228_v45 = vmul.f32 %v5144_v42, %v9904_v4  ;;  %v4621_v46 = vsel %vm4619_vm6, %v5801_v52, %v4620_v43  ;;  %v5037_v25 = vsel %vm5035_vm3, %v5801_v52, %v4620_v43  ;;  %v5215_v37 = vadd.f32 %v5211_v2, %v5207_v23  ;;  %v9912_v42 = vld [vmem:[#allocation27_spill] sm:$0xff] }
 0x2e4   : > { %v5216_v22 = vadd.f32 %v5212_v16, %v5208_v60  ;;  %v4625_v19 = vsel %vm4618_vm13, %v4621_v46, %v4624_v13  ;;  %v5041_v61 = vsel %vm5034_vm9, %v5037_v25, %v5040_v44  ;;  %v5217_v14 = vadd.f32 %v5213_v29, %v5209_v58  ;;  %v9916_v29 = vld [vmem:[#allocation11_spill] sm:$0xff] }
 0x2e5   : > { %v5229_v5 = vmul.f32 %v5145_v32, %v9905_v36  ;;  %v4626_v57 = vsel %vm4616_vm5, nan, %v4625_v19  ;;  %v5042_v55 = vsel %vm4616_vm5, nan, %v5041_v61  ;;  %v9913_v23 = vrot.slane %v9912_v42, %v9837_v15 }
 0x2e6   : > { %v9915_v52 = vrot.slane %v9912_v42, %v9914_v41  ;;  %v5050_v12 = vmul.f32 %v9135_v38, %v4626_v57  ;;  %v5058_v58 = vmul.f32 %v9150_v53, %v5042_v55  ;;  %v5070_v32 = vmul.f32 %v9173_v1, %v4626_v57 }
 0x2e7   : > { %v5219_v43 = vadd.f32 %v5215_v37, %v9913_v23  ;;  %v5078_v30 = vmul.f32 %v9184_v0, %v5042_v55  ;;  %v5086_v40 = vmul.f32 %v9184_v0, %v4626_v57  ;;  %v5090_v47 = vmul.f32 %v9173_v1, %v5042_v55 }
 0x2e8   : > { %v5220_v48 = vadd.f32 %v5216_v22, %v9915_v52  ;;  %v5098_v63 = vmul.f32 %v9135_v38, %v5042_v55  ;;  %v5102_v35 = vmul.f32 %v9150_v53, %v4626_v57  ;;  %v5062_v2 = vadd.f32 %v5058_v58, %v5050_v12 }
 0x2e9   : > { %5223 = vst [vmem:[%s9435_s22] sm:$0xff] %v5219_v43  ;;  %v5082_v16 = vsub.f32 %v5070_v32, %v5078_v30  ;;  %v9917_v60 = vrot.slane %v9912_v42, %v9916_v29  ;;  %v5231_v1 = vmul.f32 %v9333_v50, %v9906_v11  ;;  %v5094_v38 = vadd.f32 %v5090_v47, %v5086_v40 }
 0x2ea   : > { %5224 = vst [vmem:[%s9435_s22 + $0x8] sm:$0xff] %v5220_v48  ;;  %v5106_v13 = vsub.f32 %v5098_v63, %v5102_v35  ;;  %v5232_v53 = vmul.f32 %v9335_v31, %v9907_v33  ;;  %v5233_v44 = vmul.f32 %v5173_v8, %v9908_v34  ;;  %v5239_v37 = vmul.f32 %v5191_v17, %v9909_v49 }
 0x2eb   : > { %v5221_v0 = vadd.f32 %v5217_v14, %v9917_v60  ;;  %v5134_v46 = vmul.f32 2.0, %v5082_v16  ;;  %v5235_v25 = vadd.f32 %v5231_v1, %v5227_v39  ;;  %v5240_v22 = vmul.f32 %v5192_v56, %v9910_v26  ;;  %v9918_v60 = vld [vmem:[#allocation28_spill] sm:$0xff]  ;;  %v9919_v1 = vld [vmem:[#allocation37_spill] sm:$0xff] }
 0x2ec   : > { %v5110_v19 = vmul.f32 2.0, %v5094_v38  ;;  %v5122_v61 = vmul.f32 2.0, %v5106_v13  ;;  %v5236_v14 = vadd.f32 %v5232_v53, %v5228_v45  ;;  %v5237_v57 = vadd.f32 %v5233_v44, %v5229_v5 }
 0x2ed   : > { %5225 = vst [vmem:[%s9435_s22 + $0x10] sm:$0xff] %v5221_v0  ;;  %v5138_v55 = vmul.f32 %v5134_v46, %v5094_v38  ;;  %v5150_v50 = vmul.f32 %v5134_v46, %v5106_v13  ;;  %v5166_v23 = vmul.f32 %v5134_v46, %v5082_v16  ;;  %v5182_v43 = vmul.f32 %v5134_v46, %v5062_v2 }
 0x2ee   : > { %v5114_v52 = vmul.f32 %v5110_v19, %v5094_v38  ;;  %v5126_v48 = vmul.f32 %v5122_v61, %v5106_v13  ;;  %v5142_v31 = vmul.f32 %v5122_v61, %v5062_v2  ;;  %v5154_v12 = vmul.f32 %v5110_v19, %v5062_v2  ;;  %v9920_v38 = vld [vmem:[#allocation36_spill] sm:$0xff] }
 0x2ef   : > { %v5170_v8 = vsub.f32 1.0, %v5166_v23  ;;  %v5178_v58 = vmul.f32 %v5110_v19, %v5106_v13  ;;  %v5241_v39 = vmul.f32 %v9370_v24, %v9911_v3  ;;  %v5243_v17 = vadd.f32 %v5239_v37, %v5235_v25  ;;  %v9921_v37 = vld [vmem:[#allocation34_spill] sm:$0xff] }
 0x2f0   : > { %v5118_v32 = vsub.f32 1.0, %v5114_v52  ;;  %v5146_v56 = vsub.f32 %v5138_v55, %v5142_v31  ;;  %v5158_v30 = vadd.f32 %v5154_v12, %v5150_v50  ;;  %v5162_v40 = vadd.f32 %v5142_v31, %v5138_v55 }
 0x2f1   : > { %v5174_v45 = vsub.f32 %v5170_v8, %v5126_v48  ;;  %v5186_v5 = vsub.f32 %v5178_v58, %v5182_v43  ;;  %v5190_v47 = vsub.f32 %v5150_v50, %v5154_v12  ;;  %v5194_v63 = vadd.f32 %v5182_v43, %v5178_v58 }
 0x2f2   : > { %v5130_v35 = vsub.f32 %v5118_v32, %v5126_v48  ;;  %v5198_v16 = vsub.f32 %v5170_v8, %v5114_v52  ;;  %v5206_v0 = vmul.f32 %v5162_v40, %v9918_v60  ;;  %v5230_v2 = vmul.f32 %v5146_v56, %v9919_v1 }
 0x2f3   : > { %v5214_v13 = vmul.f32 %v5190_v47, %v9920_v38  ;;  %v5234_v24 = vmul.f32 %v5174_v45, %v9918_v60  ;;  %v5242_v53 = vmul.f32 %v5194_v63, %v9920_v38  ;;  %v5244_v44 = vadd.f32 %v5240_v22, %v5236_v14 }
 0x2f4   : > { %v5202_v46 = vmul.f32 %v5130_v35, %v9919_v1  ;;  %v5245_v25 = vadd.f32 %v5241_v39, %v5237_v57  ;;  %v9922_v19 = vrot.slane %v9921_v37, %v9837_v15  ;;  %v5256_v55 = vmul.f32 %v9275_v51, %v9903_v21 }
 0x2f5   : > { %v5238_v50 = vadd.f32 %v5234_v24, %v5230_v2  ;;  %v9923_v23 = vrot.slane %v9921_v37, %v9914_v41  ;;  %v5257_v52 = vmul.f32 %v9287_v18, %v9904_v4  ;;  %v5258_v22 = vmul.f32 %v9354_v28, %v9905_v36 }
 0x2f6   : > { %v5247_v61 = vadd.f32 %v5243_v17, %v9922_v19  ;;  %v5210_v14 = vadd.f32 %v5206_v0, %v5202_v46  ;;  %v9924_v57 = vrot.slane %v9921_v37, %v9916_v29  ;;  %v5259_v51 = vmul.f32 %v5158_v30, %v9919_v1 }
 0x2f7   : > { %v5248_v43 = vadd.f32 %v5244_v44, %v9923_v23  ;;  %v9925_v21 = vsub.f32 %v9323_v20, %v9331_v59  ;;  %v5246_v12 = vadd.f32 %v5242_v53, %v5238_v50  ;;  %v9926_v18 = vsub.f32 %v9327_v7, %v9341_v62  ;;  %v9928_v62 = vld [vmem:[#allocation12_spill] sm:$0xff] }
 0x2f8   : > { %v5249_v48 = vadd.f32 %v5245_v25, %v9924_v57  ;;  %5547 = vst [vmem:[%s9435_s22 + $0x20] sm:$0xff] %v5247_v61  ;;  %v9927_v4 = vsub.f32 %v9351_v9, %v9356_v6  ;;  %v5263_v8 = vmul.f32 %v5186_v5, %v9918_v60  ;;  %v5218_v58 = vadd.f32 %v5214_v13, %v5210_v14 }
 0x2f9   : > { %v5260_v31 = vmul.f32 %v9925_v21, %v9906_v11  ;;  %5548 = vst [vmem:[%s9435_s22 + $0x28] sm:$0xff] %v5248_v43  ;;  %v5261_v28 = vmul.f32 %v9926_v18, %v9907_v33  ;;  %v5268_v59 = vmul.f32 %v9373_v27, %v9909_v49  ;;  %v5269_v7 = vmul.f32 %v9376_v54, %v9910_v26 }
 0x2fa   : > { %v5262_v36 = vmul.f32 %v9927_v4, %v9908_v34  ;;  %5549 = vst [vmem:[%s9435_s22 + $0x30] sm:$0xff] %v5249_v48  ;;  %v9929_v11 = vrot.slane %v9921_v37, %v9928_v62  ;;  %v5267_v34 = vadd.f32 %v5263_v8, %v5259_v51  ;;  %v9930_v39 = vrot.slane %v9912_v42, %v9928_v62  ;;  %v9931_v42 = vld [vmem:[#allocation41_spill] sm:$0xff] }
 0x2fb   : > { %v5264_v20 = vadd.f32 %v5260_v31, %v5256_v55  ;;  %v5265_v9 = vadd.f32 %v5261_v28, %v5257_v52  ;;  %v5270_v32 = vmul.f32 %v9378_v10, %v9911_v3  ;;  %v5271_v27 = vmul.f32 %v5198_v16, %v9920_v38 }
 0x2fc   : > { %v5250_v33 = vadd.f32 %v5246_v12, %v9929_v11  ;;  %v5266_v6 = vadd.f32 %v5262_v36, %v5258_v22  ;;  %v5222_v17 = vadd.f32 %v5218_v58, %v9930_v39  ;;  %v9932_v30 = vrot.slane %v9931_v42, %v9837_v15 }
 0x2fd   : > { %v5272_v54 = vadd.f32 %v5268_v59, %v5264_v20  ;;  %v5273_v49 = vadd.f32 %v5269_v7, %v5265_v9  ;;  %v5275_v56 = vadd.f32 %v5271_v27, %v5267_v34  ;;  %v9933_v10 = vrot.slane %v9931_v42, %v9914_v41 }
 0x2fe   : > { %5550 = vst [vmem:[%s9435_s22 + $0x38] sm:$0xff] %v5250_v33  ;;  %5226 = vst [vmem:[%s9435_s22 + $0x18] sm:$0xff] %v5222_v17  ;;  %v5274_v26 = vadd.f32 %v5270_v32, %v5266_v6  ;;  %v9934_v45 = vrot.slane %v9931_v42, %v9916_v29  ;;  %v9935_v15 = vrot.slane %v9931_v42, %v9928_v62 }
 0x2ff   : > { %v5276_v40 = vadd.f32 %v5272_v54, %v9932_v30  ;;  %v5277_v3 = vadd.f32 %v5273_v49, %v9933_v10 }
 0x300   : > { %v5278_v5 = vadd.f32 %v5274_v26, %v9934_v45  ;;  %v5279_v47 = vadd.f32 %v5275_v56, %v9935_v15 }
 0x301   : > { %5551 = vst [vmem:[%s9435_s22 + $0x40] sm:$0xff] %v5276_v40  ;;  %5552 = vst [vmem:[%s9435_s22 + $0x48] sm:$0xff] %v5277_v3 }
 0x302   : > { %5553 = vst [vmem:[%s9435_s22 + $0x50] sm:$0xff] %v5278_v5  ;;  %5554 = vst [vmem:[%s9435_s22 + $0x58] sm:$0xff] %v5279_v47 }
 0x303   : > { %5845 = shalt.err (!%p5842_p10)
}
 0x304   : > { %s5846_s7 = scalar_lea.hbm %s9513_s30, 1536  ;;  %s5850_s11 = scalar_lea.hbm %s9574_s3, 3072 }
 0x305   : > { %p5847_p2 = scmp.ne.s32.totalorder %s9513_s30, %s5846_s7  ;;  %p5851_p7 = scmp.lt.s32.totalorder %s9513_s30, %s9574_s3 }
 0x306   : > { %p5852_p0 = scmp.lt.s32.totalorder %s5850_s11, %s5846_s7 }
 0x307   : > { %p5848_p4 = pnand %p5847_p2, %p9936_p12 }
 0x308   : > { %p5853_p6 = por %p5852_p0, %p5851_p7 }
 0x309   : > { %p5849_p9 = pneg %p5848_p4 }
 0x30b   : > { %p5854_p11 = pnand %p5853_p6, %p5849_p9 }
 0x30d   : > { %5857 = shalt.err (!%p5854_p11)
}
 0x30e   : > { %s5911_s20 = smov 512   ;;  %s5912_s22 = smov 1024  }
 0x30f   : > { %s5913_s26 = smov 32  }
 0x310   : > { %5650 = dma.vmem_to_hbm [thread:$0]  (%p9936_p12), %s9518_s27, 1536, %s9513_s30, %s5286_s5, %s5911_s20, %s5912_s22, %s5913_s26  }
 0x311 PF: > { %s5314_s16 = sand.u32 1, %s5884_s12   ;;  %p9937_p13 = scmp.ne.s32.totalorder %s9692_s25, 0 }
 0x312   : > { %p9938_p1 = scmp.ge.s32.totalorder %s5896_s15, 2  ;;  %s5315_s28 = scalar_lea.sflag [#allocation4], %s5314_s16 }
 0x314   : > { %p5657_p3 = pnand %p9938_p1, %p9937_p13 }
 0x316   : > { %p5658_p5 = pneg %p5657_p3 }
 0x318   : > { %5879 = dma.done.wait (%p5658_p5), %s5315_s28, 1536  }
 0x319   : > { %5881 = vsyncadd (%p5658_p5), %s5315_s28, 4294965760  ;;  %p16_p8 = scmp.ge.s32.totalorder %s5959_s18, 4   ;;  %s9939_s12 = smov %s5888_s13 }
 0x31a   : > { %s9940_s13 = smov %s5892_s14  ;;  %s9941_s14 = smov %s5971_s21 }
 0x31b   : > { %s9942_s15 = smov %s5959_s18  ;;  %18 = sbr.rel (!%p16_p8) target bundleno = 5 (0x5), region = 86 }
 0x320   :  { %5320 = vsyncpa [#allocation3], 1 }
 0x321   :  { %5322 = vsyncpa [#allocation3 + $0x1], 1 }
 0x322   :  { %5323 = vsyncpa [#allocation4], 1 }
 0x323   :  { %5325 = vsyncpa [#allocation4 + $0x1], 1 }

</bundles_post_ra>
